<compile_context>
chip_gen: v6e
topology: v6e:2x2x1
jax: 0.10.0
libtpu: 0.0.40
codegen_flags: <defaults>
</compile_context>

<pallas_src>
import jax
import jax.numpy as jnp
from jax import lax
from jax.experimental import pallas as pl
from jax.experimental.pallas import tpu as pltpu

QDIM = 8                  # query/key channels (fixed by the module)
VDIM = 3                  # value channels (fixed by the module)
QKV = 2 * QDIM + VDIM     # fused q|k|v projection width = 19


def _ccattn_kernel(x_ref, xt_ref, w_ref, b_ref, gamma_ref, part_w_ref, part_h_ref):
    # x_ref : (1, H, W, C)   xt_ref : (1, W, H, C)
    H = x_ref.shape[1]
    W = x_ref.shape[2]
    C = x_ref.shape[3]

    x = x_ref[0]            # (H, W, C)
    xt = xt_ref[0]          # (W, H, C)
    w_qkv = w_ref[...]      # (C, 19)
    b_qkv = b_ref[...]      # (1, 19)
    gamma = gamma_ref[0]    # scalar, read from SMEM

    # --- fused q/k/v 1x1 convs: one MXU matmul per spatial layout ---
    qkv = jnp.dot(x.reshape(H * W, C), w_qkv,
                  preferred_element_type=jnp.float32) + b_qkv        # (H*W, 19)
    qkvT = jnp.dot(xt.reshape(W * H, C), w_qkv,
                   preferred_element_type=jnp.float32) + b_qkv       # (W*H, 19)

    q = qkv[:, :QDIM].reshape(H, W, QDIM)
    k = qkv[:, QDIM:2 * QDIM].reshape(H, W, QDIM)
    v = qkv[:, 2 * QDIM:].reshape(H, W, VDIM)
    qT = qkvT[:, :QDIM].reshape(W, H, QDIM)
    kT = qkvT[:, QDIM:2 * QDIM].reshape(W, H, QDIM)
    vT = qkvT[:, 2 * QDIM:].reshape(W, H, VDIM)

    # --- criss-cross energies as batch-leading MXU matmuls ---
    # eh[w, h, j] = sum_d q[h, w, d] * k[j, w, d]   (column attention, batched over w)
    eh = jnp.einsum('whd,wjd->whj', qT, kT, preferred_element_type=jnp.float32)  # (W, H, H)
    # ew[h, w, j] = sum_d q[h, w, d] * k[h, j, d]   (row attention, batched over h)
    ew = jnp.einsum('hwd,hjd->hwj', q, k, preferred_element_type=jnp.float32)    # (H, W, W)

    # torch's INF(): mask the h == j diagonal (large finite negative, no -inf math)
    ii = lax.broadcasted_iota(jnp.int32, (1, H, H), 1)
    jj = lax.broadcasted_iota(jnp.int32, (1, H, H), 2)
    eh = jnp.where(ii == jj, jnp.float32(-1e30), eh)

    # --- joint softmax over the concatenated (H + W) axis, no materialized concat ---
    m = jnp.maximum(jnp.max(eh, axis=-1).T, jnp.max(ew, axis=-1))    # (H, W)
    mT = m.T                                                         # (W, H)
    p_h = jnp.exp(eh - mT[:, :, None])                               # (W, H, H)
    p_w = jnp.exp(ew - m[:, :, None])                                # (H, W, W)
    denom = jnp.sum(p_h, axis=-1).T + jnp.sum(p_w, axis=-1)          # (H, W)
    inv = pl.reciprocal(denom, approx=True)                          # (H, W)  (EUP)
    att_h = p_h * inv.T[:, :, None]                                  # (W, H, H)
    att_w = p_w * inv[:, :, None]                                    # (H, W, W)

    # --- value aggregation as batch-leading MXU matmuls ---
    # out_hT[w, h, e] = sum_j att_h[w, h, j] * v[j, w, e]
    out_hT = jnp.einsum('whj,wje->whe', att_h, vT,
                        preferred_element_type=jnp.float32)          # (W, H, VDIM)
    # out_w[h, w, e] = sum_j att_w[h, w, j] * v[h, j, e]
    out_w = jnp.einsum('hwj,hje->hwe', att_w, v,
                       preferred_element_type=jnp.float32)           # (H, W, VDIM)

    # Row-branch partial carries the residual; column-branch partial stays in its
    # natural (W, H, C) layout (the transpose + add is XLA layout plumbing outside).
    part_w_ref[0] = (gamma * out_w + x).astype(part_w_ref.dtype)
    part_h_ref[0] = (gamma * out_hT).astype(part_h_ref.dtype)


def criss_cross_attention(x_nchw, wq, bq, wk, bk, wv, bv, gamma):
    """x_nchw: (B, C, H, W) with C == 3 (residual add requires in_dim == value channels)."""
    B, C, H, W = x_nchw.shape
    assert C == VDIM, "CrissCrossAttention residual add requires in_dim == 3"

    x = jnp.transpose(x_nchw, (0, 2, 3, 1)).astype(jnp.float32)    # (B, H, W, C)
    xt = jnp.transpose(x_nchw, (0, 3, 2, 1)).astype(jnp.float32)   # (B, W, H, C)
    w_qkv = jnp.concatenate([wq, wk, wv], axis=1).astype(jnp.float32)        # (C, 19)
    b_qkv = jnp.concatenate([bq, bk, bv]).reshape(1, QKV).astype(jnp.float32)
    g = jnp.asarray(gamma, jnp.float32).reshape(1,)

    part_w, part_h = pl.pallas_call(
        _ccattn_kernel,
        out_shape=(
            jax.ShapeDtypeStruct((B, H, W, C), jnp.float32),
            jax.ShapeDtypeStruct((B, W, H, C), jnp.float32),
        ),
        grid_spec=pltpu.PrefetchScalarGridSpec(
            num_scalar_prefetch=0,
            grid=(B,),
            in_specs=[
                pl.BlockSpec((1, H, W, C), lambda b: (b, 0, 0, 0)),
                pl.BlockSpec((1, W, H, C), lambda b: (b, 0, 0, 0)),
                pl.BlockSpec((C, QKV), lambda b: (0, 0)),
                pl.BlockSpec((1, QKV), lambda b: (0, 0)),
                pl.BlockSpec(memory_space=pltpu.MemorySpace.SMEM),   # gamma on scalar path
            ],
            out_specs=[
                pl.BlockSpec((1, H, W, C), lambda b: (b, 0, 0, 0)),
                pl.BlockSpec((1, W, H, C), lambda b: (b, 0, 0, 0)),
            ],
        ),
        compiler_params=pltpu.CompilerParams(dimension_semantics=("parallel",)),
    )(x, xt, w_qkv, b_qkv, g)

    # trivially fused XLA epilogue: merge the two branch partials, back to NCHW
    out_nhwc = part_w + jnp.transpose(part_h, (0, 2, 1, 3))
    return jnp.transpose(out_nhwc, (0, 3, 1, 2))


criss_cross_attention = jax.jit(criss_cross_attention)


def _reference(x_nchw, wq, bq, wk, bk, wv, bv, gamma):
    """Plain-JAX mirror of the torch forward (NCHW), for verification."""
    B, C, H, W = x_nchw.shape

    def conv1x1(x, w, b):  # w: (C_in, C_out)
        return jnp.einsum('bchw,co->bohw', x, w) + b[None, :, None, None]

    q = conv1x1(x_nchw, wq, bq)
    k = conv1x1(x_nchw, wk, bk)
    v = conv1x1(x_nchw, wv, bv)
    eh = jnp.einsum('bdhw,bdjw->bhwj', q, k)
    mask = (jnp.arange(H)[:, None] == jnp.arange(H)[None, :])[None, :, None, :]
    eh = jnp.where(mask, -jnp.inf, eh)
    ew = jnp.einsum('bdhw,bdhj->bhwj', q, k)
    att = jax.nn.softmax(jnp.concatenate([eh, ew], axis=-1), axis=-1)
    ah, aw = att[..., :H], att[..., H:]
    oh = jnp.einsum('bhwj,bejw->behw', ah, v)
    ow = jnp.einsum('bhwj,behj->behw', aw, v)
    return gamma * (oh + ow) + x_nchw


if __name__ == "__main__":
    key = jax.random.PRNGKey(0)
    ks = jax.random.split(key, 7)
    # in_dim = 3: value_conv has 3 out channels and the module adds the result to x
    B, C, H, W = 2, 3, 16, 16

    x = jax.random.normal(ks[0], (B, C, H, W), jnp.float32)
    wq = jax.random.normal(ks[1], (C, QDIM), jnp.float32) * 0.2
    bq = jax.random.normal(ks[2], (QDIM,), jnp.float32) * 0.1
    wk = jax.random.normal(ks[3], (C, QDIM), jnp.float32) * 0.2
    bk = jax.random.normal(ks[4], (QDIM,), jnp.float32) * 0.1
    wv = jax.random.normal(ks[5], (C, VDIM), jnp.float32) * 0.2
    bv = jax.random.normal(ks[6], (VDIM,), jnp.float32) * 0.1

    # module default: gamma = nn.Parameter(zeros(1))  -> output must equal x
    out0 = criss_cross_attention(x, wq, bq, wk, bk, wv, bv, jnp.float32(0.0))
    out0 = jax.block_until_ready(out0)
    assert jnp.allclose(out0, x, atol=1e-6), "gamma=0 must be identity"

    # nonzero gamma to actually exercise the attention path
    gamma = jnp.float32(0.5)
    out = criss_cross_attention(x, wq, bq, wk, bk, wv, bv, gamma)
    out = jax.block_until_ready(out)

    ref = _reference(x, wq, bq, wk, bk, wv, bv, gamma)
    err = float(jnp.max(jnp.abs(out - ref)))
    # tolerance accounts for the approximate (EUP) reciprocal in the softmax
    assert jnp.allclose(out, ref, atol=2e-3, rtol=2e-3), f"max abs err {err}"
    print("KERNEL_OK")
</pallas_src>

<mosaic_0001>
module attributes {stable_mosaic.version = 11 : i64} {
  func.func @_ccattn_kernel(%arg0: i32, %arg1: memref<1x16x16x3xf32, #tpu.memory_space<vmem>>, %arg2: memref<1x16x16x3xf32, #tpu.memory_space<vmem>>, %arg3: memref<3x19xf32, #tpu.memory_space<vmem>>, %arg4: memref<1x19xf32, #tpu.memory_space<vmem>>, %arg5: memref<1xf32, #tpu.memory_space<smem>>, %arg6: memref<1x16x16x3xf32, #tpu.memory_space<vmem>>, %arg7: memref<1x16x16x3xf32, #tpu.memory_space<vmem>>) attributes {dimension_semantics = [#tpu.dimension_semantics<parallel>], iteration_bounds = array<i64: 2>, scalar_prefetch = 0 : i64, scratch_operands = 0 : i64, tpu.core_type = #tpu.core_type<tc>, window_params = [{transform_indices = @transform_0, window_bounds = array<i64: 1, 16, 16, 3>}, {transform_indices = @transform_1, window_bounds = array<i64: 1, 16, 16, 3>}, {pipeline_mode = #tpu.pipeline_mode<synchronous>, transform_indices = @transform_2, window_bounds = array<i64: 3, 19>}, {pipeline_mode = #tpu.pipeline_mode<synchronous>, transform_indices = @transform_3, window_bounds = array<i64: 1, 19>}, {transform_indices = @transform_4, window_bounds = array<i64: 1>}, {transform_indices = @transform_5, window_bounds = array<i64: 1, 16, 16, 3>}, {transform_indices = @transform_6, window_bounds = array<i64: 1, 16, 16, 3>}]} {
    %c0 = arith.constant 0 : index
    %c0_0 = arith.constant 0 : index
    %c0_1 = arith.constant 0 : index
    %c0_2 = arith.constant 0 : index
    %0 = vector.load %arg1[%c0, %c0_0, %c0_1, %c0_2] : memref<1x16x16x3xf32, #tpu.memory_space<vmem>>, vector<1x16x16x3xf32>
    %1 = vector.shape_cast %0 : vector<1x16x16x3xf32> to vector<16x16x3xf32>
    %c0_3 = arith.constant 0 : index
    %c0_4 = arith.constant 0 : index
    %c0_5 = arith.constant 0 : index
    %c0_6 = arith.constant 0 : index
    %2 = vector.load %arg2[%c0_3, %c0_4, %c0_5, %c0_6] : memref<1x16x16x3xf32, #tpu.memory_space<vmem>>, vector<1x16x16x3xf32>
    %3 = vector.shape_cast %2 : vector<1x16x16x3xf32> to vector<16x16x3xf32>
    %c0_7 = arith.constant 0 : index
    %c0_8 = arith.constant 0 : index
    %4 = vector.load %arg3[%c0_7, %c0_8] : memref<3x19xf32, #tpu.memory_space<vmem>>, vector<3x19xf32>
    %c0_9 = arith.constant 0 : index
    %c0_10 = arith.constant 0 : index
    %5 = vector.load %arg4[%c0_9, %c0_10] : memref<1x19xf32, #tpu.memory_space<vmem>>, vector<1x19xf32>
    %c0_11 = arith.constant 0 : index
    %6 = memref.load %arg5[%c0_11] : memref<1xf32, #tpu.memory_space<smem>>
    %7 = vector.shape_cast %1 : vector<16x16x3xf32> to vector<256x3xf32>
    %cst = arith.constant dense<0.000000e+00> : vector<256x19xf32>
    %8 = tpu.matmul %7, %4, %cst {dimension_numbers = #tpu.dot_dimension_numbers<[1], [0], [0], [1], [0, 0, 1, 1], [], []>} : vector<256x3xf32>, vector<3x19xf32>, vector<256x19xf32> -> vector<256x19xf32>
    %9 = vector.broadcast %5 : vector<1x19xf32> to vector<256x19xf32>
    %10 = arith.addf %8, %9 : vector<256x19xf32>
    %11 = vector.shape_cast %3 : vector<16x16x3xf32> to vector<256x3xf32>
    %cst_12 = arith.constant dense<0.000000e+00> : vector<256x19xf32>
    %12 = tpu.matmul %11, %4, %cst_12 {dimension_numbers = #tpu.dot_dimension_numbers<[1], [0], [0], [1], [0, 0, 1, 1], [], []>} : vector<256x3xf32>, vector<3x19xf32>, vector<256x19xf32> -> vector<256x19xf32>
    %13 = vector.broadcast %5 : vector<1x19xf32> to vector<256x19xf32>
    %14 = arith.addf %12, %13 : vector<256x19xf32>
    %15 = vector.extract_strided_slice %10 {offsets = [0, 0], sizes = [256, 8], strides = [1, 1]} : vector<256x19xf32> to vector<256x8xf32>
    %16 = vector.shape_cast %15 : vector<256x8xf32> to vector<16x16x8xf32>
    %17 = vector.extract_strided_slice %10 {offsets = [0, 8], sizes = [256, 8], strides = [1, 1]} : vector<256x19xf32> to vector<256x8xf32>
    %18 = vector.shape_cast %17 : vector<256x8xf32> to vector<16x16x8xf32>
    %19 = vector.extract_strided_slice %10 {offsets = [0, 16], sizes = [256, 3], strides = [1, 1]} : vector<256x19xf32> to vector<256x3xf32>
    %20 = vector.shape_cast %19 : vector<256x3xf32> to vector<16x16x3xf32>
    %21 = vector.extract_strided_slice %14 {offsets = [0, 0], sizes = [256, 8], strides = [1, 1]} : vector<256x19xf32> to vector<256x8xf32>
    %22 = vector.shape_cast %21 : vector<256x8xf32> to vector<16x16x8xf32>
    %23 = vector.extract_strided_slice %14 {offsets = [0, 8], sizes = [256, 8], strides = [1, 1]} : vector<256x19xf32> to vector<256x8xf32>
    %24 = vector.shape_cast %23 : vector<256x8xf32> to vector<16x16x8xf32>
    %25 = vector.extract_strided_slice %14 {offsets = [0, 16], sizes = [256, 3], strides = [1, 1]} : vector<256x19xf32> to vector<256x3xf32>
    %26 = vector.shape_cast %25 : vector<256x3xf32> to vector<16x16x3xf32>
    "tpu.trace_start"() <{level = 10 : i32, message = "whd,wjd->whj"}> : () -> ()
    %cst_13 = arith.constant dense<0.000000e+00> : vector<16x16x16xf32>
    %27 = tpu.matmul %22, %24, %cst_13 {dimension_numbers = #tpu.dot_dimension_numbers<[2], [2], [1], [1], [0, 0, 0, 1, 1, 1], [0], [0]>} : vector<16x16x8xf32>, vector<16x16x8xf32>, vector<16x16x16xf32> -> vector<16x16x16xf32>
    "tpu.trace_stop"() : () -> ()
    "tpu.trace_start"() <{level = 10 : i32, message = "hwd,hjd->hwj"}> : () -> ()
    %cst_14 = arith.constant dense<0.000000e+00> : vector<16x16x16xf32>
    %28 = tpu.matmul %16, %18, %cst_14 {dimension_numbers = #tpu.dot_dimension_numbers<[2], [2], [1], [1], [0, 0, 0, 1, 1, 1], [0], [0]>} : vector<16x16x8xf32>, vector<16x16x8xf32>, vector<16x16x16xf32> -> vector<16x16x16xf32>
    "tpu.trace_stop"() : () -> ()
    %29 = tpu.iota {dimensions = array<i32: 1>} : vector<1x16x16xi32>
    %30 = tpu.iota {dimensions = array<i32: 2>} : vector<1x16x16xi32>
    %31 = arith.cmpi eq, %29, %30 : vector<1x16x16xi32>
    %cst_15 = arith.constant -1.000000e+30 : f32
    %32 = vector.shape_cast %31 : vector<1x16x16xi1> to vector<1x16x16xi1>
    %33 = vector.broadcast %32 : vector<1x16x16xi1> to vector<16x16x16xi1>
    %34 = vector.broadcast %cst_15 : f32 to vector<16x16x16xf32>
    %35 = arith.select %33, %34, %27 : vector<16x16x16xi1>, vector<16x16x16xf32>
    %cst_16 = arith.constant dense<0xFF800000> : vector<16x16xf32>
    %36 = vector.multi_reduction <maximumf>, %35, %cst_16 [2] : vector<16x16x16xf32> to vector<16x16xf32>
    %37 = tpu.transpose %36, [1, 0] : vector<16x16xf32> -> vector<16x16xf32>
    %cst_17 = arith.constant dense<0xFF800000> : vector<16x16xf32>
    %38 = vector.multi_reduction <maximumf>, %28, %cst_17 [2] : vector<16x16x16xf32> to vector<16x16xf32>
    %39 = arith.maximumf %37, %38 : vector<16x16xf32>
    %40 = tpu.transpose %39, [1, 0] : vector<16x16xf32> -> vector<16x16xf32>
    %41 = vector.shape_cast %40 : vector<16x16xf32> to vector<16x16x1xf32>
    %42 = vector.broadcast %41 : vector<16x16x1xf32> to vector<16x16x16xf32>
    %43 = arith.subf %35, %42 : vector<16x16x16xf32>
    %44 = math.exp %43 : vector<16x16x16xf32>
    %45 = vector.shape_cast %39 : vector<16x16xf32> to vector<16x16x1xf32>
    %46 = vector.broadcast %45 : vector<16x16x1xf32> to vector<16x16x16xf32>
    %47 = arith.subf %28, %46 : vector<16x16x16xf32>
    %48 = math.exp %47 : vector<16x16x16xf32>
    %cst_18 = arith.constant dense<0.000000e+00> : vector<16x16xf32>
    %49 = vector.multi_reduction <add>, %44, %cst_18 [2] : vector<16x16x16xf32> to vector<16x16xf32>
    %50 = tpu.transpose %49, [1, 0] : vector<16x16xf32> -> vector<16x16xf32>
    %cst_19 = arith.constant dense<0.000000e+00> : vector<16x16xf32>
    %51 = vector.multi_reduction <add>, %48, %cst_19 [2] : vector<16x16x16xf32> to vector<16x16xf32>
    %52 = arith.addf %50, %51 : vector<16x16xf32>
    %53 = tpu.reciprocal %52 {approx = true} : vector<16x16xf32> -> vector<16x16xf32>
    %54 = tpu.transpose %53, [1, 0] : vector<16x16xf32> -> vector<16x16xf32>
    %55 = vector.shape_cast %54 : vector<16x16xf32> to vector<16x16x1xf32>
    %56 = vector.broadcast %55 : vector<16x16x1xf32> to vector<16x16x16xf32>
    %57 = arith.mulf %44, %56 : vector<16x16x16xf32>
    %58 = vector.shape_cast %53 : vector<16x16xf32> to vector<16x16x1xf32>
    %59 = vector.broadcast %58 : vector<16x16x1xf32> to vector<16x16x16xf32>
    %60 = arith.mulf %48, %59 : vector<16x16x16xf32>
    "tpu.trace_start"() <{level = 10 : i32, message = "whj,wje->whe"}> : () -> ()
    %cst_20 = arith.constant dense<0.000000e+00> : vector<16x16x3xf32>
    %61 = tpu.matmul %57, %26, %cst_20 {dimension_numbers = #tpu.dot_dimension_numbers<[2], [1], [1], [2], [0, 0, 0, 1, 1, 2], [0], [0]>} : vector<16x16x16xf32>, vector<16x16x3xf32>, vector<16x16x3xf32> -> vector<16x16x3xf32>
    "tpu.trace_stop"() : () -> ()
    "tpu.trace_start"() <{level = 10 : i32, message = "hwj,hje->hwe"}> : () -> ()
    %cst_21 = arith.constant dense<0.000000e+00> : vector<16x16x3xf32>
    %62 = tpu.matmul %60, %20, %cst_21 {dimension_numbers = #tpu.dot_dimension_numbers<[2], [1], [1], [2], [0, 0, 0, 1, 1, 2], [0], [0]>} : vector<16x16x16xf32>, vector<16x16x3xf32>, vector<16x16x3xf32> -> vector<16x16x3xf32>
    "tpu.trace_stop"() : () -> ()
    %63 = vector.broadcast %6 : f32 to vector<16x16x3xf32>
    %64 = arith.mulf %63, %62 : vector<16x16x3xf32>
    %65 = arith.addf %64, %1 : vector<16x16x3xf32>
    %c0_22 = arith.constant 0 : index
    %c0_23 = arith.constant 0 : index
    %c0_24 = arith.constant 0 : index
    %c0_25 = arith.constant 0 : index
    %66 = vector.load %arg6[%c0_22, %c0_23, %c0_24, %c0_25] : memref<1x16x16x3xf32, #tpu.memory_space<vmem>>, vector<1x16x16x3xf32>
    %67 = vector.shape_cast %66 : vector<1x16x16x3xf32> to vector<16x16x3xf32>
    %68 = vector.shape_cast %65 : vector<16x16x3xf32> to vector<1x16x16x3xf32>
    tpu.vector_store %arg6[%c0_22, %c0_23, %c0_24, %c0_25], %68 {strides = array<i32>} : memref<1x16x16x3xf32, #tpu.memory_space<vmem>>, vector<1x16x16x3xf32>,
    %69 = vector.broadcast %6 : f32 to vector<16x16x3xf32>
    %70 = arith.mulf %69, %61 : vector<16x16x3xf32>
    %c0_26 = arith.constant 0 : index
    %c0_27 = arith.constant 0 : index
    %c0_28 = arith.constant 0 : index
    %c0_29 = arith.constant 0 : index
    %71 = vector.load %arg7[%c0_26, %c0_27, %c0_28, %c0_29] : memref<1x16x16x3xf32, #tpu.memory_space<vmem>>, vector<1x16x16x3xf32>
    %72 = vector.shape_cast %71 : vector<1x16x16x3xf32> to vector<16x16x3xf32>
    %73 = vector.shape_cast %70 : vector<16x16x3xf32> to vector<1x16x16x3xf32>
    tpu.vector_store %arg7[%c0_26, %c0_27, %c0_28, %c0_29], %73 {strides = array<i32>} : memref<1x16x16x3xf32, #tpu.memory_space<vmem>>, vector<1x16x16x3xf32>,
    return
  }
  func.func @transform_0(%arg0: i32) -> (i32, i32, i32, i32) {
    %c0_i32 = arith.constant 0 : i32
    %c0_i32_0 = arith.constant 0 : i32
    %c0_i32_1 = arith.constant 0 : i32
    %c0_i32_2 = arith.constant 0 : i32
    return %arg0, %c0_i32, %c0_i32_0, %c0_i32_1 : i32, i32, i32, i32
  }
  func.func @transform_1(%arg0: i32) -> (i32, i32, i32, i32) {
    %c0_i32 = arith.constant 0 : i32
    %c0_i32_0 = arith.constant 0 : i32
    %c0_i32_1 = arith.constant 0 : i32
    %c0_i32_2 = arith.constant 0 : i32
    return %arg0, %c0_i32, %c0_i32_0, %c0_i32_1 : i32, i32, i32, i32
  }
  func.func @transform_2(%arg0: i32) -> (i32, i32) {
    %c0_i32 = arith.constant 0 : i32
    %c0_i32_0 = arith.constant 0 : i32
    %c0_i32_1 = arith.constant 0 : i32
    return %c0_i32, %c0_i32_0 : i32, i32
  }
  func.func @transform_3(%arg0: i32) -> (i32, i32) {
    %c0_i32 = arith.constant 0 : i32
    %c0_i32_0 = arith.constant 0 : i32
    %c0_i32_1 = arith.constant 0 : i32
    return %c0_i32, %c0_i32_0 : i32, i32
  }
  func.func @transform_4(%arg0: i32) -> i32 {
    %c0_i32 = arith.constant 0 : i32
    %c0_i32_0 = arith.constant 0 : i32
    return %c0_i32 : i32
  }
  func.func @transform_5(%arg0: i32) -> (i32, i32, i32, i32) {
    %c0_i32 = arith.constant 0 : i32
    %c0_i32_0 = arith.constant 0 : i32
    %c0_i32_1 = arith.constant 0 : i32
    %c0_i32_2 = arith.constant 0 : i32
    return %arg0, %c0_i32, %c0_i32_0, %c0_i32_1 : i32, i32, i32, i32
  }
  func.func @transform_6(%arg0: i32) -> (i32, i32, i32, i32) {
    %c0_i32 = arith.constant 0 : i32
    %c0_i32_0 = arith.constant 0 : i32
    %c0_i32_1 = arith.constant 0 : i32
    %c0_i32_2 = arith.constant 0 : i32
    return %arg0, %c0_i32, %c0_i32_0, %c0_i32_1 : i32, i32, i32, i32
  }
}

</mosaic_0001>

<bundles_post_ra>
// kernel: criss_cross_attention.1
= control target key start
LH: loop header
LB: loop body
LE: loop exit
PB: predicated region body
PF: predicated region fallthrough
CT: control target
= control target key end

     0   :  { %s10570_s23 = smov 0   ;;  %s13491_s0 = inlined_call_operand.vmem [shape: f32[2,16,16,3], index: 0, kind: input, shape index: {}]   ;;  %s13492_s1 = inlined_call_operand.vmem [shape: f32[2,16,16,3], index: 1, kind: input, shape index: {}]   ;;  %s13493_s2 = inlined_call_operand.vmem [shape: f32[3,19], index: 2, kind: input, shape index: {}]   ;;  %s13494_s3 = inlined_call_operand.vmem [shape: f32[1,19], index: 3, kind: input, shape index: {}]   ;;  %s13495_s4 = inlined_call_operand.<no memory space> [shape: f32[1], index: 4, kind: input, shape index: {}]   ;;  %s13496_s5 = inlined_call_operand.vmem [shape: f32[2,16,16,3], index: 5, kind: output, shape index: {0}]   ;;  %s13497_s6 = inlined_call_operand.vmem [shape: f32[2,16,16,3], index: 6, kind: output, shape index: {1}]  }
   0x1   :  { %12 = sst [smem:[#allocation2]] %s13495_s4 }
   0x2 LB: > { %s9199_s24 = sadd.s32 4294967295, %s10528_s23   ;;  %p9203_p0 = scmp.ge.s32.totalorder %s10528_s23, 1  ;;  %s10528_s23 = sphi %s10570_s23, %s18_s23  }
   0x3   : > { %p226_p1 = scmp.lt.s32.totalorder %s10528_s23, 3 }
   0x5   : > { %p227_p2 = pnand %p9203_p0, %p226_p1 }
   0x7   : > { %230 = sbr.rel (%p227_p2) target bundleno = 2365 (0x93d), region = 40 }
   0xc   : > { %v350_v0 = vld [vmem:[%s13493_s2] sm:$0x7]  ;;  %vm456_vm0 = vcmask 1042432   ;;  %p266_p3 = scmp.lt.s32.totalorder %s9199_s24, 1  ;;  %vm359_vm1 = vcmask 23552   ;;  %vm1012_vm2 = vcmask 64512  }
   0xd   : > { %9799 = vmatprep.subr.msk.mxu0 %vm456_vm0, %v350_v0  ;;  %9849 = vmatprep.subr.msk.mxu1 %vm456_vm0, %v350_v0  ;;  %s10530_s11 = smov 120   ;;  %s10531_s12 = smov 112   ;;  %vm3898_vm4 = vcmask 130048   ;;  %vm4036_vm6 = vcmask 130112   ;;  %vm4173_vm7 = vcmask 1041409   ;;  %vm4175_vm8 = vcmask 1042434  }
   0xe   : > { %9800 = vmatpush3.msk.msra.mxu0 %vm456_vm0, %v350_v0  ;;  %s14057_s24 = smov (!%p266_p3, %s9199_s24), 1  ;;  %9850 = vmatpush3.msk.msra.mxu1 %vm456_vm0, %v350_v0  ;;  %vm4177_vm9 = vcmask 1043459   ;;  %vm4179_vm10 = vcmask 1044484   ;;  %vm4181_vm11 = vcmask 1045509   ;;  %vm4183_vm12 = vcmask 1046534   ;;  %s352_s13 = sld [smem:[#allocation2]] }
   0xf   : > { %s10581_s4 = sshll.u32 %s14057_s24, 8  ;;  %vm4185_vm13 = vcmask 1047559  }
  0x10   : > { %s10587_s29 = scalar_lea.vmem %s13491_s0, %s10581_s4  ;;  %s10593_s8 = scalar_lea.vmem %s13492_s1, %s10581_s4 }
  0x11   : > { %v286_v1 = vld [vmem:[%s10587_s29] sm:$0xff]  ;;  %v287_v3 = vld [vmem:[%s10587_s29 + $0x8] sm:$0xff]  ;;  %v288_v5 = vld [vmem:[%s10587_s29 + $0x10] sm:$0xff]  ;;  %s13256_s16 = scalar_lea.vmem %s13497_s6, %s10581_s4  ;;  %s13360_s19 = scalar_lea.vmem %s13496_s5, %s10581_s4 }
  0x12   : > { %v318_v2 = vld [vmem:[%s10593_s8] sm:$0xff]  ;;  %9801 = vmatprep.mubr.msk.f32.mxu0 %vm359_vm1, %v286_v1  ;;  %v319_v4 = vld [vmem:[%s10593_s8 + $0x8] sm:$0xff]  ;;  %v320_v6 = vld [vmem:[%s10593_s8 + $0x10] sm:$0xff] }
  0x13   : > { %9851 = vmatprep.mubr.msk.f32.mxu1 %vm359_vm1, %v318_v2  ;;  %9802 = vmatmul.mubr.msk.f32.vlgmr.msra.gmra.mxu0 %vm359_vm1, %v287_v3  ;;  %v289_v7 = vld [vmem:[%s10587_s29 + $0x18] sm:$0xff]  ;;  %v322_v9 = vld [vmem:[%s10593_s8 + $0x20] sm:$0xff]  ;;  %v323_v11 = vld [vmem:[%s10593_s8 + $0x28] sm:$0xff] }
  0x14   : > { %9852 = vmatmul.mubr.msk.f32.vlgmr.msra.gmra.mxu1 %vm359_vm1, %v319_v4  ;;  %9804 = vmatprep.mubr.msk.f32.mxu0 %vm359_vm1, %v288_v5  ;;  %v321_v8 = vld [vmem:[%s10593_s8 + $0x18] sm:$0xff]  ;;  %v290_v10 = vld [vmem:[%s10587_s29 + $0x20] sm:$0xff]  ;;  %v291_v12 = vld [vmem:[%s10587_s29 + $0x28] sm:$0xff] }
  0x15   : > { %9854 = vmatprep.mubr.msk.f32.mxu1 %vm359_vm1, %v320_v6  ;;  %v324_v13 = vld [vmem:[%s10593_s8 + $0x30] sm:$0xff]  ;;  %v325_v15 = vld [vmem:[%s10593_s8 + $0x38] sm:$0xff]  ;;  %v326_v17 = vld [vmem:[%s10593_s8 + $0x40] sm:$0xff] }
  0x16   : > { %v292_v14 = vld [vmem:[%s10587_s29 + $0x30] sm:$0xff]  ;;  %v293_v16 = vld [vmem:[%s10587_s29 + $0x38] sm:$0xff]  ;;  %v294_v18 = vld [vmem:[%s10587_s29 + $0x40] sm:$0xff] }
  0x17   : > { %9805 = vmatmul.mubr.msk.f32.gmra.mxu0 %vm359_vm1, %v289_v7  ;;  %v327_v19 = vld [vmem:[%s10593_s8 + $0x48] sm:$0xff]  ;;  %v328_v21 = vld [vmem:[%s10593_s8 + $0x50] sm:$0xff]  ;;  %v329_v23 = vld [vmem:[%s10593_s8 + $0x58] sm:$0xff] }
  0x18   : > { %9855 = vmatmul.mubr.msk.f32.gmra.mxu1 %vm359_vm1, %v321_v8  ;;  %9807 = vmatprep.mubr.msk.f32.mxu0 %vm359_vm1, %v290_v10  ;;  %v295_v20 = vld [vmem:[%s10587_s29 + $0x48] sm:$0xff]  ;;  %v296_v22 = vld [vmem:[%s10587_s29 + $0x50] sm:$0xff]  ;;  %v297_v24 = vld [vmem:[%s10587_s29 + $0x58] sm:$0xff] }
  0x19   : > { %9857 = vmatprep.mubr.msk.f32.mxu1 %vm359_vm1, %v322_v9  ;;  %v330_v25 = vld [vmem:[%s10593_s8 + $0x60] sm:$0xff]  ;;  %v331_v27 = vld [vmem:[%s10593_s8 + $0x68] sm:$0xff]  ;;  %v332_v29 = vld [vmem:[%s10593_s8 + $0x70] sm:$0xff] }
  0x1a   : > { %v298_v26 = vld [vmem:[%s10587_s29 + $0x60] sm:$0xff]  ;;  %v299_v28 = vld [vmem:[%s10587_s29 + $0x68] sm:$0xff]  ;;  %v300_v30 = vld [vmem:[%s10587_s29 + $0x70] sm:$0xff] }
  0x1b   : > { %9808 = vmatmul.mubr.msk.f32.gmra.mxu0 %vm359_vm1, %v291_v12  ;;  %v333_v31 = vld [vmem:[%s10593_s8 + $0x78] sm:$0xff]  ;;  %v334_v33 = vld [vmem:[%s10593_s8 + $0x80] sm:$0xff]  ;;  %v335_v35 = vld [vmem:[%s10593_s8 + $0x88] sm:$0xff] }
  0x1c   : > { %9858 = vmatmul.mubr.msk.f32.gmra.mxu1 %vm359_vm1, %v323_v11  ;;  %9810 = vmatprep.mubr.msk.f32.mxu0 %vm359_vm1, %v292_v14  ;;  %v301_v32 = vld [vmem:[%s10587_s29 + $0x78] sm:$0xff]  ;;  %v302_v34 = vld [vmem:[%s10587_s29 + $0x80] sm:$0xff]  ;;  %v303_v36 = vld [vmem:[%s10587_s29 + $0x88] sm:$0xff] }
  0x1d   : > { %9860 = vmatprep.mubr.msk.f32.mxu1 %vm359_vm1, %v324_v13  ;;  %v336_v37 = vld [vmem:[%s10593_s8 + $0x90] sm:$0xff]  ;;  %v337_v39 = vld [vmem:[%s10593_s8 + $0x98] sm:$0xff]  ;;  %v338_v41 = vld [vmem:[%s10593_s8 + $0xa0] sm:$0xff] }
  0x1e   : > { %v304_v38 = vld [vmem:[%s10587_s29 + $0x90] sm:$0xff]  ;;  %v305_v40 = vld [vmem:[%s10587_s29 + $0x98] sm:$0xff]  ;;  %v306_v42 = vld [vmem:[%s10587_s29 + $0xa0] sm:$0xff] }
  0x1f   : > { %9811 = vmatmul.mubr.msk.f32.gmra.mxu0 %vm359_vm1, %v293_v16  ;;  %v339_v43 = vld [vmem:[%s10593_s8 + $0xa8] sm:$0xff]  ;;  %v340_v45 = vld [vmem:[%s10593_s8 + $0xb0] sm:$0xff]  ;;  %v341_v47 = vld [vmem:[%s10593_s8 + $0xb8] sm:$0xff] }
  0x20   : > { %9861 = vmatmul.mubr.msk.f32.gmra.mxu1 %vm359_vm1, %v325_v15  ;;  %9813 = vmatprep.mubr.msk.f32.mxu0 %vm359_vm1, %v294_v18  ;;  %v307_v44 = vld [vmem:[%s10587_s29 + $0xa8] sm:$0xff]  ;;  %v308_v46 = vld [vmem:[%s10587_s29 + $0xb0] sm:$0xff]  ;;  %v309_v48 = vld [vmem:[%s10587_s29 + $0xb8] sm:$0xff] }
  0x21   : > { %9863 = vmatprep.mubr.msk.f32.mxu1 %vm359_vm1, %v326_v17  ;;  %v342_v49 = vld [vmem:[%s10593_s8 + $0xc0] sm:$0xff]  ;;  %v343_v51 = vld [vmem:[%s10593_s8 + $0xc8] sm:$0xff]  ;;  %v312_v53 = vld [vmem:[%s10587_s29 + $0xd0] sm:$0xff] }
  0x22   : > { %v310_v50 = vld [vmem:[%s10587_s29 + $0xc0] sm:$0xff]  ;;  %v311_v52 = vld [vmem:[%s10587_s29 + $0xc8] sm:$0xff]  ;;  %v344_v54 = vld [vmem:[%s10593_s8 + $0xd0] sm:$0xff] }
  0x23   : > { %9814 = vmatmul.mubr.msk.f32.gmra.mxu0 %vm359_vm1, %v295_v20  ;;  %v313_v55 = vld [vmem:[%s10587_s29 + $0xd8] sm:$0xff]  ;;  %v314_v57 = vld [vmem:[%s10587_s29 + $0xe0] sm:$0xff]  ;;  %v315_v58 = vld [vmem:[%s10587_s29 + $0xe8] sm:$0xff] }
  0x24   : > { %9864 = vmatmul.mubr.msk.f32.gmra.mxu1 %vm359_vm1, %v327_v19  ;;  %9816 = vmatprep.mubr.msk.f32.mxu0 %vm359_vm1, %v296_v22  ;;  %v345_v56 = vld [vmem:[%s10593_s8 + $0xd8] sm:$0xff]  ;;  %v316_v59 = vld [vmem:[%s10587_s29 + $0xf0] sm:$0xff]  ;;  %v346_v61 = vld [vmem:[%s10593_s8 + $0xe0] sm:$0xff] }
  0x25   : > { %9866 = vmatprep.mubr.msk.f32.mxu1 %vm359_vm1, %v328_v21  ;;  %v317_v60 = vld [vmem:[%s10587_s29 + $0xf8] sm:$0xff]  ;;  %v347_v62 = vld [vmem:[%s10593_s8 + $0xe8] sm:$0xff]  ;;  %v348_v63 = vld [vmem:[%s10593_s8 + $0xf0] sm:$0xff] }
  0x26   : > { %v349_v0 = vld [vmem:[%s10593_s8 + $0xf8] sm:$0xff]  ;;  %v10726_v1 = vld [vmem:[%s13494_s3] ss:$0 sm:$0xff] }
  0x27   : > { %9817 = vmatmul.mubr.msk.f32.gmra.mxu0 %vm359_vm1, %v297_v24 }
  0x28   : > { %9867 = vmatmul.mubr.msk.f32.gmra.mxu1 %vm359_vm1, %v329_v23  ;;  %9819 = vmatprep.mubr.msk.f32.mxu0 %vm359_vm1, %v298_v26 }
  0x29   : > { %9869 = vmatprep.mubr.msk.f32.mxu1 %vm359_vm1, %v330_v25 }
  0x2b   : > { %9820 = vmatmul.mubr.msk.f32.gmra.mxu0 %vm359_vm1, %v299_v28 }
  0x2c   : > { %9870 = vmatmul.mubr.msk.f32.gmra.mxu1 %vm359_vm1, %v331_v27  ;;  %9822 = vmatprep.mubr.msk.f32.mxu0 %vm359_vm1, %v300_v30 }
  0x2d   : > { %9872 = vmatprep.mubr.msk.f32.mxu1 %vm359_vm1, %v332_v29 }
  0x2f   : > { %9823 = vmatmul.mubr.msk.f32.gmra.mxu0 %vm359_vm1, %v301_v32 }
  0x30   : > { %9873 = vmatmul.mubr.msk.f32.gmra.mxu1 %vm359_vm1, %v333_v31  ;;  %9825 = vmatprep.mubr.msk.f32.mxu0 %vm359_vm1, %v302_v34 }
  0x31   : > { %9875 = vmatprep.mubr.msk.f32.mxu1 %vm359_vm1, %v334_v33 }
  0x33   : > { %9826 = vmatmul.mubr.msk.f32.gmra.mxu0 %vm359_vm1, %v303_v36 }
  0x34   : > { %9876 = vmatmul.mubr.msk.f32.gmra.mxu1 %vm359_vm1, %v335_v35  ;;  %9828 = vmatprep.mubr.msk.f32.mxu0 %vm359_vm1, %v304_v38 }
  0x35   : > { %9878 = vmatprep.mubr.msk.f32.mxu1 %vm359_vm1, %v336_v37 }
  0x37   : > { %9829 = vmatmul.mubr.msk.f32.gmra.mxu0 %vm359_vm1, %v305_v40 }
  0x38   : > { %9879 = vmatmul.mubr.msk.f32.gmra.mxu1 %vm359_vm1, %v337_v39  ;;  %9831 = vmatprep.mubr.msk.f32.mxu0 %vm359_vm1, %v306_v42 }
  0x39   : > { %9881 = vmatprep.mubr.msk.f32.mxu1 %vm359_vm1, %v338_v41 }
  0x3b   : > { %9832 = vmatmul.mubr.msk.f32.gmra.mxu0 %vm359_vm1, %v307_v44 }
  0x3c   : > { %9882 = vmatmul.mubr.msk.f32.gmra.mxu1 %vm359_vm1, %v339_v43  ;;  %9834 = vmatprep.mubr.msk.f32.mxu0 %vm359_vm1, %v308_v46 }
  0x3d   : > { %9884 = vmatprep.mubr.msk.f32.mxu1 %vm359_vm1, %v340_v45 }
  0x3f   : > { %9835 = vmatmul.mubr.msk.f32.gmra.mxu0 %vm359_vm1, %v309_v48 }
  0x40   : > { %9885 = vmatmul.mubr.msk.f32.gmra.mxu1 %vm359_vm1, %v341_v47  ;;  %9837 = vmatprep.mubr.msk.f32.mxu0 %vm359_vm1, %v310_v50 }
  0x41   : > { %9887 = vmatprep.mubr.msk.f32.mxu1 %vm359_vm1, %v342_v49 }
  0x43   : > { %9838 = vmatmul.mubr.msk.f32.gmra.mxu0 %vm359_vm1, %v311_v52 }
  0x44   : > { %9888 = vmatmul.mubr.msk.f32.gmra.mxu1 %vm359_vm1, %v343_v51  ;;  %9840 = vmatprep.mubr.msk.f32.mxu0 %vm359_vm1, %v312_v53 }
  0x45   : > { %9890 = vmatprep.mubr.msk.f32.mxu1 %vm359_vm1, %v344_v54 }
  0x47   : > { %9841 = vmatmul.mubr.msk.f32.gmra.mxu0 %vm359_vm1, %v313_v55 }
  0x48   : > { %9891 = vmatmul.mubr.msk.f32.gmra.mxu1 %vm359_vm1, %v345_v56  ;;  %9843 = vmatprep.mubr.msk.f32.mxu0 %vm359_vm1, %v314_v57 }
  0x49   : > { %9893 = vmatprep.mubr.msk.f32.mxu1 %vm359_vm1, %v346_v61 }
  0x4b   : > { %9844 = vmatmul.mubr.msk.f32.gmra.mxu0 %vm359_vm1, %v315_v58 }
  0x4c   : > { %9846 = vmatprep.mubr.msk.f32.mxu0 %vm359_vm1, %v316_v59  ;;  %9894 = vmatmul.mubr.msk.f32.gmra.mxu1 %vm359_vm1, %v347_v62 }
  0x4d   : > { %9896 = vmatprep.mubr.msk.f32.mxu1 %vm359_vm1, %v348_v63 }
  0x4f   : > { %9847 = vmatmul.mubr.msk.f32.gmra.mxu0 %vm359_vm1, %v317_v60 }
  0x50   : > { %9897 = vmatmul.mubr.msk.f32.gmra.mxu1 %vm359_vm1, %v349_v0 }
  0xd3   : > { %v9803_v2 = vpop.f32.mrf.mxu0 }
  0xd4   : > { %v9853_v3 = vpop.f32.mrf.mxu1  ;;  %v10729_v4 = vadd.f32 %v9803_v2, %v10726_v1 }
  0xd5   : > { %v10732_v5 = vadd.f32 %v9853_v3, %v10726_v1  ;;  %v526_v11 = vpop.f32.mrf.mxu0 }
  0xd6   : > { %v847_v6 = vpop.f32.mrf.mxu1  ;;  %7548 = vrot.lane.b32.xlu1 %v10729_v4, %s10531_s12  ;;  %v10749_v12 = vadd.f32 %v10726_v1, %v526_v11 }
  0xd7   : > { %v848_v7 = vadd.f32 %v10726_v1, %v847_v6  ;;  %1010 = vrot.lane.b32.xlu0 %v10732_v5, %s10530_s11  ;;  %v9806_v13 = vpop.f32.mrf.mxu0 }
  0xd8   : > { %v9856_v8 = vpop.f32.mrf.mxu1  ;;  %v10752_v14 = vadd.f32 %v9806_v13, %v10726_v1 }
  0xd9   : > { %9903 = vmatprep.mubr.msk.f32.mxu0 %vm1012_vm2, %v848_v7  ;;  %v10759_v15 = vadd.f32 %v9856_v8, %v10726_v1  ;;  %v536_v16 = vpop.f32.mrf.mxu0 }
  0xda   : > { %v857_v9 = vpop.f32.mrf.mxu1  ;;  %1008 = vrot.lane.b32.xlu1 %v848_v7, %s10530_s11  ;;  %v10772_v17 = vadd.f32 %v10726_v1, %v536_v16 }
  0xdb   : > { %2435 = vrot.lane.b32.xlu0 %v10729_v4, %s10530_s11  ;;  %v858_v10 = vadd.f32 %v10726_v1, %v857_v9  ;;  %v9809_v20 = vpop.f32.mrf.mxu0 }
  0xdc   : > { %v9859_v18 = vpop.f32.mrf.mxu1  ;;  %v10782_v21 = vadd.f32 %v9809_v20, %v10726_v1 }
  0xdd   : > { %9910 = vmatprep.mubr.msk.f32.mxu1 %vm1012_vm2, %v858_v10  ;;  %v10775_v19 = vadd.f32 %v9859_v18, %v10726_v1  ;;  %v546_v24 = vpop.f32.mrf.mxu0 }
  0xde   : > { %6154 = vrot.lane.b32.xlu1 %v848_v7, %s10531_s12  ;;  %v867_v22 = vpop.f32.mrf.mxu1  ;;  %v10800_v25 = vadd.f32 %v10726_v1, %v546_v24 }
  0xdf   : > { %6156 = vrot.lane.b32.xlu0 %v10732_v5, %s10531_s12  ;;  %v10793_v23 = vadd.f32 %v10726_v1, %v867_v22  ;;  %v9812_v28 = vpop.f32.mrf.mxu0 }
  0xe0   : > { %v9862_v26 = vpop.f32.mrf.mxu1  ;;  %v10810_v29 = vadd.f32 %v9812_v28, %v10726_v1 }
  0xe1   : > { %v10803_v27 = vadd.f32 %v9862_v26, %v10726_v1  ;;  %v556_v32 = vpop.f32.mrf.mxu0 }
  0xe2   : > { %7546 = vrot.lane.b32.xlu1 %v10749_v12, %s10531_s12  ;;  %v877_v30 = vpop.f32.mrf.mxu1  ;;  %v10828_v33 = vadd.f32 %v10726_v1, %v556_v32 }
  0xe3   : > { %2433 = vrot.lane.b32.xlu0 %v10749_v12, %s10530_s11  ;;  %v10821_v31 = vadd.f32 %v10726_v1, %v877_v30  ;;  %v9815_v36 = vpop.f32.mrf.mxu0 }
  0xe4   : > { %v9865_v34 = vpop.f32.mrf.mxu1  ;;  %v10838_v37 = vadd.f32 %v9815_v36, %v10726_v1 }
  0xe5   : > { %v10831_v35 = vadd.f32 %v9865_v34, %v10726_v1  ;;  %v566_v40 = vpop.f32.mrf.mxu0 }
  0xe6   : > { %2524 = vrot.lane.b32.xlu1 %v10752_v14, %s10530_s11  ;;  %v887_v38 = vpop.f32.mrf.mxu1  ;;  %v10856_v41 = vadd.f32 %v10726_v1, %v566_v40 }
  0xe7   : > { %1100 = vrot.lane.b32.xlu0 %v10759_v15, %s10530_s11  ;;  %v10849_v39 = vadd.f32 %v10726_v1, %v887_v38  ;;  %v9818_v44 = vpop.f32.mrf.mxu0 }
  0xe8   : > { %v9868_v42 = vpop.f32.mrf.mxu1  ;;  %v10866_v45 = vadd.f32 %v9818_v44, %v10726_v1 }
  0xe9   : > { %v10859_v43 = vadd.f32 %v9868_v42, %v10726_v1  ;;  %v576_v48 = vpop.f32.mrf.mxu0 }
  0xea   : > { %6243 = vrot.lane.b32.xlu1 %v10759_v15, %s10531_s12  ;;  %v897_v46 = vpop.f32.mrf.mxu1  ;;  %v10884_v49 = vadd.f32 %v10726_v1, %v576_v48 }
  0xeb   : > { %7635 = vrot.lane.b32.xlu0 %v10752_v14, %s10531_s12  ;;  %v10877_v47 = vadd.f32 %v10726_v1, %v897_v46  ;;  %v9821_v52 = vpop.f32.mrf.mxu0 }
  0xec   : > { %v9871_v50 = vpop.f32.mrf.mxu1  ;;  %v10894_v53 = vadd.f32 %v9821_v52, %v10726_v1 }
  0xed   : > { %v10887_v51 = vadd.f32 %v9871_v50, %v10726_v1  ;;  %v586_v56 = vpop.f32.mrf.mxu0 }
  0xee   : > { %1098 = vrot.lane.b32.xlu1 %v858_v10, %s10530_s11  ;;  %v907_v54 = vpop.f32.mrf.mxu1  ;;  %v10912_v57 = vadd.f32 %v10726_v1, %v586_v56 }
  0xef   : > { %6241 = vrot.lane.b32.xlu0 %v858_v10, %s10531_s12  ;;  %v10905_v55 = vadd.f32 %v10726_v1, %v907_v54  ;;  %v9824_v60 = vpop.f32.mrf.mxu0 }
  0xf0   : > { %v9874_v58 = vpop.f32.mrf.mxu1  ;;  %v10922_v61 = vadd.f32 %v9824_v60, %v10726_v1 }
  0xf1   : > { %v10915_v59 = vadd.f32 %v9874_v58, %v10726_v1  ;;  %v596_v7 = vpop.f32.mrf.mxu0 }
  0xf2   : > { %2522 = vrot.lane.b32.xlu1 %v10772_v17, %s10530_s11  ;;  %v917_v0 = vpop.f32.mrf.mxu1  ;;  %v10948_v8 = vadd.f32 %v10726_v1, %v596_v7 }
  0xf3   : > { %7633 = vrot.lane.b32.xlu0 %v10772_v17, %s10531_s12  ;;  %v10937_v2 = vadd.f32 %v10726_v1, %v917_v0  ;;  %v9827_v20 = vpop.f32.mrf.mxu0 }
  0xf4   : > { %v9877_v11 = vpop.f32.mrf.mxu1  ;;  %v10970_v22 = vadd.f32 %v9827_v20, %v10726_v1 }
  0xf5   : > { %v10957_v13 = vadd.f32 %v9877_v11, %v10726_v1  ;;  %v606_v32 = vpop.f32.mrf.mxu0 }
  0xf6   : > { %6330 = vrot.lane.b32.xlu1 %v10775_v19, %s10531_s12  ;;  %v927_v24 = vpop.f32.mrf.mxu1  ;;  %v10996_v34 = vadd.f32 %v10726_v1, %v606_v32 }
  0xf7   : > { %1189 = vrot.lane.b32.xlu0 %v10775_v19, %s10530_s11  ;;  %v10985_v26 = vadd.f32 %v10726_v1, %v927_v24  ;;  %v9830_v48 = vpop.f32.mrf.mxu0 }
  0xf8   : > { %v9880_v40 = vpop.f32.mrf.mxu1  ;;  %v11016_v50 = vadd.f32 %v9830_v48, %v10726_v1 }
  0xf9   : > { %v11002_v42 = vadd.f32 %v9880_v40, %v10726_v1  ;;  %v616_v60 = vpop.f32.mrf.mxu0 }
  0xfa   : > { %7722 = vrot.lane.b32.xlu1 %v10782_v21, %s10531_s12  ;;  %v937_v56 = vpop.f32.mrf.mxu1 }
  0xfb   : > { %2613 = vrot.lane.b32.xlu0 %v10782_v21, %s10530_s11  ;;  %v9833_v20 = vpop.f32.mrf.mxu0 }
  0xfc   : > { %v9883_v7 = vpop.f32.mrf.mxu1 }
  0xfd   : > { %v11050_v11 = vadd.f32 %v9883_v7, %v10726_v1 }
  0xfe   : > { %6328 = vrot.lane.b32.xlu1 %v10793_v23, %s10531_s12  ;;  %v947_v32 = vpop.f32.mrf.mxu1 }
  0xff   : > { %1187 = vrot.lane.b32.xlu0 %v10793_v23, %s10530_s11  ;;  %v11073_v40 = vadd.f32 %v10726_v1, %v947_v32 }
 0x102   : > { %7720 = vrot.lane.b32.xlu1 %v10800_v25, %s10531_s12 }
 0x103   : > { %2611 = vrot.lane.b32.xlu0 %v10800_v25, %s10530_s11 }
 0x106   : > { %1278 = vrot.lane.b32.xlu1 %v10803_v27, %s10530_s11 }
 0x107   : > { %6417 = vrot.lane.b32.xlu0 %v10803_v27, %s10531_s12 }
 0x10a   : > { %2702 = vrot.lane.b32.xlu1 %v10810_v29, %s10530_s11 }
 0x10b   : > { %7809 = vrot.lane.b32.xlu0 %v10810_v29, %s10531_s12 }
 0x10e   : > { %1276 = vrot.lane.b32.xlu1 %v10821_v31, %s10530_s11 }
 0x10f   : > { %6415 = vrot.lane.b32.xlu0 %v10821_v31, %s10531_s12 }
 0x112   : > { %2700 = vrot.lane.b32.xlu1 %v10828_v33, %s10530_s11 }
 0x113   : > { %7807 = vrot.lane.b32.xlu0 %v10828_v33, %s10531_s12 }
 0x116   : > { %6504 = vrot.lane.b32.xlu1 %v10831_v35, %s10531_s12 }
 0x117   : > { %1367 = vrot.lane.b32.xlu0 %v10831_v35, %s10530_s11 }
 0x11a   : > { %7896 = vrot.lane.b32.xlu1 %v10838_v37, %s10531_s12 }
 0x11b   : > { %2791 = vrot.lane.b32.xlu0 %v10838_v37, %s10530_s11 }
 0x11e   : > { %6502 = vrot.lane.b32.xlu1 %v10849_v39, %s10531_s12 }
 0x11f   : > { %1365 = vrot.lane.b32.xlu0 %v10849_v39, %s10530_s11 }
 0x122   : > { %7894 = vrot.lane.b32.xlu1 %v10856_v41, %s10531_s12 }
 0x123   : > { %2789 = vrot.lane.b32.xlu0 %v10856_v41, %s10530_s11 }
 0x126   : > { %1456 = vrot.lane.b32.xlu1 %v10859_v43, %s10530_s11 }
 0x127   : > { %6591 = vrot.lane.b32.xlu0 %v10859_v43, %s10531_s12 }
 0x12a   : > { %2880 = vrot.lane.b32.xlu1 %v10866_v45, %s10530_s11 }
 0x12b   : > { %7983 = vrot.lane.b32.xlu0 %v10866_v45, %s10531_s12 }
 0x12e   : > { %1454 = vrot.lane.b32.xlu1 %v10877_v47, %s10530_s11 }
 0x12f   : > { %6589 = vrot.lane.b32.xlu0 %v10877_v47, %s10531_s12 }
 0x132   : > { %2878 = vrot.lane.b32.xlu1 %v10884_v49, %s10530_s11 }
 0x133   : > { %7981 = vrot.lane.b32.xlu0 %v10884_v49, %s10531_s12 }
 0x136   : > { %6678 = vrot.lane.b32.xlu1 %v10887_v51, %s10531_s12 }
 0x137   : > { %1545 = vrot.lane.b32.xlu0 %v10887_v51, %s10530_s11 }
 0x13a   : > { %8070 = vrot.lane.b32.xlu1 %v10894_v53, %s10531_s12 }
 0x13b   : > { %2969 = vrot.lane.b32.xlu0 %v10894_v53, %s10530_s11 }
 0x13e   : > { %6676 = vrot.lane.b32.xlu1 %v10905_v55, %s10531_s12 }
 0x13f   : > { %1543 = vrot.lane.b32.xlu0 %v10905_v55, %s10530_s11 }
 0x142   : > { %8068 = vrot.lane.b32.xlu1 %v10912_v57, %s10531_s12 }
 0x143   : > { %2967 = vrot.lane.b32.xlu0 %v10912_v57, %s10530_s11 }
 0x146   : > { %1634 = vrot.lane.b32.xlu1 %v10915_v59, %s10530_s11 }
 0x147   : > { %6765 = vrot.lane.b32.xlu0 %v10915_v59, %s10531_s12 }
 0x148   : > { %v10928_v63 = vpop.permute.xlu1 %7548 }
 0x149   : > { %v1011_v62 = vpop.permute.xlu0 %1010  ;;  %13689 = vst [vmem:[#allocation3_spill] sm:$0xff] %v10928_v63 }
 0x14a   : > { %9899 = vmatprep.subr.msk.mxu0 %vm1012_vm2, %v1011_v62  ;;  %3058 = vrot.lane.b32.xlu1 %v10922_v61, %s10530_s11 }
 0x14b   : > { %9900 = vmatpush3.xpose.msk.msra.mxu0 %vm1012_vm2, %v1011_v62  ;;  %8157 = vrot.lane.b32.xlu0 %v10922_v61, %s10531_s12  ;;  %v11044_v62 = vadd.f32 %v10726_v1, %v616_v60 }
 0x14c   : > { %v1009_v3 = vpop.permute.xlu1 %1008 }
 0x14d   : > { %v10939_v6 = vpop.permute.xlu0 %2435  ;;  %9901 = vmatprep.subr.msk.mxu0 %vm1012_vm2, %v1009_v3 }
 0x14e   : > { %1632 = vrot.lane.b32.xlu1 %v10937_v2, %s10530_s11 }
 0x14f   : > { %9902 = vmatpush3.xpose.msk.msra.mxu0 %vm1012_vm2, %v1009_v3  ;;  %6763 = vrot.lane.b32.xlu0 %v10937_v2, %s10531_s12 }
 0x150   : > { %v10950_v9 = vpop.permute.xlu1 %6154 }
 0x151   : > { %13690 = vst [vmem:[#allocation4_spill] sm:$0xff] %v10950_v9  ;;  %v10952_v10 = vpop.permute.xlu0 %6156 }
 0x152   : > { %13691 = vst [vmem:[#allocation5_spill] sm:$0xff] %v10952_v10  ;;  %9904 = vmatmul.mubr.msk.f32.vlgmr.msra.gmra.mxu0 %vm1012_vm2, %v10732_v5  ;;  %3056 = vrot.lane.b32.xlu1 %v10948_v8, %s10530_s11 }
 0x153   : > { %9917 = vmatprep.mubr.msk.f32.mxu0 %vm1012_vm2, %v10793_v23  ;;  %8155 = vrot.lane.b32.xlu0 %v10948_v8, %s10531_s12 }
 0x154   : > { %v10965_v16 = vpop.permute.xlu1 %7546 }
 0x155   : > { %13692 = vst [vmem:[#allocation6_spill] sm:$0xff] %v10965_v16  ;;  %v10967_v18 = vpop.permute.xlu0 %2433 }
 0x156   : > { %6852 = vrot.lane.b32.xlu1 %v10957_v13, %s10531_s12 }
 0x157   : > { %1723 = vrot.lane.b32.xlu0 %v10957_v13, %s10530_s11 }
 0x158   : > { %v10976_v5 = vpop.permute.xlu1 %2524 }
 0x159   : > { %v1101_v23 = vpop.permute.xlu0 %1100 }
 0x15a   : > { %9906 = vmatprep.subr.msk.mxu1 %vm1012_vm2, %v1101_v23  ;;  %8244 = vrot.lane.b32.xlu1 %v10970_v22, %s10531_s12 }
 0x15b   : > { %9907 = vmatpush3.xpose.msk.msra.mxu1 %vm1012_vm2, %v1101_v23  ;;  %3147 = vrot.lane.b32.xlu0 %v10970_v22, %s10530_s11 }
 0x15c   : > { %v10987_v28 = vpop.permute.xlu1 %6243 }
 0x15d   : > { %13693 = vst [vmem:[#allocation7_spill] sm:$0xff] %v10987_v28  ;;  %v10989_v30 = vpop.permute.xlu0 %7635 }
 0x15e   : > { %13694 = vst [vmem:[#allocation8_spill] sm:$0xff] %v10989_v30  ;;  %6850 = vrot.lane.b32.xlu1 %v10985_v26, %s10531_s12 }
 0x15f   : > { %1721 = vrot.lane.b32.xlu0 %v10985_v26, %s10530_s11 }
 0x160   : > { %v1099_v36 = vpop.permute.xlu1 %1098 }
 0x161   : > { %v10998_v38 = vpop.permute.xlu0 %6241  ;;  %9908 = vmatprep.subr.msk.mxu1 %vm1012_vm2, %v1099_v36 }
 0x162   : > { %13695 = vst [vmem:[#allocation9_spill] sm:$0xff] %v10998_v38  ;;  %8242 = vrot.lane.b32.xlu1 %v10996_v34, %s10531_s12  ;;  %9909 = vmatpush3.xpose.msk.msra.mxu1 %vm1012_vm2, %v1099_v36  ;;  %v11070_v36 = vadd.f32 %v9833_v20, %v10726_v1 }
 0x163   : > { %3145 = vrot.lane.b32.xlu0 %v10996_v34, %s10530_s11 }
 0x164   : > { %v11009_v44 = vpop.permute.xlu1 %2522 }
 0x165   : > { %v11011_v46 = vpop.permute.xlu0 %7633  ;;  %9911 = vmatmul.mubr.msk.f32.vlgmr.msra.gmra.mxu1 %vm1012_vm2, %v10759_v15  ;;  %v11033_v15 = vadd.f32 %v10726_v1, %v937_v56  ;;  %v9886_v56 = vpop.f32.mrf.mxu1 }
 0x166   : > { %13696 = vst [vmem:[#allocation10_spill] sm:$0xff] %v11011_v46  ;;  %1812 = vrot.lane.b32.xlu1 %v11002_v42, %s10530_s11  ;;  %9924 = vmatprep.mubr.msk.f32.mxu1 %vm1012_vm2, %v10821_v31  ;;  %v11079_v60 = vadd.f32 %v9886_v56, %v10726_v1 }
 0x167   : > { %6939 = vrot.lane.b32.xlu0 %v11002_v42, %s10531_s12 }
 0x168   : > { %v11024_v52 = vpop.permute.xlu1 %6330 }
 0x169   : > { %13697 = vst [vmem:[#allocation11_spill] sm:$0xff] %v11024_v52  ;;  %v1190_v54 = vpop.permute.xlu0 %1189 }
 0x16a   : > { %9913 = vmatprep.subr.msk.mxu0 %vm1012_vm2, %v1190_v54  ;;  %3236 = vrot.lane.b32.xlu1 %v11016_v50, %s10530_s11 }
 0x16b   : > { %9914 = vmatpush3.xpose.msk.msra.mxu0 %vm1012_vm2, %v1190_v54  ;;  %8331 = vrot.lane.b32.xlu0 %v11016_v50, %s10531_s12 }
 0x16c   : > { %v11035_v31 = vpop.permute.xlu1 %7722 }
 0x16d   : > { %13698 = vst [vmem:[#allocation12_spill] sm:$0xff] %v11035_v31  ;;  %v11037_v58 = vpop.permute.xlu0 %2613 }
 0x16e   : > { %1810 = vrot.lane.b32.xlu1 %v11033_v15, %s10530_s11 }
 0x16f   : > { %6937 = vrot.lane.b32.xlu0 %v11033_v15, %s10531_s12 }
 0x170   : > { %v11046_v0 = vpop.permute.xlu1 %6328 }
 0x171   : > { %13699 = vst [vmem:[#allocation13_spill] sm:$0xff] %v11046_v0  ;;  %v1188_v3 = vpop.permute.xlu0 %1187 }
 0x172   : > { %9915 = vmatprep.subr.msk.mxu0 %vm1012_vm2, %v1188_v3  ;;  %3234 = vrot.lane.b32.xlu1 %v11044_v62, %s10530_s11 }
 0x173   : > { %9916 = vmatpush3.xpose.msk.msra.mxu0 %vm1012_vm2, %v1188_v3  ;;  %8329 = vrot.lane.b32.xlu0 %v11044_v62, %s10531_s12 }
 0x174   : > { %v11057_v23 = vpop.permute.xlu1 %7720 }
 0x175   : > { %13700 = vst [vmem:[#allocation14_spill] sm:$0xff] %v11057_v23  ;;  %v11059_v24 = vpop.permute.xlu0 %2611  ;;  %v957_v23 = vpop.f32.mrf.mxu1 }
 0x176   : > { %9918 = vmatmul.mubr.msk.f32.vlgmr.msra.gmra.mxu0 %vm1012_vm2, %v10775_v19  ;;  %7026 = vrot.lane.b32.xlu1 %v11050_v11, %s10531_s12  ;;  %v626_v19 = vpop.f32.mrf.mxu0 }
 0x177   : > { %9931 = vmatprep.mubr.msk.f32.mxu0 %vm1012_vm2, %v10849_v39  ;;  %1901 = vrot.lane.b32.xlu0 %v11050_v11, %s10530_s11 }
 0x178   : > { %v1279_v48 = vpop.permute.xlu1 %1278  ;;  %v9836_v7 = vpop.f32.mrf.mxu0 }
 0x179   : > { %v11075_v54 = vpop.permute.xlu0 %6417  ;;  %9920 = vmatprep.subr.msk.mxu1 %vm1012_vm2, %v1279_v48  ;;  %v11091_v20 = vadd.f32 %v9836_v7, %v10726_v1  ;;  %v11109_v7 = vadd.f32 %v10726_v1, %v957_v23 }
 0x17a   : > { %13701 = vst [vmem:[#allocation15_spill] sm:$0xff] %v11075_v54  ;;  %7024 = vrot.lane.b32.xlu1 %v11073_v40, %s10531_s12  ;;  %9921 = vmatpush3.xpose.msk.msra.mxu1 %vm1012_vm2, %v1279_v48  ;;  %v11100_v48 = vadd.f32 %v10726_v1, %v626_v19  ;;  %v636_v19 = vpop.f32.mrf.mxu0 }
 0x17b   : > { %3325 = vrot.lane.b32.xlu0 %v11070_v36, %s10530_s11  ;;  %13703 = vst [vmem:[#allocation17_spill] sm:$0xff] %v11091_v20  ;;  %v11124_v23 = vadd.f32 %v10726_v1, %v636_v19 }
 0x17c   : > { %v11086_v39 = vpop.permute.xlu1 %2702 }
 0x17d   : > { %v11088_v3 = vpop.permute.xlu0 %7809 }
 0x17e   : > { %13702 = vst [vmem:[#allocation16_spill] sm:$0xff] %v11088_v3  ;;  %1990 = vrot.lane.b32.xlu1 %v11079_v60, %s10530_s11 }
 0x17f   : > { %1899 = vrot.lane.b32.xlu0 %v11073_v40, %s10530_s11 }
 0x180   : > { %v1277_v32 = vpop.permute.xlu1 %1276 }
 0x181   : > { %v11097_v56 = vpop.permute.xlu0 %6415  ;;  %9922 = vmatprep.subr.msk.mxu1 %vm1012_vm2, %v1277_v32 }
 0x182   : > { %13704 = vst [vmem:[#allocation18_spill] sm:$0xff] %v11097_v56  ;;  %3414 = vrot.lane.b32.xlu1 %v11091_v20, %s10530_s11  ;;  %9923 = vmatpush3.xpose.msk.msra.mxu1 %vm1012_vm2, %v1277_v32 }
 0x183   : > { %3323 = vrot.lane.b32.xlu0 %v11100_v48, %s10530_s11 }
 0x184   : > { %v11111_v3 = vpop.permute.xlu1 %2700 }
 0x185   : > { %v11113_v31 = vpop.permute.xlu0 %7807  ;;  %9925 = vmatmul.mubr.msk.f32.vlgmr.msra.gmra.mxu1 %vm1012_vm2, %v10803_v27 }
 0x186   : > { %13705 = vst [vmem:[#allocation19_spill] sm:$0xff] %v11113_v31  ;;  %1988 = vrot.lane.b32.xlu1 %v11109_v7, %s10530_s11  ;;  %9938 = vmatprep.mubr.msk.f32.mxu1 %vm1012_vm2, %v10877_v47  ;;  %v9889_v31 = vpop.f32.mrf.mxu1  ;;  %v9839_v47 = vpop.f32.mrf.mxu0 }
 0x187   : > { %7113 = vrot.lane.b32.xlu0 %v11079_v60, %s10531_s12  ;;  %v11130_v27 = vadd.f32 %v9889_v31, %v10726_v1  ;;  %v11146_v31 = vadd.f32 %v9839_v47, %v10726_v1 }
 0x188   : > { %v11126_v32 = vpop.permute.xlu1 %6504  ;;  %v967_v30 = vpop.f32.mrf.mxu1 }
 0x189   : > { %13706 = vst [vmem:[#allocation20_spill] sm:$0xff] %v11126_v32  ;;  %v1368_v46 = vpop.permute.xlu0 %1367  ;;  %13708 = vst [vmem:[#allocation22_spill] sm:$0xff] %v11146_v31 }
 0x18a   : > { %9927 = vmatprep.subr.msk.mxu0 %vm1012_vm2, %v1368_v46  ;;  %3412 = vrot.lane.b32.xlu1 %v11124_v23, %s10530_s11  ;;  %v9892_v56 = vpop.f32.mrf.mxu1 }
 0x18b   : > { %9928 = vmatpush3.xpose.msk.msra.mxu0 %vm1012_vm2, %v1368_v46  ;;  %7111 = vrot.lane.b32.xlu0 %v11109_v7, %s10531_s12  ;;  %v11149_v46 = vadd.f32 %v10726_v1, %v967_v30  ;;  %v11155_v0 = vadd.f32 %v9892_v56, %v10726_v1 }
 0x18c   : > { %v11137_v19 = vpop.permute.xlu1 %7896  ;;  %v977_v38 = vpop.f32.mrf.mxu1 }
 0x18d   : > { %13707 = vst [vmem:[#allocation21_spill] sm:$0xff] %v11137_v19  ;;  %v11139_v16 = vpop.permute.xlu0 %2791  ;;  %v646_v19 = vpop.f32.mrf.mxu0 }
 0x18e   : > { %7200 = vrot.lane.b32.xlu1 %v11130_v27, %s10531_s12  ;;  %v9895_v52 = vpop.f32.mrf.mxu1 }
 0x18f   : > { %2079 = vrot.lane.b32.xlu0 %v11130_v27, %s10530_s11 }
 0x190   : > { %v11151_v63 = vpop.permute.xlu1 %6502 }
 0x191   : > { %13709 = vst [vmem:[#allocation23_spill] sm:$0xff] %v11151_v63  ;;  %v1366_v32 = vpop.permute.xlu0 %1365  ;;  %v9842_v63 = vpop.f32.mrf.mxu0 }
 0x192   : > { %9929 = vmatprep.subr.msk.mxu0 %vm1012_vm2, %v1366_v32  ;;  %7198 = vrot.lane.b32.xlu1 %v11149_v46, %s10531_s12  ;;  %v11169_v54 = vadd.f32 %v9842_v63, %v10726_v1 }
 0x193   : > { %9930 = vmatpush3.xpose.msk.msra.mxu0 %vm1012_vm2, %v1366_v32  ;;  %3503 = vrot.lane.b32.xlu0 %v11146_v31, %s10530_s11 }
 0x194   : > { %v11162_v30 = vpop.permute.xlu1 %7894  ;;  %13711 = vst [vmem:[#allocation25_spill] sm:$0xff] %v11169_v54 }
 0x195   : > { %13710 = vst [vmem:[#allocation24_spill] sm:$0xff] %v11162_v30  ;;  %v11164_v47 = vpop.permute.xlu0 %2789  ;;  %v11180_v30 = vadd.f32 %v10726_v1, %v646_v19  ;;  %v656_v19 = vpop.f32.mrf.mxu0 }
 0x196   : > { %9932 = vmatmul.mubr.msk.f32.vlgmr.msra.gmra.mxu0 %vm1012_vm2, %v10831_v35  ;;  %2168 = vrot.lane.b32.xlu1 %v11155_v0, %s10530_s11  ;;  %v11189_v35 = vadd.f32 %v10726_v1, %v977_v38  ;;  %v11206_v38 = vadd.f32 %v9895_v52, %v10726_v1 }
 0x197   : > { %9945 = vmatprep.mubr.msk.f32.mxu0 %vm1012_vm2, %v10905_v55  ;;  %2077 = vrot.lane.b32.xlu0 %v11149_v46, %s10530_s11  ;;  %13713 = vst [vmem:[#allocation27_spill] sm:$0xff] %v11180_v30 }
 0x198   : > { %v1457_v56 = vpop.permute.xlu1 %1456 }
 0x199   : > { %v11177_v32 = vpop.permute.xlu0 %6591  ;;  %9934 = vmatprep.subr.msk.mxu1 %vm1012_vm2, %v1457_v56 }
 0x19a   : > { %13712 = vst [vmem:[#allocation26_spill] sm:$0xff] %v11177_v32  ;;  %3592 = vrot.lane.b32.xlu1 %v11169_v54, %s10530_s11  ;;  %9935 = vmatpush3.xpose.msk.msra.mxu1 %vm1012_vm2, %v1457_v56  ;;  %v11200_v32 = vadd.f32 %v10726_v1, %v656_v19 }
 0x19b   : > { %3501 = vrot.lane.b32.xlu0 %v11180_v30, %s10530_s11 }
 0x19c   : > { %v11191_v55 = vpop.permute.xlu1 %2880  ;;  %13715 = vst [vmem:[#allocation29_spill] sm:$0xff] %v11200_v32 }
 0x19d   : > { %v11193_v63 = vpop.permute.xlu0 %7983 }
 0x19e   : > { %13714 = vst [vmem:[#allocation28_spill] sm:$0xff] %v11193_v63  ;;  %2166 = vrot.lane.b32.xlu1 %v11189_v35, %s10530_s11  ;;  %v9845_v63 = vpop.f32.mrf.mxu0 }
 0x19f   : > { %7287 = vrot.lane.b32.xlu0 %v11155_v0, %s10531_s12  ;;  %v11226_v52 = vadd.f32 %v9845_v63, %v10726_v1 }
 0x1a0   : > { %v1455_v56 = vpop.permute.xlu1 %1454 }
 0x1a1   : > { %v11202_v28 = vpop.permute.xlu0 %6589  ;;  %9936 = vmatprep.subr.msk.mxu1 %vm1012_vm2, %v1455_v56  ;;  %13718 = vst [vmem:[#allocation32_spill] sm:$0xff] %v11226_v52 }
 0x1a2   : > { %13716 = vst [vmem:[#allocation30_spill] sm:$0xff] %v11202_v28  ;;  %3590 = vrot.lane.b32.xlu1 %v11200_v32, %s10530_s11  ;;  %9937 = vmatpush3.xpose.msk.msra.mxu1 %vm1012_vm2, %v1455_v56  ;;  %v987_v28 = vpop.f32.mrf.mxu1 }
 0x1a3   : > { %7285 = vrot.lane.b32.xlu0 %v11189_v35, %s10531_s12  ;;  %v11229_v56 = vadd.f32 %v10726_v1, %v987_v28 }
 0x1a4   : > { %v11213_v19 = vpop.permute.xlu1 %2878  ;;  %v9898_v10 = vpop.f32.mrf.mxu1 }
 0x1a5   : > { %v11215_v9 = vpop.permute.xlu0 %7981  ;;  %9939 = vmatmul.mubr.msk.f32.vlgmr.msra.gmra.mxu1 %vm1012_vm2, %v10859_v43  ;;  %v666_v43 = vpop.f32.mrf.mxu0  ;;  %v11235_v32 = vadd.f32 %v9898_v10, %v10726_v1 }
 0x1a6   : > { %13717 = vst [vmem:[#allocation31_spill] sm:$0xff] %v11215_v9  ;;  %7374 = vrot.lane.b32.xlu1 %v11206_v38, %s10531_s12  ;;  %9952 = vmatprep.mubr.msk.f32.mxu1 %vm1012_vm2, %v10937_v2  ;;  %v11256_v31 = vadd.f32 %v10726_v1, %v666_v43 }
 0x1a7   : > { %2257 = vrot.lane.b32.xlu0 %v11206_v38, %s10530_s11  ;;  %v9848_v63 = vpop.f32.mrf.mxu0 }
 0x1a8   : > { %v11231_v9 = vpop.permute.xlu1 %6678  ;;  %13723 = vst [vmem:[#allocation37_spill] sm:$0xff] %v11256_v31 }
 0x1a9   : > { %13719 = vst [vmem:[#allocation33_spill] sm:$0xff] %v11231_v9  ;;  %v1546_v54 = vpop.permute.xlu0 %1545  ;;  %v11247_v9 = vadd.f32 %v9848_v63, %v10726_v1 }
 0x1aa   : > { %9941 = vmatprep.subr.msk.mxu0 %vm1012_vm2, %v1546_v54  ;;  %7372 = vrot.lane.b32.xlu1 %v11229_v56, %s10531_s12 }
 0x1ab   : > { %9942 = vmatpush3.xpose.msk.msra.mxu0 %vm1012_vm2, %v1546_v54  ;;  %3681 = vrot.lane.b32.xlu0 %v11226_v52, %s10530_s11  ;;  %13721 = vst [vmem:[#allocation35_spill] sm:$0xff] %v11247_v9  ;;  %v997_v52 = vpop.f32.mrf.mxu1 }
 0x1ac   : > { %v11242_v2 = vpop.permute.xlu1 %8070  ;;  %v11265_v63 = vadd.f32 %v10726_v1, %v997_v52  ;;  %v676_v52 = vpop.f32.mrf.mxu0 }
 0x1ad   : > { %13720 = vst [vmem:[#allocation34_spill] sm:$0xff] %v11242_v2  ;;  %v11244_v28 = vpop.permute.xlu0 %2969 }
 0x1ae   : > { %2346 = vrot.lane.b32.xlu1 %v11235_v32, %s10530_s11 }
 0x1af   : > { %2255 = vrot.lane.b32.xlu0 %v11229_v56, %s10530_s11 }
 0x1b0   : > { %v11253_v10 = vpop.permute.xlu1 %6676 }
 0x1b1   : > { %13722 = vst [vmem:[#allocation36_spill] sm:$0xff] %v11253_v10  ;;  %v1544_v54 = vpop.permute.xlu0 %1543 }
 0x1b2   : > { %9943 = vmatprep.subr.msk.mxu0 %vm1012_vm2, %v1544_v54  ;;  %3770 = vrot.lane.b32.xlu1 %v11247_v9, %s10530_s11 }
 0x1b3   : > { %9944 = vmatpush3.xpose.msk.msra.mxu0 %vm1012_vm2, %v1544_v54  ;;  %3679 = vrot.lane.b32.xlu0 %v11256_v31, %s10530_s11 }
 0x1b4   : > { %v11267_v2 = vpop.permute.xlu1 %8068 }
 0x1b5   : > { %13724 = vst [vmem:[#allocation38_spill] sm:$0xff] %v11267_v2  ;;  %v11269_v10 = vpop.permute.xlu0 %2967 }
 0x1b6   : > { %9946 = vmatmul.mubr.msk.f32.vlgmr.msra.gmra.mxu0 %vm1012_vm2, %v10887_v51  ;;  %2344 = vrot.lane.b32.xlu1 %v11265_v63, %s10530_s11  ;;  %v11288_v51 = vadd.f32 %v10726_v1, %v676_v52 }
 0x1b7   : > { %9959 = vmatprep.mubr.msk.f32.mxu0 %vm1012_vm2, %v10985_v26  ;;  %7461 = vrot.lane.b32.xlu0 %v11235_v32, %s10531_s12 }
 0x1b8   : > { %v1635_v43 = vpop.permute.xlu1 %1634  ;;  %13726 = vst [vmem:[#allocation40_spill] sm:$0xff] %v11288_v51 }
 0x1b9   : > { %v11279_v54 = vpop.permute.xlu0 %6765  ;;  %9948 = vmatprep.subr.msk.mxu1 %vm1012_vm2, %v1635_v43 }
 0x1ba   : > { %13725 = vst [vmem:[#allocation39_spill] sm:$0xff] %v11279_v54  ;;  %8418 = vrot.lane.b32.xlu1 %v11070_v36, %s10531_s12  ;;  %9949 = vmatpush3.xpose.msk.msra.mxu1 %vm1012_vm2, %v1635_v43 }
 0x1bb   : > { %7459 = vrot.lane.b32.xlu0 %v11265_v63, %s10531_s12 }
 0x1bc   : > { %v11290_v26 = vpop.permute.xlu1 %3058 }
 0x1bd   : > { %v11292_v2 = vpop.permute.xlu0 %8157 }
 0x1be   : > { %13727 = vst [vmem:[#allocation41_spill] sm:$0xff] %v11292_v2  ;;  %3768 = vrot.lane.b32.xlu1 %v11288_v51, %s10530_s11 }
 0x1bf   : > { %8505 = vrot.lane.b32.xlu0 %v11091_v20, %s10531_s12 }
 0x1c0   : > { %v1633_v54 = vpop.permute.xlu1 %1632 }
 0x1c1   : > { %v11298_v9 = vpop.permute.xlu0 %6763  ;;  %9950 = vmatprep.subr.msk.mxu1 %vm1012_vm2, %v1633_v54 }
 0x1c2   : > { %13728 = vst [vmem:[#allocation42_spill] sm:$0xff] %v11298_v9  ;;  %8416 = vrot.lane.b32.xlu1 %v11100_v48, %s10531_s12  ;;  %9951 = vmatpush3.xpose.msk.msra.mxu1 %vm1012_vm2, %v1633_v54 }
 0x1c3   : > { %8503 = vrot.lane.b32.xlu0 %v11124_v23, %s10531_s12 }
 0x1c4   : > { %v11306_v1 = vpop.permute.xlu1 %3056 }
 0x1c5   : > { %v11308_v43 = vpop.permute.xlu0 %8155  ;;  %9953 = vmatmul.mubr.msk.f32.vlgmr.msra.gmra.mxu1 %vm1012_vm2, %v10915_v59 }
 0x1c6   : > { %13729 = vst [vmem:[#allocation43_spill] sm:$0xff] %v11308_v43  ;;  %9966 = vmatprep.mubr.msk.f32.mxu1 %vm1012_vm2, %v11033_v15 }
 0x1c8   : > { %v11314_v52 = vpop.permute.xlu1 %6852 }
 0x1c9   : > { %13730 = vst [vmem:[#allocation44_spill] sm:$0xff] %v11314_v52  ;;  %v1724_v2 = vpop.permute.xlu0 %1723 }
 0x1ca   : > { %9955 = vmatprep.subr.msk.mxu0 %vm1012_vm2, %v1724_v2 }
 0x1cb   : > { %9956 = vmatpush3.xpose.msk.msra.mxu0 %vm1012_vm2, %v1724_v2 }
 0x1cc   : > { %v11318_v54 = vpop.permute.xlu1 %8244 }
 0x1cd   : > { %13731 = vst [vmem:[#allocation45_spill] sm:$0xff] %v11318_v54  ;;  %v11320_v9 = vpop.permute.xlu0 %3147 }
 0x1d0   : > { %v11322_v51 = vpop.permute.xlu1 %6850 }
 0x1d1   : > { %13732 = vst [vmem:[#allocation46_spill] sm:$0xff] %v11322_v51  ;;  %v1722_v43 = vpop.permute.xlu0 %1721 }
 0x1d2   : > { %9957 = vmatprep.subr.msk.mxu0 %vm1012_vm2, %v1722_v43 }
 0x1d3   : > { %9958 = vmatpush3.xpose.msk.msra.mxu0 %vm1012_vm2, %v1722_v43 }
 0x1d4   : > { %v11326_v59 = vpop.permute.xlu1 %8242 }
 0x1d5   : > { %13733 = vst [vmem:[#allocation47_spill] sm:$0xff] %v11326_v59  ;;  %v11328_v15 = vpop.permute.xlu0 %3145 }
 0x1d6   : > { %9960 = vmatmul.mubr.msk.f32.vlgmr.msra.gmra.mxu0 %vm1012_vm2, %v10957_v13 }
 0x1d7   : > { %9973 = vmatprep.mubr.msk.f32.mxu0 %vm1012_vm2, %v11073_v40 }
 0x1d8   : > { %v1813_v2 = vpop.permute.xlu1 %1812 }
 0x1d9   : > { %v11334_v54 = vpop.permute.xlu0 %6939  ;;  %9962 = vmatprep.subr.msk.mxu1 %vm1012_vm2, %v1813_v2 }
 0x1da   : > { %13734 = vst [vmem:[#allocation48_spill] sm:$0xff] %v11334_v54  ;;  %9963 = vmatpush3.xpose.msk.msra.mxu1 %vm1012_vm2, %v1813_v2 }
 0x1dc   : > { %v11338_v51 = vpop.permute.xlu1 %3236 }
 0x1dd   : > { %v11340_v43 = vpop.permute.xlu0 %8331 }
 0x1de   : > { %13735 = vst [vmem:[#allocation49_spill] sm:$0xff] %v11340_v43 }
 0x1e0   : > { %v1811_v59 = vpop.permute.xlu1 %1810 }
 0x1e1   : > { %v11342_v52 = vpop.permute.xlu0 %6937  ;;  %9964 = vmatprep.subr.msk.mxu1 %vm1012_vm2, %v1811_v59 }
 0x1e2   : > { %13736 = vst [vmem:[#allocation50_spill] sm:$0xff] %v11342_v52  ;;  %9965 = vmatpush3.xpose.msk.msra.mxu1 %vm1012_vm2, %v1811_v59 }
 0x1e4   : > { %v11346_v13 = vpop.permute.xlu1 %3234 }
 0x1e5   : > { %v11348_v40 = vpop.permute.xlu0 %8329  ;;  %9967 = vmatmul.mubr.msk.f32.vlgmr.msra.gmra.mxu1 %vm1012_vm2, %v11002_v42 }
 0x1e6   : > { %13737 = vst [vmem:[#allocation51_spill] sm:$0xff] %v11348_v40  ;;  %9980 = vmatprep.mubr.msk.f32.mxu1 %vm1012_vm2, %v11109_v7 }
 0x1e8   : > { %v11354_v2 = vpop.permute.xlu1 %7026 }
 0x1e9   : > { %13738 = vst [vmem:[#allocation52_spill] sm:$0xff] %v11354_v2  ;;  %v1902_v43 = vpop.permute.xlu0 %1901 }
 0x1ea   : > { %9969 = vmatprep.subr.msk.mxu0 %vm1012_vm2, %v1902_v43 }
 0x1eb   : > { %9970 = vmatpush3.xpose.msk.msra.mxu0 %vm1012_vm2, %v1902_v43 }
 0x1ec   : > { %v11358_v52 = vpop.permute.xlu1 %7024 }
 0x1ed   : > { %13739 = vst [vmem:[#allocation53_spill] sm:$0xff] %v11358_v52  ;;  %v11360_v59 = vpop.permute.xlu0 %3325  ;;  %v3855_v52 = vlaneseq }
 0x1ef   : > { %v11394_v2 = vshrl.u32 %v3855_v52, 7 }
 0x1f0   : > { %v1991_v54 = vpop.permute.xlu1 %1990 }
 0x1f1   : > { %v1900_v31 = vpop.permute.xlu0 %1899  ;;  %9976 = vmatprep.subr.msk.mxu1 %vm1012_vm2, %v1991_v54  ;;  %13744 = vst [vmem:[#allocation58_spill] sm:$0xff] %v11394_v2 }
 0x1f2   : > { %9971 = vmatprep.subr.msk.mxu0 %vm1012_vm2, %v1900_v31  ;;  %9977 = vmatpush3.xpose.msk.msra.mxu1 %vm1012_vm2, %v1991_v54 }
 0x1f3   : > { %9972 = vmatpush3.xpose.msk.msra.mxu0 %vm1012_vm2, %v1900_v31 }
 0x1f4   : > { %v11366_v42 = vpop.permute.xlu1 %3414 }
 0x1f5   : > { %v11368_v7 = vpop.permute.xlu0 %3323 }
 0x1f6   : > { %9974 = vmatmul.mubr.msk.f32.vlgmr.msra.gmra.mxu0 %vm1012_vm2, %v11050_v11 }
 0x1f7   : > { %9987 = vmatprep.mubr.msk.f32.mxu0 %vm1012_vm2, %v11149_v46 }
 0x1f8   : > { %v1989_v43 = vpop.permute.xlu1 %1988 }
 0x1f9   : > { %v11374_v40 = vpop.permute.xlu0 %7113  ;;  %9978 = vmatprep.subr.msk.mxu1 %vm1012_vm2, %v1989_v43 }
 0x1fa   : > { %13740 = vst [vmem:[#allocation54_spill] sm:$0xff] %v11374_v40  ;;  %9979 = vmatpush3.xpose.msk.msra.mxu1 %vm1012_vm2, %v1989_v43 }
 0x1fc   : > { %v11378_v54 = vpop.permute.xlu1 %3412 }
 0x1fd   : > { %v11380_v31 = vpop.permute.xlu0 %7111  ;;  %9981 = vmatmul.mubr.msk.f32.vlgmr.msra.gmra.mxu1 %vm1012_vm2, %v11079_v60  ;;  %v3857_v60 = vadd.s32 8, %v11394_v2 }
 0x1fe   : > { %13741 = vst [vmem:[#allocation55_spill] sm:$0xff] %v11380_v31  ;;  %9994 = vmatprep.mubr.msk.f32.mxu1 %vm1012_vm2, %v11189_v35  ;;  %v11401_v35 = vand.u32 127, %v3855_v52 }
 0x200   : > { %v11386_v11 = vpop.permute.xlu1 %7200  ;;  %13745 = vst [vmem:[#allocation59_spill] sm:$0xff] %v11401_v35  ;;  %vm11412_vm3 = vcmp.eq.s32.totalorder %v3857_v60, %v11401_v35  ;;  %vm11421_vm5 = vcmp.eq.s32.totalorder %v11394_v2, %v11401_v35 }
 0x201   : > { %13742 = vst [vmem:[#allocation56_spill] sm:$0xff] %v11386_v11  ;;  %v2080_v46 = vpop.permute.xlu0 %2079 }
 0x202   : > { %9983 = vmatprep.subr.msk.mxu0 %vm1012_vm2, %v2080_v46 }
 0x203   : > { %9984 = vmatpush3.xpose.msk.msra.mxu0 %vm1012_vm2, %v2080_v46 }
 0x204   : > { %v11390_v40 = vpop.permute.xlu1 %7198 }
 0x205   : > { %13743 = vst [vmem:[#allocation57_spill] sm:$0xff] %v11390_v40  ;;  %v11392_v43 = vpop.permute.xlu0 %3503 }
 0x208   : > { %v2169_v31 = vpop.permute.xlu1 %2168 }
 0x209   : > { %v2078_v20 = vpop.permute.xlu0 %2077  ;;  %9990 = vmatprep.subr.msk.mxu1 %vm1012_vm2, %v2169_v31 }
 0x20a   : > { %9985 = vmatprep.subr.msk.mxu0 %vm1012_vm2, %v2078_v20  ;;  %9991 = vmatpush3.xpose.msk.msra.mxu1 %vm1012_vm2, %v2169_v31 }
 0x20b   : > { %9986 = vmatpush3.xpose.msk.msra.mxu0 %vm1012_vm2, %v2078_v20 }
 0x20c   : > { %v11403_v46 = vpop.permute.xlu1 %3592 }
 0x20d   : > { %13746 = vst [vmem:[#allocation60_spill] sm:$0xff] %v11403_v46  ;;  %v11405_v40 = vpop.permute.xlu0 %3501 }
 0x20e   : > { %13747 = vst [vmem:[#allocation61_spill] sm:$0xff] %v11405_v40  ;;  %9988 = vmatmul.mubr.msk.f32.vlgmr.msra.gmra.mxu0 %vm1012_vm2, %v11130_v27 }
 0x20f   : > { %10001 = vmatprep.mubr.msk.f32.mxu0 %vm1012_vm2, %v11229_v56 }
 0x210   : > { %v2167_v20 = vpop.permute.xlu1 %2166 }
 0x211   : > { %v11416_v31 = vpop.permute.xlu0 %7287  ;;  %9992 = vmatprep.subr.msk.mxu1 %vm1012_vm2, %v2167_v20 }
 0x212   : > { %13750 = vst [vmem:[#allocation62_spill] sm:$0xff] %v11416_v31  ;;  %v9905_v52 = vpop.f32.mrf.mxu0  ;;  %9993 = vmatpush3.xpose.msk.msra.mxu1 %vm1012_vm2, %v2167_v20 }
 0x213   : > { %v11427_v27 = vsel %vm11412_vm3, -1e+30, %v9905_v52 }
 0x214   : > { %13753 = vst [vmem:[#allocation63_spill] sm:$0xff] %v11427_v27  ;;  %v3902_v56 = vsel %vm3898_vm4, %v11427_v27, -inf  ;;  %v1087_v60 = vpop.f32.mrf.mxu0  ;;  %v11436_v40 = vpop.permute.xlu1 %3590 }
 0x215   : > { %v11434_v31 = vsel %vm11421_vm5, -1e+30, %v1087_v60  ;;  %3903 = vmax.xlane.f32.xlu1 %v3902_v56  ;;  %v11440_v35 = vpop.permute.xlu0 %7285  ;;  %9995 = vmatmul.mubr.msk.f32.vlgmr.msra.gmra.mxu1 %vm1012_vm2, %v11155_v0 }
 0x216   : > { %v3899_v2 = vsel %vm3898_vm4, %v11434_v31, -inf  ;;  %13754 = vst [vmem:[#allocation64_spill] sm:$0xff] %v11440_v35  ;;  %10008 = vmatprep.mubr.msk.f32.mxu1 %vm1012_vm2, %v11265_v63 }
 0x217   : > { %3900 = vmax.xlane.f32.xlu0 %v3899_v2 }
 0x218   : > { %v11446_v20 = vpop.permute.xlu1 %7374 }
 0x219   : > { %13755 = vst [vmem:[#allocation65_spill] sm:$0xff] %v11446_v20  ;;  %v2258_v52 = vpop.permute.xlu0 %2257 }
 0x21a   : > { %9997 = vmatprep.subr.msk.mxu0 %vm1012_vm2, %v2258_v52 }
 0x21b   : > { %9998 = vmatpush3.xpose.msk.msra.mxu0 %vm1012_vm2, %v2258_v52 }
 0x21c   : > { %v11450_v56 = vpop.permute.xlu1 %7372 }
 0x21d   : > { %13756 = vst [vmem:[#allocation66_spill] sm:$0xff] %v11450_v56  ;;  %v11452_v60 = vpop.permute.xlu0 %3681 }
 0x220   : > { %v2347_v27 = vpop.permute.xlu1 %2346 }
 0x221   : > { %v2256_v35 = vpop.permute.xlu0 %2255  ;;  %10004 = vmatprep.subr.msk.mxu1 %vm1012_vm2, %v2347_v27 }
 0x222   : > { %9999 = vmatprep.subr.msk.mxu0 %vm1012_vm2, %v2256_v35  ;;  %10005 = vmatpush3.xpose.msk.msra.mxu1 %vm1012_vm2, %v2347_v27 }
 0x223   : > { %10000 = vmatpush3.xpose.msk.msra.mxu0 %vm1012_vm2, %v2256_v35 }
 0x224   : > { %10011 = vmatprep.subr.msk.mxu0 %vm1012_vm2, %v10939_v6  ;;  %v11460_v0 = vpop.permute.xlu1 %3770 }
 0x225   : > { %v9912_v63 = vpop.f32.mrf.mxu1 }
 0x226   : > { %v11464_v2 = vsel %vm11412_vm3, -1e+30, %v9912_v63  ;;  %10002 = vmatmul.mubr.msk.f32.vlgmr.msra.gmra.mxu0 %vm1012_vm2, %v11206_v38 }
 0x227   : > { %13757 = vst [vmem:[#allocation67_spill] sm:$0xff] %v11464_v2  ;;  %v3908_v52 = vsel %vm3898_vm4, %v11464_v2, -inf  ;;  %10012 = vmatpush3.xpose.msk.msra.mxu0 %vm1012_vm2, %v10939_v6  ;;  %10015 = vmatprep.mubr.msk.f32.mxu0 %vm1012_vm2, %v10749_v12  ;;  %v1176_v35 = vpop.f32.mrf.mxu1 }
 0x228   : > { %v11476_v27 = vsel %vm11421_vm5, -1e+30, %v1176_v35  ;;  %10013 = vmatprep.subr.msk.mxu0 %vm1012_vm2, %v10967_v18  ;;  %v2345_v63 = vpop.permute.xlu1 %2344  ;;  %3909 = vmax.xlane.f32.xlu0 %v3908_v52 }
 0x229   : > { %13758 = vst [vmem:[#allocation68_spill] sm:$0xff] %v11476_v27  ;;  %10006 = vmatprep.subr.msk.mxu1 %vm1012_vm2, %v2345_v63  ;;  %v3905_v6 = vsel %vm3898_vm4, %v11476_v27, -inf }
 0x22a   : > { %10007 = vmatpush3.xpose.msk.msra.mxu1 %vm1012_vm2, %v2345_v63 }
 0x22b   : > { %10014 = vmatpush3.xpose.msk.msra.mxu0 %vm1012_vm2, %v10967_v18  ;;  %10018 = vmatprep.subr.msk.mxu1 %vm1012_vm2, %v10976_v5  ;;  %v13765_v18 = vld [vmem:[#allocation61_spill] sm:$0xff] }
 0x22c   : > { %10025 = vmatprep.subr.msk.mxu0 %vm1012_vm2, %v11037_v58  ;;  %3906 = vmax.xlane.f32.xlu0 %v3905_v6 }
 0x22d   : > { %10009 = vmatmul.mubr.msk.f32.vlgmr.msra.gmra.mxu1 %vm1012_vm2, %v11235_v32  ;;  %v13776_v32 = vld [vmem:[#allocation40_spill] sm:$0xff] }
 0x22e   : > { %10016 = vmatmul.mubr.msk.f32.vlgmr.msra.gmra.mxu0 %vm1012_vm2, %v10729_v4  ;;  %10019 = vmatpush3.xpose.msk.msra.mxu1 %vm1012_vm2, %v10976_v5  ;;  %v13767_v5 = vld [vmem:[#allocation17_spill] sm:$0xff] }
 0x22f   : > { %10022 = vmatprep.mubr.msk.f32.mxu1 %vm1012_vm2, %v10772_v17  ;;  %10026 = vmatpush3.xpose.msk.msra.mxu0 %vm1012_vm2, %v11037_v58  ;;  %v13770_v58 = vld [vmem:[#allocation37_spill] sm:$0xff] }
 0x230   : > { %10029 = vmatprep.mubr.msk.f32.mxu0 %vm1012_vm2, %v10800_v25  ;;  %10020 = vmatprep.subr.msk.mxu1 %vm1012_vm2, %v11009_v44 }
 0x231   : > { %10027 = vmatprep.subr.msk.mxu0 %vm1012_vm2, %v11059_v24 }
 0x232   : > { %10021 = vmatpush3.xpose.msk.msra.mxu1 %vm1012_vm2, %v11009_v44  ;;  %v13769_v44 = vld [vmem:[#allocation29_spill] sm:$0xff] }
 0x233   : > { %10028 = vmatpush3.xpose.msk.msra.mxu0 %vm1012_vm2, %v11059_v24  ;;  %10032 = vmatprep.subr.msk.mxu1 %vm1012_vm2, %v11086_v39  ;;  %v13772_v24 = vld [vmem:[#allocation5_spill] sm:$0xff] }
 0x234   : > { %10039 = vmatprep.subr.msk.mxu0 %vm1012_vm2, %v11139_v16 }
 0x235   : > { %10023 = vmatmul.mubr.msk.f32.vlgmr.msra.gmra.mxu1 %vm1012_vm2, %v10752_v14 }
 0x236   : > { %v9919_v4 = vpop.f32.mrf.mxu0  ;;  %10030 = vmatmul.mubr.msk.f32.vlgmr.msra.gmra.mxu0 %vm1012_vm2, %v10782_v21  ;;  %10033 = vmatpush3.xpose.msk.msra.mxu1 %vm1012_vm2, %v11086_v39  ;;  %v13773_v39 = vld [vmem:[#allocation25_spill] sm:$0xff] }
 0x237   : > { %v11518_v12 = vsel %vm11412_vm3, -1e+30, %v9919_v4  ;;  %10036 = vmatprep.mubr.msk.f32.mxu1 %vm1012_vm2, %v10828_v33  ;;  %10040 = vmatpush3.xpose.msk.msra.mxu0 %vm1012_vm2, %v11139_v16 }
 0x238   : > { %13759 = vst [vmem:[#allocation69_spill] sm:$0xff] %v11518_v12  ;;  %v3914_v17 = vsel %vm3898_vm4, %v11518_v12, -inf  ;;  %v1265_v14 = vpop.f32.mrf.mxu0  ;;  %10043 = vmatprep.mubr.msk.f32.mxu0 %vm1012_vm2, %v10856_v41  ;;  %10034 = vmatprep.subr.msk.mxu1 %vm1012_vm2, %v11111_v3 }
 0x239   : > { %v11534_v25 = vsel %vm11421_vm5, -1e+30, %v1265_v14  ;;  %10041 = vmatprep.subr.msk.mxu0 %vm1012_vm2, %v11164_v47  ;;  %3915 = vmax.xlane.f32.xlu0 %v3914_v17 }
 0x23a   : > { %13760 = vst [vmem:[#allocation70_spill] sm:$0xff] %v11534_v25  ;;  %v3911_v21 = vsel %vm3898_vm4, %v11534_v25, -inf  ;;  %10035 = vmatpush3.xpose.msk.msra.mxu1 %vm1012_vm2, %v11111_v3 }
 0x23b   : > { %3912 = vmax.xlane.f32.xlu1 %v3911_v21  ;;  %10042 = vmatpush3.xpose.msk.msra.mxu0 %vm1012_vm2, %v11164_v47 }
 0x23c   : > { %10046 = vmatprep.subr.msk.mxu1 %vm1012_vm2, %v11191_v55  ;;  %10053 = vmatprep.subr.msk.mxu0 %vm1012_vm2, %v11244_v28 }
 0x23d   : > { %10037 = vmatmul.mubr.msk.f32.vlgmr.msra.gmra.mxu1 %vm1012_vm2, %v10810_v29 }
 0x23e   : > { %10044 = vmatmul.mubr.msk.f32.vlgmr.msra.gmra.mxu0 %vm1012_vm2, %v10838_v37  ;;  %10047 = vmatpush3.xpose.msk.msra.mxu1 %vm1012_vm2, %v11191_v55 }
 0x23f   : > { %10050 = vmatprep.mubr.msk.f32.mxu1 %vm1012_vm2, %v10884_v49  ;;  %10054 = vmatpush3.xpose.msk.msra.mxu0 %vm1012_vm2, %v11244_v28 }
 0x240   : > { %10057 = vmatprep.mubr.msk.f32.mxu0 %vm1012_vm2, %v10912_v57  ;;  %10048 = vmatprep.subr.msk.mxu1 %vm1012_vm2, %v11213_v19 }
 0x241   : > { %10055 = vmatprep.subr.msk.mxu0 %vm1012_vm2, %v11269_v10 }
 0x242   : > { %10049 = vmatpush3.xpose.msk.msra.mxu1 %vm1012_vm2, %v11213_v19  ;;  %v13778_v19 = vld [vmem:[#allocation4_spill] sm:$0xff] }
 0x243   : > { %10056 = vmatpush3.xpose.msk.msra.mxu0 %vm1012_vm2, %v11269_v10  ;;  %10060 = vmatprep.subr.msk.mxu1 %vm1012_vm2, %v11290_v26  ;;  %v13779_v10 = vld [vmem:[#allocation11_spill] sm:$0xff] }
 0x244   : > { %10067 = vmatprep.subr.msk.mxu0 %vm1012_vm2, %v11320_v9 }
 0x245   : > { %v9926_v29 = vpop.f32.mrf.mxu1  ;;  %10051 = vmatmul.mubr.msk.f32.vlgmr.msra.gmra.mxu1 %vm1012_vm2, %v10866_v45 }
 0x246   : > { %v11578_v33 = vsel %vm11412_vm3, -1e+30, %v9926_v29  ;;  %10058 = vmatmul.mubr.msk.f32.vlgmr.msra.gmra.mxu0 %vm1012_vm2, %v10894_v53  ;;  %10061 = vmatpush3.xpose.msk.msra.mxu1 %vm1012_vm2, %v11290_v26  ;;  %v13781_v26 = vld [vmem:[#allocation35_spill] sm:$0xff] }
 0x247   : > { %13761 = vst [vmem:[#allocation71_spill] sm:$0xff] %v11578_v33  ;;  %v3920_v37 = vsel %vm3898_vm4, %v11578_v33, -inf  ;;  %10064 = vmatprep.mubr.msk.f32.mxu1 %vm1012_vm2, %v10948_v8  ;;  %10068 = vmatpush3.xpose.msk.msra.mxu0 %vm1012_vm2, %v11320_v9  ;;  %v1354_v41 = vpop.f32.mrf.mxu1 }
 0x248   : > { %10071 = vmatprep.mubr.msk.f32.mxu0 %vm1012_vm2, %v10996_v34  ;;  %v11594_v45 = vsel %vm11421_vm5, -1e+30, %v1354_v41  ;;  %10062 = vmatprep.subr.msk.mxu1 %vm1012_vm2, %v11306_v1  ;;  %v13768_v34 = vld [vmem:[#allocation22_spill] sm:$0xff] }
 0x249   : > { %13762 = vst [vmem:[#allocation72_spill] sm:$0xff] %v11594_v45  ;;  %v3917_v49 = vsel %vm3898_vm4, %v11594_v45, -inf  ;;  %10069 = vmatprep.subr.msk.mxu0 %vm1012_vm2, %v11328_v15  ;;  %3921 = vmax.xlane.f32.xlu0 %v3920_v37 }
 0x24a   : > { %10063 = vmatpush3.xpose.msk.msra.mxu1 %vm1012_vm2, %v11306_v1  ;;  %3918 = vmax.xlane.f32.xlu1 %v3917_v49  ;;  %v13782_v1 = vld [vmem:[#allocation9_spill] sm:$0xff] }
 0x24b   : > { %10070 = vmatpush3.xpose.msk.msra.mxu0 %vm1012_vm2, %v11328_v15  ;;  %10074 = vmatprep.subr.msk.mxu1 %vm1012_vm2, %v11338_v51  ;;  %v13783_v15 = vld [vmem:[#allocation15_spill] sm:$0xff] }
 0x24c   : > { %10081 = vmatprep.subr.msk.mxu0 %vm1012_vm2, %v11360_v59 }
 0x24d   : > { %10065 = vmatmul.mubr.msk.f32.vlgmr.msra.gmra.mxu1 %vm1012_vm2, %v10922_v61 }
 0x24e   : > { %10072 = vmatmul.mubr.msk.f32.vlgmr.msra.gmra.mxu0 %vm1012_vm2, %v10970_v22  ;;  %10075 = vmatpush3.xpose.msk.msra.mxu1 %vm1012_vm2, %v11338_v51  ;;  %v13766_v22 = vld [vmem:[#allocation60_spill] sm:$0xff]  ;;  %v13780_v51 = vld [vmem:[#allocation7_spill] sm:$0xff] }
 0x24f   : > { %10078 = vmatprep.mubr.msk.f32.mxu1 %vm1012_vm2, %v11044_v62  ;;  %10082 = vmatpush3.xpose.msk.msra.mxu0 %vm1012_vm2, %v11360_v59  ;;  %v11684_v62 = vpop.permute.xlu1 %8418 }
 0x250   : > { %10085 = vmatprep.mubr.msk.f32.mxu0 %vm1012_vm2, %v11100_v48  ;;  %10076 = vmatprep.subr.msk.mxu1 %vm1012_vm2, %v11346_v13  ;;  %13771 = vst [vmem:[#allocation61_spill] sm:$0xff] %v11684_v62  ;;  %v13775_v48 = vld [vmem:[#allocation32_spill] sm:$0xff] }
 0x251   : > { %10083 = vmatprep.subr.msk.mxu0 %vm1012_vm2, %v11368_v7 }
 0x252   : > { %10077 = vmatpush3.xpose.msk.msra.mxu1 %vm1012_vm2, %v11346_v13 }
 0x253   : > { %10084 = vmatpush3.xpose.msk.msra.mxu0 %vm1012_vm2, %v11368_v7  ;;  %10088 = vmatprep.subr.msk.mxu1 %vm1012_vm2, %v11366_v42 }
 0x254   : > { %10095 = vmatprep.subr.msk.mxu0 %vm1012_vm2, %v11392_v43 }
 0x255   : > { %10079 = vmatmul.mubr.msk.f32.vlgmr.msra.gmra.mxu1 %vm1012_vm2, %v11016_v50  ;;  %v3680_v50 = vpop.permute.xlu0 %3679 }
 0x256   : > { %v9933_v53 = vpop.f32.mrf.mxu0  ;;  %10086 = vmatmul.mubr.msk.f32.vlgmr.msra.gmra.mxu0 %vm1012_vm2, %v11070_v36  ;;  %10089 = vmatpush3.xpose.msk.msra.mxu1 %vm1012_vm2, %v11366_v42 }
 0x257   : > { %v11638_v57 = vsel %vm11412_vm3, -1e+30, %v9933_v53  ;;  %10092 = vmatprep.mubr.msk.f32.mxu1 %vm1012_vm2, %v11124_v23  ;;  %10096 = vmatpush3.xpose.msk.msra.mxu0 %vm1012_vm2, %v11392_v43  ;;  %v3769_v23 = vpop.permute.xlu1 %3768 }
 0x258   : > { %13763 = vst [vmem:[#allocation73_spill] sm:$0xff] %v11638_v57  ;;  %v3926_v61 = vsel %vm3898_vm4, %v11638_v57, -inf  ;;  %v1443_v8 = vpop.f32.mrf.mxu0  ;;  %10099 = vmatprep.mubr.msk.f32.mxu0 %vm1012_vm2, %v11180_v30  ;;  %10090 = vmatprep.subr.msk.mxu1 %vm1012_vm2, %v11378_v54 }
 0x259   : > { %v11654_v9 = vsel %vm11421_vm5, -1e+30, %v1443_v8  ;;  %10097 = vmatprep.subr.msk.mxu0 %vm1012_vm2, %v13765_v18  ;;  %3927 = vmax.xlane.f32.xlu0 %v3926_v61 }
 0x25a   : > { %13764 = vst [vmem:[#allocation74_spill] sm:$0xff] %v11654_v9  ;;  %v3923_v16 = vsel %vm3898_vm4, %v11654_v9, -inf  ;;  %10091 = vmatpush3.xpose.msk.msra.mxu1 %vm1012_vm2, %v11378_v54 }
 0x25b   : > { %3924 = vmax.xlane.f32.xlu1 %v3923_v16  ;;  %10098 = vmatpush3.xpose.msk.msra.mxu0 %vm1012_vm2, %v13765_v18 }
 0x25c   : > { %10102 = vmatprep.subr.msk.mxu1 %vm1012_vm2, %v13766_v22  ;;  %10109 = vmatprep.subr.msk.mxu0 %vm1012_vm2, %v11452_v60 }
 0x25d   : > { %10093 = vmatmul.mubr.msk.f32.vlgmr.msra.gmra.mxu1 %vm1012_vm2, %v13767_v5 }
 0x25e   : > { %10100 = vmatmul.mubr.msk.f32.vlgmr.msra.gmra.mxu0 %vm1012_vm2, %v13768_v34  ;;  %10103 = vmatpush3.xpose.msk.msra.mxu1 %vm1012_vm2, %v13766_v22 }
 0x25f   : > { %10106 = vmatprep.mubr.msk.f32.mxu1 %vm1012_vm2, %v13769_v44  ;;  %10110 = vmatpush3.xpose.msk.msra.mxu0 %vm1012_vm2, %v11452_v60 }
 0x260   : > { %10113 = vmatprep.mubr.msk.f32.mxu0 %vm1012_vm2, %v13770_v58  ;;  %10104 = vmatprep.subr.msk.mxu1 %vm1012_vm2, %v11436_v40 }
 0x261   : > { %10111 = vmatprep.subr.msk.mxu0 %vm1012_vm2, %v3680_v50 }
 0x262   : > { %10105 = vmatpush3.xpose.msk.msra.mxu1 %vm1012_vm2, %v11436_v40 }
 0x263   : > { %10112 = vmatpush3.xpose.msk.msra.mxu0 %vm1012_vm2, %v3680_v50  ;;  %10116 = vmatprep.subr.msk.mxu1 %vm1012_vm2, %v11460_v0 }
 0x264   : > { %10123 = vmatprep.subr.mxu0 %v13772_v24 }
 0x265   : > { %v9940_v36 = vpop.f32.mrf.mxu1  ;;  %10107 = vmatmul.mubr.msk.f32.vlgmr.msra.gmra.mxu1 %vm1012_vm2, %v13773_v39 }
 0x266   : > { %v11697_v3 = vsel %vm11412_vm3, -1e+30, %v9940_v36  ;;  %10114 = vmatmul.mubr.msk.f32.vlgmr.msra.gmra.mxu0 %vm1012_vm2, %v13775_v48  ;;  %10117 = vmatpush3.xpose.msk.msra.mxu1 %vm1012_vm2, %v11460_v0 }
 0x267   : > { %13774 = vst [vmem:[#allocation60_spill] sm:$0xff] %v11697_v3  ;;  %v3932_v47 = vsel %vm3898_vm4, %v11697_v3, -inf  ;;  %10120 = vmatprep.mubr.msk.f32.mxu1 %vm1012_vm2, %v13776_v32  ;;  %10124 = vmatpush3.msra.mxu0 %v13772_v24  ;;  %v1532_v55 = vpop.f32.mrf.mxu1 }
 0x268   : > { %v11710_v38 = vsel %vm11421_vm5, -1e+30, %v1532_v55  ;;  %10118 = vmatprep.subr.msk.mxu1 %vm1012_vm2, %v3769_v23  ;;  %10125 = vmatprep.subr.mxu0 %v13778_v19 }
 0x269   : > { %13777 = vst [vmem:[#allocation17_spill] sm:$0xff] %v11710_v38  ;;  %v3929_v28 = vsel %vm3898_vm4, %v11710_v38, -inf  ;;  %3933 = vmax.xlane.f32.xlu0 %v3932_v47  ;;  %10126 = vmatpush3.msra.mxu0 %v13778_v19  ;;  %v13818_v38 = vld [vmem:[#allocation58_spill] sm:$0xff] }
 0x26a   : > { %10137 = vmatprep.subr.mxu0 %v13779_v10  ;;  %10119 = vmatpush3.xpose.msk.msra.mxu1 %vm1012_vm2, %v3769_v23 }
 0x26b   : > { %3930 = vmax.xlane.f32.xlu1 %v3929_v28  ;;  %10130 = vmatprep.subr.mxu1 %v13780_v51 }
 0x26d   : > { %10121 = vmatmul.mubr.msk.f32.vlgmr.msra.gmra.mxu1 %vm1012_vm2, %v13781_v26 }
 0x26e   : > { %10131 = vmatpush3.msra.mxu1 %v13780_v51 }
 0x26f   : > { %10132 = vmatprep.subr.mxu1 %v13782_v1 }
 0x270   : > { %10133 = vmatpush3.msra.mxu1 %v13782_v1 }
 0x271   : > { %10144 = vmatprep.subr.mxu1 %v13783_v15 }
 0x276   : > { %v9947_v13 = vpop.f32.mrf.mxu0 }
 0x277   : > { %v11728_v40 = vsel %vm11412_vm3, -1e+30, %v9947_v13 }
 0x278   : > { %13784 = vst [vmem:[#allocation5_spill] sm:$0xff] %v11728_v40  ;;  %v3938_v59 = vsel %vm3898_vm4, %v11728_v40, -inf  ;;  %v1621_v42 = vpop.f32.mrf.mxu0 }
 0x279   : > { %v11734_v7 = vsel %vm11421_vm5, -1e+30, %v1621_v42  ;;  %3939 = vmax.xlane.f32.xlu0 %v3938_v59 }
 0x27a   : > { %13785 = vst [vmem:[#allocation4_spill] sm:$0xff] %v11734_v7  ;;  %v3935_v54 = vsel %vm3898_vm4, %v11734_v7, -inf }
 0x27b   : > { %3936 = vmax.xlane.f32.xlu1 %v3935_v54 }
 0x285   : > { %v9954_v43 = vpop.f32.mrf.mxu1 }
 0x286   : > { %v11740_v60 = vsel %vm11412_vm3, -1e+30, %v9954_v43 }
 0x287   : > { %13786 = vst [vmem:[#allocation7_spill] sm:$0xff] %v11740_v60  ;;  %v3944_v0 = vsel %vm3898_vm4, %v11740_v60, -inf  ;;  %v1710_v52 = vpop.f32.mrf.mxu1 }
 0x288   : > { %v11746_v35 = vsel %vm11421_vm5, -1e+30, %v1710_v52  ;;  %3945 = vmax.xlane.f32.xlu0 %v3944_v0 }
 0x289   : > { %13787 = vst [vmem:[#allocation9_spill] sm:$0xff] %v11746_v35  ;;  %v3941_v63 = vsel %vm3898_vm4, %v11746_v35, -inf }
 0x28a   : > { %3942 = vmax.xlane.f32.xlu1 %v3941_v63 }
 0x296   : > { %v9961_v6 = vpop.f32.mrf.mxu0 }
 0x297   : > { %v11752_v4 = vsel %vm11412_vm3, -1e+30, %v9961_v6 }
 0x298   : > { %13788 = vst [vmem:[#allocation75_spill] sm:$0xff] %v11752_v4  ;;  %v3950_v17 = vsel %vm3898_vm4, %v11752_v4, -inf  ;;  %v1799_v14 = vpop.f32.mrf.mxu0 }
 0x299   : > { %v11758_v21 = vsel %vm11421_vm5, -1e+30, %v1799_v14  ;;  %3951 = vmax.xlane.f32.xlu0 %v3950_v17 }
 0x29a   : > { %13789 = vst [vmem:[#allocation76_spill] sm:$0xff] %v11758_v21  ;;  %v3947_v29 = vsel %vm3898_vm4, %v11758_v21, -inf }
 0x29b   : > { %3948 = vmax.xlane.f32.xlu1 %v3947_v29 }
 0x2a5   : > { %v9968_v37 = vpop.f32.mrf.mxu1 }
 0x2a6   : > { %v11764_v41 = vsel %vm11412_vm3, -1e+30, %v9968_v37 }
 0x2a7   : > { %13790 = vst [vmem:[#allocation77_spill] sm:$0xff] %v11764_v41  ;;  %v3956_v49 = vsel %vm3898_vm4, %v11764_v41, -inf  ;;  %v1888_v53 = vpop.f32.mrf.mxu1 }
 0x2a8   : > { %v11770_v61 = vsel %vm11421_vm5, -1e+30, %v1888_v53  ;;  %3957 = vmax.xlane.f32.xlu0 %v3956_v49 }
 0x2a9   : > { %13791 = vst [vmem:[#allocation78_spill] sm:$0xff] %v11770_v61  ;;  %v3953_v8 = vsel %vm3898_vm4, %v11770_v61, -inf }
 0x2aa   : > { %3954 = vmax.xlane.f32.xlu1 %v3953_v8 }
 0x2b6   : > { %v9975_v16 = vpop.f32.mrf.mxu0 }
 0x2b7   : > { %v11776_v18 = vsel %vm11412_vm3, -1e+30, %v9975_v16 }
 0x2b8   : > { %13792 = vst [vmem:[#allocation79_spill] sm:$0xff] %v11776_v18  ;;  %v3962_v22 = vsel %vm3898_vm4, %v11776_v18, -inf  ;;  %v1977_v5 = vpop.f32.mrf.mxu0 }
 0x2b9   : > { %v11782_v50 = vsel %vm11421_vm5, -1e+30, %v1977_v5  ;;  %3963 = vmax.xlane.f32.xlu0 %v3962_v22 }
 0x2ba   : > { %13793 = vst [vmem:[#allocation80_spill] sm:$0xff] %v11782_v50  ;;  %v3959_v24 = vsel %vm3898_vm4, %v11782_v50, -inf }
 0x2bb   : > { %3960 = vmax.xlane.f32.xlu1 %v3959_v24 }
 0x2bd   : > { %v9982_v36 = vpop.f32.mrf.mxu1 }
 0x2be   : > { %v11788_v23 = vsel %vm11412_vm3, -1e+30, %v9982_v36 }
 0x2bf   : > { %13794 = vst [vmem:[#allocation81_spill] sm:$0xff] %v11788_v23  ;;  %v3968_v47 = vsel %vm3898_vm4, %v11788_v23, -inf  ;;  %v2066_v55 = vpop.f32.mrf.mxu1 }
 0x2c0   : > { %v11794_v19 = vsel %vm11421_vm5, -1e+30, %v2066_v55  ;;  %3969 = vmax.xlane.f32.xlu0 %v3968_v47 }
 0x2c1   : > { %13795 = vst [vmem:[#allocation82_spill] sm:$0xff] %v11794_v19  ;;  %v3965_v28 = vsel %vm3898_vm4, %v11794_v19, -inf }
 0x2c2   : > { %3966 = vmax.xlane.f32.xlu1 %v3965_v28 }
 0x2ce   : > { %v9989_v51 = vpop.f32.mrf.mxu0 }
 0x2cf   : > { %v11800_v1 = vsel %vm11412_vm3, -1e+30, %v9989_v51 }
 0x2d0   : > { %13796 = vst [vmem:[#allocation83_spill] sm:$0xff] %v11800_v1  ;;  %v3974_v13 = vsel %vm3898_vm4, %v11800_v1, -inf  ;;  %v2155_v59 = vpop.f32.mrf.mxu0 }
 0x2d1   : > { %v11806_v42 = vsel %vm11421_vm5, -1e+30, %v2155_v59  ;;  %3975 = vmax.xlane.f32.xlu0 %v3974_v13 }
 0x2d2   : > { %13797 = vst [vmem:[#allocation84_spill] sm:$0xff] %v11806_v42  ;;  %v3971_v54 = vsel %vm3898_vm4, %v11806_v42, -inf }
 0x2d3   : > { %3972 = vmax.xlane.f32.xlu1 %v3971_v54 }
 0x2d5   : > { %v9996_v43 = vpop.f32.mrf.mxu1 }
 0x2d6   : > { %v11812_v0 = vsel %vm11412_vm3, -1e+30, %v9996_v43 }
 0x2d7   : > { %13798 = vst [vmem:[#allocation85_spill] sm:$0xff] %v11812_v0  ;;  %v3980_v52 = vsel %vm3898_vm4, %v11812_v0, -inf  ;;  %v2244_v63 = vpop.f32.mrf.mxu1 }
 0x2d8   : > { %v11818_v6 = vsel %vm11421_vm5, -1e+30, %v2244_v63  ;;  %3981 = vmax.xlane.f32.xlu0 %v3980_v52 }
 0x2d9   : > { %13799 = vst [vmem:[#allocation86_spill] sm:$0xff] %v11818_v6  ;;  %v3977_v17 = vsel %vm3898_vm4, %v11818_v6, -inf }
 0x2da   : > { %3978 = vmax.xlane.f32.xlu1 %v3977_v17 }
 0x2e6   : > { %v10003_v14 = vpop.f32.mrf.mxu0 }
 0x2e7   : > { %v11824_v29 = vsel %vm11412_vm3, -1e+30, %v10003_v14 }
 0x2e8   : > { %13800 = vst [vmem:[#allocation87_spill] sm:$0xff] %v11824_v29  ;;  %v3986_v37 = vsel %vm3898_vm4, %v11824_v29, -inf  ;;  %v2333_v49 = vpop.f32.mrf.mxu0 }
 0x2e9   : > { %v11830_v53 = vsel %vm11421_vm5, -1e+30, %v2333_v49  ;;  %3987 = vmax.xlane.f32.xlu0 %v3986_v37 }
 0x2ea   : > { %13801 = vst [vmem:[#allocation88_spill] sm:$0xff] %v11830_v53  ;;  %v3983_v8 = vsel %vm3898_vm4, %v11830_v53, -inf }
 0x2eb   : > { %3984 = vmax.xlane.f32.xlu1 %v3983_v8 }
 0x2ed   : > { %v10010_v16 = vpop.f32.mrf.mxu1 }
 0x2ee   : > { %v11836_v22 = vsel %vm11412_vm3, -1e+30, %v10010_v16  ;;  %v11840_v36 = vpop.f32.mrf.mxu0 }
 0x2ef   : > { %13802 = vst [vmem:[#allocation89_spill] sm:$0xff] %v11836_v22  ;;  %v3992_v5 = vsel %vm3898_vm4, %v11836_v22, -inf  ;;  %v2422_v24 = vpop.f32.mrf.mxu1  ;;  %v4231_v11 = vsel %vm3898_vm4, %v11840_v36, -inf }
 0x2f0   : > { %v11844_v47 = vsel %vm11421_vm5, -1e+30, %v2422_v24  ;;  %3993 = vmax.xlane.f32.xlu0 %v3992_v5  ;;  %v11850_v28 = vpop.f32.mrf.mxu0 }
 0x2f1   : > { %13803 = vst [vmem:[#allocation90_spill] sm:$0xff] %v11844_v47  ;;  %v3989_v55 = vsel %vm3898_vm4, %v11844_v47, -inf  ;;  %v4228_v51 = vsel %vm3898_vm4, %v11850_v28, -inf }
 0x2f2   : > { %3990 = vmax.xlane.f32.xlu1 %v3989_v55 }
 0x2f4   : > { %4232 = vmax.xlane.f32.xlu0 %v4231_v11 }
 0x2f5   : > { %v11854_v13 = vpop.f32.mrf.mxu1 }
 0x2f6   : > { %v4237_v46 = vsel %vm3898_vm4, %v11854_v13, -inf  ;;  %v11862_v43 = vpop.f32.mrf.mxu0 }
 0x2f7   : > { %v11858_v59 = vpop.f32.mrf.mxu1  ;;  %v4243_v63 = vsel %vm3898_vm4, %v11862_v43, -inf }
 0x2f8   : > { %4229 = vmax.xlane.f32.xlu0 %v4228_v51  ;;  %v4234_v54 = vsel %vm3898_vm4, %v11858_v59, -inf  ;;  %v11868_v17 = vpop.f32.mrf.mxu0 }
 0x2f9   : > { %v4240_v8 = vsel %vm3898_vm4, %v11868_v17, -inf }
 0x2fc   : > { %4238 = vmax.xlane.f32.xlu0 %v4237_v46 }
 0x2fd   : > { %v11864_v52 = vpop.f32.mrf.mxu1 }
 0x2fe   : > { %v11872_v37 = vpop.f32.mrf.mxu0  ;;  %v4249_v24 = vsel %vm3898_vm4, %v11864_v52, -inf }
 0x2ff   : > { %v11870_v14 = vpop.f32.mrf.mxu1  ;;  %v4255_v62 = vsel %vm3898_vm4, %v11872_v37, -inf }
 0x300   : > { %4235 = vmax.xlane.f32.xlu0 %v4234_v54  ;;  %v11878_v16 = vpop.f32.mrf.mxu0  ;;  %v4246_v46 = vsel %vm3898_vm4, %v11870_v14, -inf }
 0x301   : > { %v4252_v56 = vsel %vm3898_vm4, %v11878_v16, -inf }
 0x304   : > { %4244 = vmax.xlane.f32.xlu0 %v4243_v63 }
 0x305   : > { %v11874_v49 = vpop.f32.mrf.mxu1 }
 0x306   : > { %v11884_v55 = vpop.f32.mrf.mxu0 }
 0x307   : > { %v11880_v5 = vpop.f32.mrf.mxu1 }
 0x308   : > { %4241 = vmax.xlane.f32.xlu0 %v4240_v8  ;;  %v11892_v54 = vpop.f32.mrf.mxu0  ;;  %v4258_v32 = vsel %vm3898_vm4, %v11880_v5, -inf }
 0x30c   : > { %4250 = vmax.xlane.f32.xlu0 %v4249_v24 }
 0x30d   : > { %v11886_v11 = vpop.f32.mrf.mxu1 }
 0x30e   : > { %v11896_v8 = vpop.f32.mrf.mxu0 }
 0x30f   : > { %v11888_v51 = vpop.f32.mrf.mxu1 }
 0x310   : > { %4247 = vmax.xlane.f32.xlu0 %v4246_v46  ;;  %v4270_v63 = vsel %vm3898_vm4, %v11888_v51, -inf  ;;  %v11900_v24 = vpop.f32.mrf.mxu0  ;;  %v4261_v46 = vsel %vm3898_vm4, %v11874_v49, -inf }
 0x311   : > { %4271 = vmax.xlane.f32.xlu1 %v4270_v63  ;;  %13804 = vst [vmem:[#allocation91_spill] sm:$0xff] %v11900_v24 }
 0x314   : > { %4256 = vmax.xlane.f32.xlu0 %v4255_v62 }
 0x315   : > { %v11906_v15 = vpop.f32.mrf.mxu1 }
 0x316   : > { %v11904_v20 = vpop.f32.mrf.mxu0 }
 0x317   : > { %v11912_v10 = vpop.f32.mrf.mxu1 }
 0x318   : > { %4253 = vmax.xlane.f32.xlu0 %v4252_v56  ;;  %v11910_v63 = vpop.f32.mrf.mxu0  ;;  %13806 = vst [vmem:[#allocation93_spill] sm:$0xff] %v11912_v10  ;;  %v11922_v56 = vpop.permute.xlu0 %7461  ;;  %v4282_v29 = vsel %vm3898_vm4, %v11912_v10, -inf }
 0x319   : > { %13805 = vst [vmem:[#allocation92_spill] sm:$0xff] %v11910_v63  ;;  %13808 = vst [vmem:[#allocation95_spill] sm:$0xff] %v11922_v56 }
 0x31c   : > { %4262 = vmax.xlane.f32.xlu0 %v4261_v46  ;;  %v4267_v46 = vsel %vm3898_vm4, %v11884_v55, -inf  ;;  %v11934_v39 = vpop.permute.xlu0 %7459 }
 0x31d   : > { %v11916_v62 = vpop.f32.mrf.mxu1  ;;  %13810 = vst [vmem:[#allocation97_spill] sm:$0xff] %v11934_v39 }
 0x31e   : > { %v11914_v58 = vpop.f32.mrf.mxu0 }
 0x31f   : > { %v11926_v30 = vpop.f32.mrf.mxu1 }
 0x320   : > { %v11920_v48 = vpop.f32.mrf.mxu0  ;;  %4259 = vmax.xlane.f32.xlu0 %v4258_v32  ;;  %13809 = vst [vmem:[#allocation96_spill] sm:$0xff] %v11926_v30  ;;  %v4264_v32 = vsel %vm3898_vm4, %v11892_v54, -inf  ;;  %v11948_v39 = vpop.permute.xlu0 %8505 }
 0x321   : > { %13807 = vst [vmem:[#allocation94_spill] sm:$0xff] %v11920_v48  ;;  %v4300_v26 = vsel %vm3898_vm4, %v11920_v48, -inf  ;;  %13813 = vst [vmem:[#allocation100_spill] sm:$0xff] %v11948_v39 }
 0x322   : > { %4301 = vmax.xlane.f32.xlu1 %v4300_v26 }
 0x324   : > { %4268 = vmax.xlane.f32.xlu0 %v4267_v46  ;;  %v4273_v46 = vsel %vm3898_vm4, %v11886_v11, -inf  ;;  %v11958_v22 = vpop.permute.xlu0 %8503 }
 0x325   : > { %v11930_v44 = vpop.f32.mrf.mxu1  ;;  %13815 = vst [vmem:[#allocation102_spill] sm:$0xff] %v11958_v22 }
 0x326   : > { %v11932_v34 = vpop.f32.mrf.mxu0  ;;  %v4309_v41 = vsel %vm3898_vm4, %v11930_v44, -inf }
 0x327   : > { %v11936_v47 = vpop.f32.mrf.mxu1  ;;  %v4315_v60 = vsel %vm3898_vm4, %v11932_v34, -inf }
 0x328   : > { %13811 = vst [vmem:[#allocation98_spill] sm:$0xff] %v11936_v47  ;;  %4265 = vmax.xlane.f32.xlu0 %v4264_v32  ;;  %v4306_v26 = vsel %vm3898_vm4, %v11936_v47, -inf  ;;  %v11942_v56 = vpop.f32.mrf.mxu0  ;;  %v4279_v32 = vsel %vm3898_vm4, %v11896_v8, -inf  ;;  %v3901_v39 = vpop.xlane.xlu0 %3900 }
 0x329   : > { %13812 = vst [vmem:[#allocation99_spill] sm:$0xff] %v11942_v56  ;;  %4307 = vmax.xlane.f32.xlu1 %v4306_v26  ;;  %v4312_v53 = vsel %vm3898_vm4, %v11942_v56, -inf }
 0x32c   : > { %4274 = vmax.xlane.f32.xlu0 %v4273_v46  ;;  %v4276_v46 = vsel %vm3898_vm4, %v11900_v24, -inf  ;;  %v3910_v19 = vpop.xlane.xlu0 %3909 }
 0x32d   : > { %v11950_v6 = vpop.f32.mrf.mxu1  ;;  %4313 = vmax.xlane.f32.xlu1 %v4312_v53  ;;  %v4285_v53 = vsel %vm3898_vm4, %v11906_v15, -inf }
 0x32f   : > { %v11952_v42 = vpop.f32.mrf.mxu1 }
 0x330   : > { %13814 = vst [vmem:[#allocation101_spill] sm:$0xff] %v11952_v42  ;;  %4280 = vmax.xlane.f32.xlu0 %v4279_v32  ;;  %v4318_v26 = vsel %vm3898_vm4, %v11952_v42, -inf  ;;  %v11966_v32 = vpop.permute.xlu1 %8416  ;;  %v3907_v50 = vpop.xlane.xlu0 %3906 }
 0x331   : > { %4319 = vmax.xlane.f32.xlu1 %v4318_v26  ;;  %13816 = vst [vmem:[#allocation103_spill] sm:$0xff] %v11966_v32  ;;  %v4291_v26 = vsel %vm3898_vm4, %v11904_v20, -inf }
 0x334   : > { %4277 = vmax.xlane.f32.xlu0 %v4276_v46  ;;  %v3904_v22 = vpop.xlane.xlu1 %3903  ;;  %v4288_v46 = vsel %vm3898_vm4, %v11910_v63, -inf  ;;  %v3916_v61 = vpop.xlane.xlu0 %3915 }
 0x338   : > { %4286 = vmax.xlane.f32.xlu0 %v4285_v53  ;;  %v3913_v0 = vpop.xlane.xlu1 %3912  ;;  %v4297_v53 = vsel %vm3898_vm4, %v11916_v62, -inf  ;;  %v3922_v21 = vpop.xlane.xlu0 %3921 }
 0x33c   : > { %4283 = vmax.xlane.f32.xlu0 %v4282_v29  ;;  %v3919_v1 = vpop.xlane.xlu1 %3918  ;;  %v4294_v29 = vsel %vm3898_vm4, %v11926_v30, -inf  ;;  %v3928_v23 = vpop.xlane.xlu0 %3927 }
 0x340   : > { %4292 = vmax.xlane.f32.xlu0 %v4291_v26  ;;  %v3925_v32 = vpop.xlane.xlu1 %3924  ;;  %v4303_v26 = vsel %vm3898_vm4, %v11914_v58, -inf  ;;  %v3934_v18 = vpop.xlane.xlu0 %3933 }
 0x344   : > { %4289 = vmax.xlane.f32.xlu0 %v4288_v46  ;;  %v3931_v35 = vpop.xlane.xlu1 %3930  ;;  %v13817_v46 = vld [vmem:[#allocation59_spill] sm:$0xff]  ;;  %v3940_v9 = vpop.xlane.xlu0 %3939 }
 0x345   : > { %v4031_v7 = vadd.s32 4294967288, %v13817_v46 }
 0x348   : > { %4298 = vmax.xlane.f32.xlu0 %v4297_v53  ;;  %v11983_v53 = vsub.s32 %v13817_v46, %v13818_v38  ;;  %v3937_v4 = vpop.xlane.xlu1 %3936  ;;  %v3946_v40 = vpop.xlane.xlu0 %3945 }
 0x34a   : > { %v4041_v45 = vrot.slane %v3907_v50, %v11983_v53  ;;  %v4030_v25 = vrot.slane %v3901_v39, %v11983_v53  ;;  %v4059_v46 = vrot.slane %v3919_v1, %v11983_v53  ;;  %v4068_v50 = vrot.slane %v3925_v32, %v11983_v53 }
 0x34c   : > { %4295 = vmax.xlane.f32.xlu0 %v4294_v29  ;;  %v11986_v29 = vsub.s32 %v4031_v7, %v13818_v38 }
 0x34e   : > { %v4045_v27 = vrot.slane %v3910_v19, %v11986_v29  ;;  %v4054_v7 = vrot.slane %v3916_v61, %v11986_v29  ;;  %v4063_v39 = vrot.slane %v3922_v21, %v11986_v29  ;;  %v4077_v19 = vrot.slane %v3931_v35, %v11983_v53 }
 0x34f   : > { %v4072_v1 = vrot.slane %v3928_v23, %v11986_v29  ;;  %v4321_v61 = vsel %vm3898_vm4, %v11950_v6, -inf  ;;  %v4090_v23 = vrot.slane %v3940_v9, %v11986_v29 }
 0x350   : > { %4304 = vmax.xlane.f32.xlu0 %v4303_v26  ;;  %v4050_v26 = vrot.slane %v3913_v0, %v11983_v53  ;;  %v4035_v0 = vrot.slane %v3904_v22, %v11986_v29  ;;  %v4046_v42 = vsel %vm4036_vm6, %v4045_v27, %v4041_v45  ;;  %v4064_v56 = vsel %vm4036_vm6, %v4063_v39, %v4059_v46 }
 0x351   : > { %v4081_v22 = vrot.slane %v3934_v18, %v11986_v29  ;;  %v4073_v21 = vsel %vm4036_vm6, %v4072_v1, %v4068_v50  ;;  %v4099_v46 = vrot.slane %v3946_v40, %v11986_v29 }
 0x352   : > { %v4055_v3 = vsel %vm4036_vm6, %v4054_v7, %v4050_v26  ;;  %v4037_v32 = vsel %vm4036_vm6, %v4035_v0, %v4030_v25 }
 0x353   : > { %v4174_v35 = vsel %vm4173_vm7, %v4046_v42, %v4037_v32  ;;  %v4082_v25 = vsel %vm4036_vm6, %v4081_v22, %v4077_v19 }
 0x354   : > { %4310 = vmax.xlane.f32.xlu0 %v4309_v41  ;;  %v3943_v41 = vpop.xlane.xlu1 %3942  ;;  %v4176_v26 = vsel %vm4175_vm8, %v4055_v3, %v4174_v35 }
 0x355   : > { %v4095_v27 = vrot.slane %v3943_v41, %v11983_v53  ;;  %v4178_v18 = vsel %vm4177_vm9, %v4064_v56, %v4176_v26 }
 0x356   : > { %v4180_v50 = vsel %vm4179_vm10, %v4073_v21, %v4178_v18 }
 0x357   : > { %v4100_v42 = vsel %vm4036_vm6, %v4099_v46, %v4095_v27  ;;  %v4182_v0 = vsel %vm4181_vm11, %v4082_v25, %v4180_v50 }
 0x358   : > { %4316 = vmax.xlane.f32.xlu0 %v4315_v60  ;;  %v4086_v60 = vrot.slane %v3937_v4, %v11983_v53  ;;  %v3949_v45 = vpop.xlane.xlu1 %3948  ;;  %v3952_v4 = vpop.xlane.xlu0 %3951 }
 0x359   : > { %v4104_v21 = vrot.slane %v3949_v45, %v11983_v53 }
 0x35a   : > { %v4091_v41 = vsel %vm4036_vm6, %v4090_v23, %v4086_v60 }
 0x35b   : > { %v4184_v3 = vsel %vm4183_vm12, %v4091_v41, %v4182_v0 }
 0x35c   : > { %4322 = vmax.xlane.f32.xlu0 %v4321_v61  ;;  %v3955_v7 = vpop.xlane.xlu1 %3954  ;;  %v3958_v9 = vpop.xlane.xlu0 %3957  ;;  %v4186_v39 = vsel %vm4185_vm13, %v4100_v42, %v4184_v3  ;;  %v4108_v42 = vrot.slane %v3952_v4, %v11986_v29 }
 0x35d   : > { %v4113_v27 = vrot.slane %v3955_v7, %v11983_v53  ;;  %v4117_v23 = vrot.slane %v3958_v9, %v11986_v29 }
 0x35f   : > { %v4118_v50 = vsel %vm4036_vm6, %v4117_v23, %v4113_v27 }
 0x360   : > { %v3961_v40 = vpop.xlane.xlu1 %3960  ;;  %v3964_v19 = vpop.xlane.xlu0 %3963 }
 0x361   : > { %v4122_v35 = vrot.slane %v3961_v40, %v11983_v53  ;;  %v4126_v46 = vrot.slane %v3964_v19, %v11986_v29 }
 0x363   : > { %v4127_v45 = vsel %vm4036_vm6, %v4126_v46, %v4122_v35 }
 0x364   : > { %4196 = vxpose.xlu1.b32.start [1/2] (short) (narrow) %v4186_v39, 16  ;;  %v3967_v56 = vpop.xlane.xlu1 %3966  ;;  %v3970_v1 = vpop.xlane.xlu0 %3969  ;;  %v4109_v39 = vsel %vm4036_vm6, %v4108_v42, %v4104_v21 }
 0x365   : > { %v4131_v26 = vrot.slane %v3967_v56, %v11983_v53  ;;  %v4135_v7 = vrot.slane %v3970_v1, %v11986_v29  ;;  %v4187_v4 = vsel %vm4173_vm7, %v4118_v50, %v4109_v39 }
 0x367   : > { %v4136_v40 = vsel %vm4036_vm6, %v4135_v7, %v4131_v26 }
 0x368   : > { %v3973_v60 = vpop.xlane.xlu1 %3972  ;;  %v3976_v61 = vpop.xlane.xlu0 %3975 }
 0x369   : > { %v4140_v18 = vrot.slane %v3973_v60, %v11983_v53  ;;  %v4144_v9 = vrot.slane %v3976_v61, %v11986_v29 }
 0x36b   : > { %v4145_v56 = vsel %vm4036_vm6, %v4144_v9, %v4140_v18 }
 0x36c   : > { %v3979_v32 = vpop.xlane.xlu1 %3978  ;;  %v3982_v22 = vpop.xlane.xlu0 %3981 }
 0x36d   : > { %v4149_v0 = vrot.slane %v3979_v32, %v11983_v53  ;;  %v4153_v19 = vrot.slane %v3982_v22, %v11986_v29  ;;  %v4188_v32 = vsel %vm4175_vm8, %v4127_v45, %v4187_v4 }
 0x36e   : > { %v4189_v61 = vsel %vm4177_vm9, %v4136_v40, %v4188_v32 }
 0x36f   : > { %v4154_v27 = vsel %vm4036_vm6, %v4153_v19, %v4149_v0  ;;  %v4190_v26 = vsel %vm4179_vm10, %v4145_v56, %v4189_v61 }
 0x370   : > { %v4191_v46 = vsel %vm4181_vm11, %v4154_v27, %v4190_v26 }
 0x372   : > { %v3988_v41 = vpop.xlane.xlu0 %3987 }
 0x373   : > { %v4162_v1 = vrot.slane %v3988_v41, %v11986_v29 }
 0x374   : > { %v3985_v25 = vpop.xlane.xlu1 %3984 }
 0x375   : > { %v4158_v3 = vrot.slane %v3985_v25, %v11983_v53 }
 0x377   : > { %v4163_v21 = vsel %vm4036_vm6, %v4162_v1, %v4158_v3 }
 0x378   : > { %v4192_v41 = vsel %vm4183_vm12, %v4163_v21, %v4191_v46 }
 0x379   : > { %v3994_v60 = vpop.xlane.xlu0 %3993 }
 0x37a   : > { %v4171_v23 = vrot.slane %v3994_v60, %v11986_v29 }
 0x37b   : > { %v3991_v35 = vpop.xlane.xlu1 %3990 }
 0x37c   : > { %v4167_v22 = vrot.slane %v3991_v35, %v11983_v53 }
 0x37d   : > { %v4233_v25 = vpop.xlane.xlu0 %4232 }
 0x37e   : > { %v4172_v18 = vsel %vm4036_vm6, %v4171_v23, %v4167_v22  ;;  %v4363_v10 = vrot.slane %v4233_v25, %v11986_v29 }
 0x37f   : > { %v4193_v42 = vsel %vm4185_vm13, %v4172_v18, %v4192_v41 }
 0x380   : > { %4197 = vxpose.xlu1.b32.end [2/2] (short) (narrow) %v4193_v42, 16 }
 0x381   : > { %v4230_v50 = vpop.xlane.xlu0 %4229 }
 0x382   : > { %v4359_v57 = vrot.slane %v4230_v50, %v11983_v53 }
 0x385   : > { %v4239_v7 = vpop.xlane.xlu0 %4238 }
 0x386   : > { %v4372_v47 = vrot.slane %v4239_v7, %v11986_v29 }
 0x389   : > { %v4236_v0 = vpop.xlane.xlu0 %4235 }
 0x38a   : > { %v4368_v41 = vrot.slane %v4236_v0, %v11983_v53 }
 0x38c   : > { %v4373_v0 = vsel %vm4036_vm6, %v4372_v47, %v4368_v41 }
 0x38d   : > { %v4245_v45 = vpop.xlane.xlu0 %4244 }
 0x38e   : > { %v4381_v33 = vrot.slane %v4245_v45, %v11986_v29 }
 0x391   : > { %v4242_v9 = vpop.xlane.xlu0 %4241 }
 0x392   : > { %v4377_v42 = vrot.slane %v4242_v9, %v11983_v53 }
 0x394   : > { %v4382_v7 = vsel %vm4036_vm6, %v4381_v33, %v4377_v42  ;;  %v12107_v42 = vsub.s32 0, %v13818_v38 }
 0x395   : > { %v4251_v3 = vpop.xlane.xlu0 %4250 }
 0x396   : > { %v4390_v9 = vrot.slane %v4251_v3, %v11986_v29 }
 0x399   : > { %v4248_v39 = vpop.xlane.xlu0 %4247 }
 0x39a   : > { %v4272_v23 = vpop.xlane.xlu1 %4271  ;;  %v4386_v48 = vrot.slane %v4248_v39, %v11983_v53 }
 0x39c   : > { %v4391_v24 = vsel %vm4036_vm6, %v4390_v9, %v4386_v48 }
 0x39d   : > { %v4257_v40 = vpop.xlane.xlu0 %4256 }
 0x39e   : > { %v4399_v39 = vrot.slane %v4257_v40, %v11986_v29  ;;  %v4422_v40 = vrot.slane %v4272_v23, %v11983_v53 }
 0x3a1   : > { %v4254_v19 = vpop.xlane.xlu0 %4253 }
 0x3a2   : > { %v4395_v30 = vrot.slane %v4254_v19, %v11983_v53  ;;  %v4364_v19 = vsel %vm4036_vm6, %v4363_v10, %v4359_v57 }
 0x3a3   : > { %v4500_v47 = vsel %vm4173_vm7, %v4373_v0, %v4364_v19 }
 0x3a4   : > { %v4400_v3 = vsel %vm4036_vm6, %v4399_v39, %v4395_v30  ;;  %v4501_v33 = vsel %vm4175_vm8, %v4382_v7, %v4500_v47  ;;  %v12120_v39 = vsub.s32 2, %v13818_v38 }
 0x3a5   : > { %v4263_v4 = vpop.xlane.xlu0 %4262  ;;  %v4502_v57 = vsel %vm4177_vm9, %v4391_v24, %v4501_v33 }
 0x3a6   : > { %v4408_v2 = vrot.slane %v4263_v4, %v11986_v29  ;;  %13820 = vst [vmem:[#allocation58_spill] sm:$0xff] %v12120_v39 }
 0x3a9   : > { %v4260_v56 = vpop.xlane.xlu0 %4259 }
 0x3aa   : > { %v4404_v50 = vrot.slane %v4260_v56, %v11983_v53 }
 0x3ab   : > { %v12064_v26 = vpop.xlane.xlu1 %4301 }
 0x3ad   : > { %v4269_v1 = vpop.xlane.xlu0 %4268 }
 0x3ae   : > { %v4417_v56 = vrot.slane %v4269_v1, %v11986_v29 }
 0x3b1   : > { %v4266_v60 = vpop.xlane.xlu0 %4265 }
 0x3b2   : > { %v12066_v46 = vpop.xlane.xlu1 %4307  ;;  %v4413_v45 = vrot.slane %v4266_v60, %v11983_v53  ;;  %v4409_v60 = vsel %vm4036_vm6, %v4408_v2, %v4404_v50  ;;  %v12115_v50 = vsub.s32 1, %v13818_v38 }
 0x3b4   : > { %v4418_v48 = vsel %vm4036_vm6, %v4417_v56, %v4413_v45  ;;  %13819 = vst [vmem:[#allocation59_spill] sm:$0xff] %v12115_v50  ;;  %v12130_v56 = vsub.s32 4, %v13818_v38 }
 0x3b5   : > { %v4275_v32 = vpop.xlane.xlu0 %4274 }
 0x3b6   : > { %v12077_v63 = vpop.xlane.xlu1 %4313  ;;  %v4426_v25 = vrot.slane %v4275_v32, %v11986_v29  ;;  %v4503_v32 = vsel %vm4179_vm10, %v4400_v3, %v4502_v57  ;;  %13822 = vst [vmem:[#allocation105_spill] sm:$0xff] %v12130_v56 }
 0x3b7   : > { %v4504_v30 = vsel %vm4181_vm11, %v4409_v60, %v4503_v32  ;;  %v12137_v60 = vsub.s32 5, %v13818_v38 }
 0x3b8   : > { %v4427_v41 = vsel %vm4036_vm6, %v4426_v25, %v4422_v40  ;;  %v4505_v1 = vsel %vm4183_vm12, %v4418_v48, %v4504_v30  ;;  %v12125_v25 = vsub.s32 3, %v13818_v38 }
 0x3b9   : > { %v12054_v27 = vpop.xlane.xlu0 %4280  ;;  %v4506_v2 = vsel %vm4185_vm13, %v4427_v41, %v4505_v1  ;;  %13823 = vst [vmem:[#allocation106_spill] sm:$0xff] %v12137_v60 }
 0x3ba   : > { %v12100_v10 = vpop.xlane.xlu1 %4319  ;;  %13821 = vst [vmem:[#allocation104_spill] sm:$0xff] %v12125_v25 }
 0x3bd   : > { %v12056_v61 = vpop.xlane.xlu0 %4277 }
 0x3be   : > { %v4431_v57 = vrot.slane %v12056_v61, %v11983_v53 }
 0x3c1   : > { %v12058_v35 = vpop.xlane.xlu0 %4286 }
 0x3c2   : > { %v4444_v48 = vrot.slane %v12058_v35, %v11986_v29 }
 0x3c5   : > { %v12060_v21 = vpop.xlane.xlu0 %4283 }
 0x3c6   : > { %v4440_v33 = vrot.slane %v12060_v21, %v11983_v53  ;;  %v4435_v21 = vrot.slane %v12054_v27, %v11986_v29  ;;  %v4467_v27 = vrot.slane %v12064_v26, %v11983_v53 }
 0x3c9   : > { %v12062_v22 = vpop.xlane.xlu0 %4292 }
 0x3cd   : > { %v12068_v18 = vpop.xlane.xlu0 %4289 }
 0x3ce   : > { %v4449_v40 = vrot.slane %v12068_v18, %v11983_v53  ;;  %v4453_v18 = vrot.slane %v12062_v22, %v11986_v29  ;;  %v4476_v22 = vrot.slane %v12066_v46, %v11983_v53 }
 0x3d1   : > { %v12079_v12 = vpop.xlane.xlu0 %4298 }
 0x3d2   : > { %v4462_v61 = vrot.slane %v12079_v12, %v11986_v29 }
 0x3d5   : > { %v4296_v4 = vpop.xlane.xlu0 %4295 }
 0x3d6   : > { %v4458_v32 = vrot.slane %v4296_v4, %v11983_v53  ;;  %v12156_v4 = vsub.s32 6, %v13818_v38 }
 0x3d8   : > { %v4463_v12 = vsel %vm4036_vm6, %v4462_v61, %v4458_v32 }
 0x3d9   : > { %v4305_v0 = vpop.xlane.xlu0 %4304 }
 0x3da   : > { %v4471_v30 = vrot.slane %v4305_v0, %v11986_v29 }
 0x3dc   : > { %v4472_v46 = vsel %vm4036_vm6, %v4471_v30, %v4467_v27 }
 0x3dd   : > { %v4311_v45 = vpop.xlane.xlu0 %4310 }
 0x3de   : > { %v4480_v35 = vrot.slane %v4311_v45, %v11986_v29 }
 0x3e1   : > { %v4317_v47 = vpop.xlane.xlu0 %4316 }
 0x3e2   : > { %v4489_v0 = vrot.slane %v4317_v47, %v11986_v29 }
 0x3e5   : > { %v4323_v1 = vpop.xlane.xlu0 %4322 }
 0x3f8   : > { %v4212_v23 = vpop.trf.xlu1 }
 0x3f9   : > { %v12110_v24 = vmax.f32 %v4212_v23, %v4506_v2  ;;  %v4445_v23 = vsel %vm4036_vm6, %v4444_v48, %v4440_v33  ;;  %v4454_v2 = vsel %vm4036_vm6, %v4453_v18, %v4449_v40  ;;  %v4481_v33 = vsel %vm4036_vm6, %v4480_v35, %v4476_v22 }
 0x3fb   : > { %v4825_v9 = vrot.slane %v12110_v24, %v12107_v42  ;;  %v4836_v7 = vrot.slane %v12110_v24, %v12115_v50  ;;  %v4847_v19 = vrot.slane %v12110_v24, %v12120_v39  ;;  %v4858_v3 = vrot.slane %v12110_v24, %v12125_v25 }
 0x3fc   : > { %v4869_v41 = vrot.slane %v12110_v24, %v12130_v56  ;;  %v4880_v45 = vrot.slane %v12110_v24, %v12137_v60  ;;  %v4891_v32 = vrot.slane %v12110_v24, %v12156_v4 }
 0x3fd   : > { %4831 = vbcast.lane.b32.xlu0 %v4825_v9, 264  ;;  %4827 = vbcast.lane.b32.xlu1 %v4825_v9, 256  ;;  %v4436_v9 = vsel %vm4036_vm6, %v4435_v21, %v4431_v57 }
 0x3fe   : > { %v4507_v26 = vsel %vm4173_vm7, %v4445_v23, %v4436_v9 }
 0x3ff   : > { %v4508_v47 = vsel %vm4175_vm8, %v4454_v2, %v4507_v26 }
 0x400   : > { %v4509_v40 = vsel %vm4177_vm9, %v4463_v12, %v4508_v47 }
 0x401   : > { %4842 = vbcast.lane.b32.xlu0 %v4836_v7, 264  ;;  %4838 = vbcast.lane.b32.xlu1 %v4836_v7, 256  ;;  %v4498_v7 = vrot.slane %v4323_v1, %v11986_v29  ;;  %v4510_v48 = vsel %vm4179_vm10, %v4472_v46, %v4509_v40 }
 0x402   : > { %v4511_v21 = vsel %vm4181_vm11, %v4481_v33, %v4510_v48 }
 0x405   : > { %4853 = vbcast.lane.b32.xlu0 %v4847_v19, 264  ;;  %4849 = vbcast.lane.b32.xlu1 %v4847_v19, 256  ;;  %v4485_v19 = vrot.slane %v12077_v63, %v11983_v53 }
 0x407   : > { %v4490_v57 = vsel %vm4036_vm6, %v4489_v0, %v4485_v19 }
 0x408   : > { %v4512_v18 = vsel %vm4183_vm12, %v4490_v57, %v4511_v21 }
 0x409   : > { %4864 = vbcast.lane.b32.xlu0 %v4858_v3, 264  ;;  %4860 = vbcast.lane.b32.xlu1 %v4858_v3, 256  ;;  %v4494_v3 = vrot.slane %v12100_v10, %v11983_v53  ;;  %v4213_v10 = vpop.trf.xlu1 }
 0x40b   : > { %v4499_v63 = vsel %vm4036_vm6, %v4498_v7, %v4494_v3 }
 0x40c   : > { %v4513_v30 = vsel %vm4185_vm13, %v4499_v63, %v4512_v18 }
 0x40d   : > { %4875 = vbcast.lane.b32.xlu0 %v4869_v41, 264  ;;  %4871 = vbcast.lane.b32.xlu1 %v4869_v41, 256  ;;  %v12184_v41 = vsub.s32 7, %v13818_v38  ;;  %v4517_v1 = vmax.f32 %v4213_v10, %v4513_v30 }
 0x40f   : > { %v4902_v23 = vrot.slane %v12110_v24, %v12184_v41  ;;  %v4913_v61 = vrot.slane %v4517_v1, %v12107_v42  ;;  %v4924_v38 = vrot.slane %v4517_v1, %v12115_v50  ;;  %v4935_v35 = vrot.slane %v4517_v1, %v12120_v39 }
 0x410   : > { %v4946_v27 = vrot.slane %v4517_v1, %v12125_v25  ;;  %v4957_v22 = vrot.slane %v4517_v1, %v12130_v56  ;;  %v4968_v2 = vrot.slane %v4517_v1, %v12137_v60  ;;  %v4979_v0 = vrot.slane %v4517_v1, %v12156_v4 }
 0x411   : > { %4886 = vbcast.lane.b32.xlu0 %v4880_v45, 264  ;;  %4882 = vbcast.lane.b32.xlu1 %v4880_v45, 256  ;;  %v4990_v9 = vrot.slane %v4517_v1, %v12184_v41 }
 0x415   : > { %4897 = vbcast.lane.b32.xlu0 %v4891_v32, 264  ;;  %4893 = vbcast.lane.b32.xlu1 %v4891_v32, 256 }
 0x419   : > { %4908 = vbcast.lane.b32.xlu0 %v4902_v23, 264  ;;  %4904 = vbcast.lane.b32.xlu1 %v4902_v23, 256 }
 0x41d   : > { %4919 = vbcast.lane.b32.xlu0 %v4913_v61, 264 }
 0x421   : > { %4930 = vbcast.lane.b32.xlu0 %v4924_v38, 264 }
 0x425   : > { %4941 = vbcast.lane.b32.xlu0 %v4935_v35, 264 }
 0x429   : > { %4952 = vbcast.lane.b32.xlu0 %v4946_v27, 264 }
 0x42d   : > { %4963 = vbcast.lane.b32.xlu0 %v4957_v22, 264 }
 0x431   : > { %4974 = vbcast.lane.b32.xlu0 %v4968_v2, 264 }
 0x435   : > { %4985 = vbcast.lane.b32.xlu0 %v4979_v0, 264 }
 0x439   : > { %4996 = vbcast.lane.b32.xlu0 %v4990_v9, 264 }
 0x442   : > { %4518 = vxpose.xlu1.b32.start [1/2] (short) (narrow) %v12110_v24, 16 }
 0x446   : > { %4519 = vxpose.xlu1.b32.end [2/2] (short) (narrow) %v4517_v1, 16 }
 0x464   : > { %4915 = vbcast.lane.b32.xlu1 %v4913_v61, 256 }
 0x468   : > { %4926 = vbcast.lane.b32.xlu1 %v4924_v38, 256 }
 0x46c   : > { %4937 = vbcast.lane.b32.xlu1 %v4935_v35, 256 }
 0x46f   : > { %v12200_v12 = vpop.permute.xlu1 %4827  ;;  %v4832_v32 = vpop.permute.xlu0 %4831 }
 0x470   : > { %4948 = vbcast.lane.b32.xlu1 %v4946_v27, 256 }
 0x473   : > { %v12202_v7 = vpop.permute.xlu1 %4838  ;;  %v4843_v18 = vpop.permute.xlu0 %4842 }
 0x474   : > { %4959 = vbcast.lane.b32.xlu1 %v4957_v22, 256 }
 0x477   : > { %v12204_v45 = vpop.permute.xlu1 %4849  ;;  %v4854_v61 = vpop.permute.xlu0 %4853 }
 0x478   : > { %4970 = vbcast.lane.b32.xlu1 %v4968_v2, 256 }
 0x47b   : > { %v12206_v19 = vpop.permute.xlu1 %4860  ;;  %v4865_v27 = vpop.permute.xlu0 %4864 }
 0x47c   : > { %4981 = vbcast.lane.b32.xlu1 %v4979_v0, 256 }
 0x47f   : > { %v12208_v26 = vpop.permute.xlu1 %4871  ;;  %v4876_v2 = vpop.permute.xlu0 %4875 }
 0x480   : > { %4992 = vbcast.lane.b32.xlu1 %v4990_v9, 256 }
 0x483   : > { %v12210_v24 = vpop.permute.xlu1 %4882  ;;  %v4887_v9 = vpop.permute.xlu0 %4886 }
 0x487   : > { %v12212_v46 = vpop.permute.xlu1 %4893 }
 0x48b   : > { %v12214_v3 = vpop.permute.xlu1 %4904 }
 0x4be   : > { %v4534_v47 = vpop.trf.xlu1 }
 0x4bf   : > { %v4553_v33 = vrot.slane %v4534_v47, %v12107_v42  ;;  %v4608_v40 = vrot.slane %v4534_v47, %v12137_v60  ;;  %v4564_v10 = vrot.slane %v4534_v47, %v12115_v50  ;;  %v4575_v1 = vrot.slane %v4534_v47, %v12120_v39 }
 0x4c0   : > { %v4586_v35 = vrot.slane %v4534_v47, %v12125_v25  ;;  %v4597_v0 = vrot.slane %v4534_v47, %v12130_v56 }
 0x4c1   : > { %4555 = vbcast.lane.b32.xlu0 %v4553_v33, 256  ;;  %4610 = vbcast.lane.b32.xlu1 %v4608_v40, 256 }
 0x4c2   : > { %v4535_v57 = vpop.trf.xlu1 }
 0x4c3   : > { %v12219_v48 = vrot.slane %v4535_v57, %v12115_v50  ;;  %v12223_v63 = vrot.slane %v4535_v57, %v12120_v39  ;;  %v12228_v21 = vrot.slane %v4535_v57, %v12125_v25  ;;  %v12232_v30 = vrot.slane %v4535_v57, %v12130_v56 }
 0x4c4   : > { %v12237_v23 = vrot.slane %v4535_v57, %v12137_v60  ;;  %v12241_v38 = vrot.slane %v4535_v57, %v12156_v4  ;;  %v12246_v22 = vrot.slane %v4535_v57, %v12184_v41  ;;  %v5001_v39 = vsub.f32 %v11854_v13, %v4843_v18 }
 0x4c5   : > { %4559 = vbcast.lane.b32.xlu0 %v4553_v33, 264  ;;  %4654 = vbcast.lane.b32.xlu1 %v12219_v48, 256  ;;  %v4999_v33 = vsub.f32 %v11840_v36, %v4832_v32  ;;  %v5003_v25 = vsub.f32 %v11862_v43, %v4854_v61  ;;  %v4630_v56 = vrot.slane %v4534_v47, %v12184_v41 }
 0x4c6   : > { %v5005_v36 = vsub.f32 %v11864_v52, %v4865_v27  ;;  %v4641_v13 = vrot.slane %v4535_v57, %v12107_v42  ;;  %v5009_v43 = vsub.f32 %v11874_v49, %v4887_v9 }
 0x4c7   : > { %v5032_v60 = vmul.f32 1.442695, %v4999_v33  ;;  %v5007_v33 = vsub.f32 %v11872_v37, %v4876_v2 }
 0x4c8   : > { %v5044_v32 = vmul.f32 1.442695, %v5005_v36 }
 0x4c9   : > { %4566 = vbcast.lane.b32.xlu0 %v4564_v10, 256  ;;  %4665 = vbcast.lane.b32.xlu1 %v12223_v63, 256  ;;  %10358 = vpow2.f32 %v5032_v60 }
 0x4cd   : > { %4570 = vbcast.lane.b32.xlu0 %v4564_v10, 264  ;;  %4676 = vbcast.lane.b32.xlu1 %v12228_v21, 256  ;;  %v4898_v10 = vpop.permute.xlu0 %4897 }
 0x4ce   : > { %v5011_v52 = vsub.f32 %v11884_v55, %v4898_v10 }
 0x4d1   : > { %4577 = vbcast.lane.b32.xlu0 %v4575_v1, 256  ;;  %4687 = vbcast.lane.b32.xlu1 %v12232_v30, 256  ;;  %v4909_v50 = vpop.permute.xlu0 %4908 }
 0x4d2   : > { %v5013_v49 = vsub.f32 %v11886_v11, %v4909_v50 }
 0x4d4   : > { %v5060_v55 = vmul.f32 1.442695, %v5013_v49 }
 0x4d5   : > { %4581 = vbcast.lane.b32.xlu0 %v4575_v1, 264  ;;  %4698 = vbcast.lane.b32.xlu1 %v12237_v23, 256  ;;  %v4619_v1 = vrot.slane %v4534_v47, %v12156_v4 }
 0x4d6   : > { %v12259_v60 = vpop.eup %10358 }
 0x4d7   : > { %13824 = vst [vmem:[#allocation107_spill] sm:$0xff] %v12259_v60  ;;  %v5417_v18 = vsel %vm3898_vm4, %v12259_v60, 0.0 }
 0x4d9   : > { %4588 = vbcast.lane.b32.xlu0 %v4586_v35, 256  ;;  %4709 = vbcast.lane.b32.xlu1 %v12241_v38, 256 }
 0x4dd   : > { %4592 = vbcast.lane.b32.xlu0 %v4586_v35, 264  ;;  %4720 = vbcast.lane.b32.xlu1 %v12246_v22, 256  ;;  %v5036_v35 = vmul.f32 1.442695, %v5001_v39  ;;  %v5048_v39 = vmul.f32 1.442695, %v5007_v33 }
 0x4df   : > { %10360 = vpow2.f32 %v5036_v35 }
 0x4e1   : > { %4599 = vbcast.lane.b32.xlu0 %v4597_v0, 256 }
 0x4e5   : > { %4603 = vbcast.lane.b32.xlu0 %v4597_v0, 264  ;;  %v5040_v0 = vmul.f32 1.442695, %v5003_v25  ;;  %v5052_v25 = vmul.f32 1.442695, %v5009_v43 }
 0x4e7   : > { %10362 = vpow2.f32 %v5040_v0 }
 0x4e8   : > { %10364 = vpow2.f32 %v5044_v32 }
 0x4e9   : > { %4614 = vbcast.lane.b32.xlu0 %v4608_v40, 264  ;;  %v4920_v40 = vpop.permute.xlu0 %4919  ;;  %10366 = vpow2.f32 %v5048_v39 }
 0x4ea   : > { %10368 = vpow2.f32 %v5052_v25  ;;  %v5015_v2 = vsub.f32 %v11896_v8, %v4920_v40 }
 0x4ec   : > { %v12264_v61 = vpop.eup %10360  ;;  %v5064_v11 = vmul.f32 1.442695, %v5015_v2  ;;  %v5000_v2 = vsub.f32 %v11858_v59, %v12202_v7  ;;  %v5004_v7 = vsub.f32 %v11870_v14, %v12206_v19 }
 0x4ed   : > { %4621 = vbcast.lane.b32.xlu0 %v4619_v1, 256  ;;  %v4931_v47 = vpop.permute.xlu0 %4930  ;;  %13825 = vst [vmem:[#allocation108_spill] sm:$0xff] %v12264_v61  ;;  %v5423_v57 = vsel %vm3898_vm4, %v12264_v61, 0.0 }
 0x4ee   : > { %v5017_v50 = vsub.f32 %v11906_v15, %v4931_v47 }
 0x4f0   : > { %v5068_v0 = vmul.f32 1.442695, %v5017_v50 }
 0x4f1   : > { %4625 = vbcast.lane.b32.xlu0 %v4619_v1, 264  ;;  %v4942_v37 = vpop.permute.xlu0 %4941 }
 0x4f2   : > { %v5019_v36 = vsub.f32 %v11904_v20, %v4942_v37 }
 0x4f4   : > { %v12269_v27 = vpop.eup %10362  ;;  %v5072_v15 = vmul.f32 1.442695, %v5019_v36 }
 0x4f5   : > { %4632 = vbcast.lane.b32.xlu0 %v4630_v56, 256  ;;  %13826 = vst [vmem:[#allocation109_spill] sm:$0xff] %v12269_v27  ;;  %v5429_v9 = vsel %vm3898_vm4, %v12269_v27, 0.0  ;;  %v12275_v10 = vpop.eup %10364  ;;  %v4953_v1 = vpop.permute.xlu0 %4952 }
 0x4f6   : > { %13827 = vst [vmem:[#allocation110_spill] sm:$0xff] %v12275_v10  ;;  %v12281_v35 = vpop.eup %10366  ;;  %v5021_v32 = vsub.f32 %v11916_v62, %v4953_v1 }
 0x4f7   : > { %13828 = vst [vmem:[#allocation111_spill] sm:$0xff] %v12281_v35  ;;  %v12287_v40 = vpop.eup %10368 }
 0x4f8   : > { %13829 = vst [vmem:[#allocation112_spill] sm:$0xff] %v12287_v40  ;;  %v5076_v20 = vmul.f32 1.442695, %v5021_v32 }
 0x4f9   : > { %4636 = vbcast.lane.b32.xlu0 %v4630_v56, 264  ;;  %v5056_v56 = vmul.f32 1.442695, %v5011_v52  ;;  %v4964_v8 = vpop.permute.xlu0 %4963 }
 0x4fa   : > { %v5023_v39 = vsub.f32 %v11914_v58, %v4964_v8 }
 0x4fb   : > { %10370 = vpow2.f32 %v5056_v56 }
 0x4fc   : > { %10372 = vpow2.f32 %v5060_v55  ;;  %v5080_v47 = vmul.f32 1.442695, %v5023_v39 }
 0x4fd   : > { %4643 = vbcast.lane.b32.xlu0 %v4641_v13, 256  ;;  %10374 = vpow2.f32 %v5064_v11 }
 0x4fe   : > { %10376 = vpow2.f32 %v5068_v0  ;;  %v4916_v0 = vpop.permute.xlu1 %4915 }
 0x4ff   : > { %10378 = vpow2.f32 %v5072_v15 }
 0x500   : > { %10380 = vpow2.f32 %v5076_v20 }
 0x501   : > { %4647 = vbcast.lane.b32.xlu0 %v4641_v13, 264  ;;  %5418 = vadd.xlane.f32.xlu1 %v5417_v18  ;;  %v4975_v13 = vpop.permute.xlu0 %4974  ;;  %10382 = vpow2.f32 %v5080_v47 }
 0x502   : > { %v5025_v25 = vsub.f32 %v11930_v44, %v4975_v13  ;;  %v4998_v44 = vsub.f32 %v11850_v28, %v12200_v12  ;;  %v5002_v12 = vsub.f32 %v11868_v17, %v12204_v45  ;;  %v5042_v17 = vmul.f32 1.442695, %v5004_v7 }
 0x503   : > { %v5006_v45 = vsub.f32 %v11878_v16, %v12208_v26  ;;  %v4927_v16 = vpop.permute.xlu1 %4926 }
 0x504   : > { %v5084_v58 = vmul.f32 1.442695, %v5025_v25  ;;  %v5038_v59 = vmul.f32 1.442695, %v5002_v12 }
 0x505   : > { %4658 = vbcast.lane.b32.xlu0 %v12219_v48, 264  ;;  %5424 = vadd.xlane.f32.xlu1 %v5423_v57  ;;  %v5435_v48 = vsel %vm3898_vm4, %v12275_v10, 0.0  ;;  %v4986_v62 = vpop.permute.xlu0 %4985  ;;  %v5046_v19 = vmul.f32 1.442695, %v5006_v45  ;;  %v13850_v45 = vld [vmem:[#allocation92_spill] sm:$0xff] }
 0x506   : > { %v5027_v18 = vsub.f32 %v11932_v34, %v4986_v62  ;;  %10384 = vpow2.f32 %v5084_v58  ;;  %v5030_v34 = vmul.f32 1.442695, %v4998_v44  ;;  %v5012_v58 = vsub.f32 %v11888_v51, %v12214_v3  ;;  %v13844_v44 = vld [vmem:[#allocation91_spill] sm:$0xff] }
 0x507   : > { %v4938_v25 = vpop.permute.xlu1 %4937 }
 0x508   : > { %v12293_v33 = vpop.eup %10370  ;;  %v5088_v49 = vmul.f32 1.442695, %v5027_v18 }
 0x509   : > { %4669 = vbcast.lane.b32.xlu0 %v12223_v63, 264  ;;  %5430 = vadd.xlane.f32.xlu1 %v5429_v9  ;;  %v5441_v63 = vsel %vm3898_vm4, %v12281_v35, 0.0  ;;  %13830 = vst [vmem:[#allocation113_spill] sm:$0xff] %v12293_v33  ;;  %v12299_v43 = vpop.eup %10372  ;;  %v4997_v56 = vpop.permute.xlu0 %4996 }
 0x50a   : > { %13831 = vst [vmem:[#allocation114_spill] sm:$0xff] %v12299_v43  ;;  %v12305_v52 = vpop.eup %10374  ;;  %v5029_v57 = vsub.f32 %v11950_v6, %v4997_v56  ;;  %10386 = vpow2.f32 %v5088_v49  ;;  %v5034_v6 = vmul.f32 1.442695, %v5000_v2  ;;  %v5014_v49 = vsub.f32 %v13844_v44, %v4916_v0  ;;  %v13849_v0 = vld [vmem:[#allocation69_spill] sm:$0xff]  ;;  %v13856_v44 = vld [vmem:[#allocation94_spill] sm:$0xff] }
 0x50b   : > { %13832 = vst [vmem:[#allocation115_spill] sm:$0xff] %v12305_v52  ;;  %v12311_v37 = vpop.eup %10376  ;;  %10388 = vpow2.f32 %v5030_v34  ;;  %v4949_v3 = vpop.permute.xlu1 %4948 }
 0x50c   : > { %13833 = vst [vmem:[#allocation116_spill] sm:$0xff] %v12311_v37  ;;  %v12318_v55 = vpop.eup %10378  ;;  %v5092_v9 = vmul.f32 1.442695, %v5029_v57 }
 0x50d   : > { %4680 = vbcast.lane.b32.xlu0 %v12228_v21, 264  ;;  %5436 = vadd.xlane.f32.xlu1 %v5435_v48  ;;  %v5447_v21 = vsel %vm3898_vm4, %v12287_v40, 0.0  ;;  %13834 = vst [vmem:[#allocation117_spill] sm:$0xff] %v12318_v55  ;;  %v5477_v1 = vsel %vm3898_vm4, %v12318_v55, 0.0  ;;  %v12324_v28 = vpop.eup %10380 }
 0x50e   : > { %13835 = vst [vmem:[#allocation118_spill] sm:$0xff] %v12324_v28  ;;  %10390 = vpow2.f32 %v5092_v9  ;;  %v5483_v11 = vsel %vm3898_vm4, %v12324_v28, 0.0  ;;  %v12330_v50 = vpop.eup %10382  ;;  %v13916_v28 = vld [vmem:[#allocation88_spill] sm:$0xff] }
 0x50f   : > { %13836 = vst [vmem:[#allocation119_spill] sm:$0xff] %v12330_v50  ;;  %10392 = vpow2.f32 %v5034_v6  ;;  %v5489_v48 = vsel %vm3898_vm4, %v12330_v50, 0.0  ;;  %v13847_v6 = vld [vmem:[#allocation93_spill] sm:$0xff] }
 0x510   : > { %10394 = vpow2.f32 %v5038_v59  ;;  %v5016_v12 = vsub.f32 %v13847_v6, %v4927_v16 }
 0x511   : > { %4691 = vbcast.lane.b32.xlu0 %v12232_v30, 264  ;;  %5442 = vadd.xlane.f32.xlu1 %v5441_v63  ;;  %v5453_v30 = vsel %vm3898_vm4, %v12293_v33, 0.0  ;;  %10396 = vpow2.f32 %v5042_v17 }
 0x513   : > { %v12336_v8 = vpop.eup %10384 }
 0x514   : > { %13837 = vst [vmem:[#allocation120_spill] sm:$0xff] %v12336_v8  ;;  %v5495_v15 = vsel %vm3898_vm4, %v12336_v8, 0.0 }
 0x515   : > { %4702 = vbcast.lane.b32.xlu0 %v12237_v23, 264  ;;  %5448 = vadd.xlane.f32.xlu1 %v5447_v21  ;;  %v5459_v23 = vsel %vm3898_vm4, %v12299_v43, 0.0  ;;  %v5008_v21 = vsub.f32 %v11880_v5, %v12210_v24 }
 0x517   : > { %v12343_v32 = vpop.eup %10386  ;;  %v5050_v39 = vmul.f32 1.442695, %v5008_v21 }
 0x518   : > { %13838 = vst [vmem:[#allocation121_spill] sm:$0xff] %v12343_v32  ;;  %v12349_v20 = vpop.eup %10388 }
 0x519   : > { %4713 = vbcast.lane.b32.xlu0 %v12241_v38, 264  ;;  %5454 = vadd.xlane.f32.xlu1 %v5453_v30  ;;  %v5465_v38 = vsel %vm3898_vm4, %v12305_v52, 0.0  ;;  %13839 = vst [vmem:[#allocation122_spill] sm:$0xff] %v12349_v20  ;;  %v5010_v30 = vsub.f32 %v11892_v54, %v12212_v46  ;;  %v5414_v5 = vsel %vm3898_vm4, %v12349_v20, 0.0 }
 0x51b   : > { %v12353_v26 = vpop.eup %10390 }
 0x51c   : > { %13840 = vst [vmem:[#allocation123_spill] sm:$0xff] %v12353_v26  ;;  %v12361_v24 = vpop.eup %10392  ;;  %v5507_v47 = vsel %vm3898_vm4, %v12353_v26, 0.0 }
 0x51d   : > { %4724 = vbcast.lane.b32.xlu0 %v12246_v22, 264  ;;  %5460 = vadd.xlane.f32.xlu1 %v5459_v23  ;;  %v5471_v22 = vsel %vm3898_vm4, %v12311_v37, 0.0  ;;  %13841 = vst [vmem:[#allocation124_spill] sm:$0xff] %v12361_v24  ;;  %v5054_v23 = vmul.f32 1.442695, %v5010_v30  ;;  %v5420_v54 = vsel %vm3898_vm4, %v12361_v24, 0.0  ;;  %v12369_v46 = vpop.eup %10394 }
 0x51e   : > { %13842 = vst [vmem:[#allocation125_spill] sm:$0xff] %v12369_v46  ;;  %v5426_v2 = vsel %vm3898_vm4, %v12369_v46, 0.0  ;;  %v12377_v51 = vpop.eup %10396 }
 0x51f   : > { %v5432_v7 = vsel %vm3898_vm4, %v12377_v51, 0.0 }
 0x521   : > { %5466 = vadd.xlane.f32.xlu1 %v5465_v38  ;;  %v13843_v38 = vld [vmem:[#allocation67_spill] sm:$0xff] }
 0x522   : > { %13845 = vst [vmem:[#allocation67_spill] sm:$0xff] %v12377_v51 }
 0x525   : > { %5472 = vadd.xlane.f32.xlu1 %v5471_v22  ;;  %v5058_v22 = vmul.f32 1.442695, %v5012_v58  ;;  %v13854_v58 = vld [vmem:[#allocation71_spill] sm:$0xff] }
 0x529   : > { %5478 = vadd.xlane.f32.xlu1 %v5477_v1  ;;  %v5062_v1 = vmul.f32 1.442695, %v5014_v49 }
 0x52d   : > { %5484 = vadd.xlane.f32.xlu1 %v5483_v11 }
 0x531   : > { %5490 = vadd.xlane.f32.xlu1 %v5489_v48 }
 0x533   : > { %v4556_v36 = vpop.permute.xlu0 %4555 }
 0x534   : > { %v4726_v63 = vsub.f32 %v11434_v31, %v4556_v36  ;;  %v5501_v31 = vsel %vm3898_vm4, %v12343_v32, 0.0  ;;  %v5018_v36 = vsub.f32 %v13850_v45, %v4938_v25  ;;  %v13889_v32 = vld [vmem:[#allocation79_spill] sm:$0xff] }
 0x535   : > { %5496 = vadd.xlane.f32.xlu1 %v5495_v15 }
 0x536   : > { %v4758_v14 = vmul.f32 1.442695, %v4726_v63  ;;  %v4960_v63 = vpop.permute.xlu1 %4959 }
 0x537   : > { %v12347_v13 = vpop.permute.xlu0 %4559  ;;  %v5022_v49 = vsub.f32 %v13856_v44, %v4960_v63  ;;  %v13866_v44 = vld [vmem:[#allocation101_spill] sm:$0xff] }
 0x538   : > { %10398 = vpow2.f32 %v4758_v14  ;;  %v5066_v14 = vmul.f32 1.442695, %v5016_v12 }
 0x539   : > { %5502 = vadd.xlane.f32.xlu1 %v5501_v31  ;;  %10400 = vpow2.f32 %v5046_v19  ;;  %v5070_v31 = vmul.f32 1.442695, %v5018_v36  ;;  %v5078_v12 = vmul.f32 1.442695, %v5022_v49 }
 0x53a   : > { %10402 = vpow2.f32 %v5050_v39  ;;  %v13852_v39 = vld [vmem:[#allocation96_spill] sm:$0xff] }
 0x53b   : > { %v12357_v62 = vpop.permute.xlu0 %4566  ;;  %10404 = vpow2.f32 %v5054_v23  ;;  %v5020_v30 = vsub.f32 %v13852_v39, %v4949_v3  ;;  %v4971_v23 = vpop.permute.xlu1 %4970 }
 0x53c   : > { %5415 = vadd.xlane.f32.xlu0 %v5414_v5 }
 0x53d   : > { %5508 = vadd.xlane.f32.xlu1 %v5507_v47 }
 0x53f   : > { %v4571_v18 = vpop.permute.xlu0 %4570 }
 0x540   : > { %v4729_v56 = vsub.f32 %v13843_v38, %v4571_v18  ;;  %5421 = vadd.xlane.f32.xlu0 %v5420_v54 }
 0x542   : > { %v4764_v57 = vmul.f32 1.442695, %v4729_v56  ;;  %v5074_v56 = vmul.f32 1.442695, %v5020_v30 }
 0x543   : > { %v12373_v34 = vpop.permute.xlu0 %4577 }
 0x544   : > { %5427 = vadd.xlane.f32.xlu0 %v5426_v2  ;;  %10406 = vpow2.f32 %v4764_v57 }
 0x545   : > { %v12379_v9 = vpop.eup %10398  ;;  %10408 = vpow2.f32 %v5058_v22 }
 0x546   : > { %13846 = vst [vmem:[#allocation91_spill] sm:$0xff] %v12379_v9  ;;  %v5094_v11 = vsel %vm3898_vm4, %v12379_v9, 0.0  ;;  %v12386_v48 = vpop.eup %10400  ;;  %10410 = vpow2.f32 %v5062_v1  ;;  %v4982_v1 = vpop.permute.xlu1 %4981 }
 0x547   : > { %v4582_v59 = vpop.permute.xlu0 %4581  ;;  %13848 = vst [vmem:[#allocation93_spill] sm:$0xff] %v12386_v48  ;;  %5095 = vadd.xlane.f32.xlu1 %v5094_v11  ;;  %v5438_v21 = vsel %vm3898_vm4, %v12386_v48, 0.0  ;;  %v12394_v16 = vpop.eup %10402  ;;  %v13859_v11 = vld [vmem:[#allocation98_spill] sm:$0xff] }
 0x548   : > { %v4731_v17 = vsub.f32 %v13849_v0, %v4582_v59  ;;  %5433 = vadd.xlane.f32.xlu0 %v5432_v7  ;;  %13851 = vst [vmem:[#allocation69_spill] sm:$0xff] %v12394_v16  ;;  %v5444_v47 = vsel %vm3898_vm4, %v12394_v16, 0.0  ;;  %v12399_v25 = vpop.eup %10404  ;;  %v5024_v59 = vsub.f32 %v13859_v11, %v4971_v23  ;;  %v13864_v23 = vld [vmem:[#allocation60_spill] sm:$0xff] }
 0x549   : > { %13853 = vst [vmem:[#allocation92_spill] sm:$0xff] %v12399_v25  ;;  %v5450_v2 = vsel %vm3898_vm4, %v12399_v25, 0.0 }
 0x54a   : > { %v4768_v15 = vmul.f32 1.442695, %v4731_v17  ;;  %v13860_v17 = vld [vmem:[#allocation73_spill] sm:$0xff] }
 0x54b   : > { %v12390_v19 = vpop.permute.xlu0 %4588 }
 0x54c   : > { %5439 = vadd.xlane.f32.xlu0 %v5438_v21  ;;  %10412 = vpow2.f32 %v4768_v15  ;;  %v13862_v21 = vld [vmem:[#allocation99_spill] sm:$0xff] }
 0x54d   : > { %10414 = vpow2.f32 %v5066_v14  ;;  %v5082_v14 = vmul.f32 1.442695, %v5024_v59  ;;  %v13868_v59 = vld [vmem:[#allocation63_spill] sm:$0xff] }
 0x54e   : > { %10416 = vpow2.f32 %v5070_v31  ;;  %v5026_v31 = vsub.f32 %v13862_v21, %v4982_v1 }
 0x54f   : > { %v4593_v5 = vpop.permute.xlu0 %4592 }
 0x550   : > { %v4733_v18 = vsub.f32 %v13854_v58, %v4593_v5  ;;  %5445 = vadd.xlane.f32.xlu0 %v5444_v47  ;;  %v4993_v47 = vpop.permute.xlu1 %4992 }
 0x551   : > { %v12402_v54 = vpop.eup %10406  ;;  %v5028_v49 = vsub.f32 %v13866_v44, %v4993_v47  ;;  %v13874_v44 = vld [vmem:[#allocation70_spill] sm:$0xff] }
 0x552   : > { %13855 = vst [vmem:[#allocation96_spill] sm:$0xff] %v12402_v54  ;;  %v4772_v38 = vmul.f32 1.442695, %v4733_v18  ;;  %v5103_v57 = vsel %vm3898_vm4, %v12402_v54, 0.0  ;;  %v12411_v3 = vpop.eup %10408 }
 0x553   : > { %v12407_v22 = vpop.permute.xlu0 %4599  ;;  %13857 = vst [vmem:[#allocation71_spill] sm:$0xff] %v12411_v3  ;;  %5104 = vadd.xlane.f32.xlu1 %v5103_v57  ;;  %v12413_v6 = vpop.eup %10410  ;;  %v5456_v0 = vsel %vm3898_vm4, %v12411_v3, 0.0  ;;  %v5090_v11 = vmul.f32 1.442695, %v5028_v49  ;;  %v4730_v49 = vsub.f32 %v13874_v44, %v12373_v34 }
 0x554   : > { %5451 = vadd.xlane.f32.xlu0 %v5450_v2  ;;  %10418 = vpow2.f32 %v4772_v38  ;;  %13858 = vst [vmem:[#allocation94_spill] sm:$0xff] %v12413_v6  ;;  %v5462_v15 = vsel %vm3898_vm4, %v12413_v6, 0.0  ;;  %v4611_v21 = vpop.permute.xlu1 %4610 }
 0x555   : > { %10420 = vpow2.f32 %v5074_v56  ;;  %v5086_v56 = vmul.f32 1.442695, %v5026_v31  ;;  %v4766_v34 = vmul.f32 1.442695, %v4730_v49 }
 0x556   : > { %10422 = vpow2.f32 %v5078_v12 }
 0x557   : > { %v4604_v7 = vpop.permute.xlu0 %4603 }
 0x558   : > { %v4735_v45 = vsub.f32 %v13860_v17, %v4604_v7  ;;  %5457 = vadd.xlane.f32.xlu0 %v5456_v0  ;;  %v4727_v7 = vsub.f32 %v13868_v59, %v12347_v13 }
 0x559   : > { %v12419_v36 = vpop.eup %10412 }
 0x55a   : > { %13861 = vst [vmem:[#allocation98_spill] sm:$0xff] %v12419_v36  ;;  %v4776_v63 = vmul.f32 1.442695, %v4735_v45  ;;  %v5109_v39 = vsel %vm3898_vm4, %v12419_v36, 0.0  ;;  %v12426_v5 = vpop.eup %10414  ;;  %v4760_v31 = vmul.f32 1.442695, %v4727_v7 }
 0x55b   : > { %v4615_v30 = vpop.permute.xlu0 %4614  ;;  %13863 = vst [vmem:[#allocation73_spill] sm:$0xff] %v12426_v5  ;;  %5110 = vadd.xlane.f32.xlu1 %v5109_v39  ;;  %v12429_v38 = vpop.eup %10416  ;;  %v5468_v2 = vsel %vm3898_vm4, %v12426_v5, 0.0  ;;  %v13871_v39 = vld [vmem:[#allocation68_spill] sm:$0xff] }
 0x55c   : > { %10424 = vpow2.f32 %v4776_v63  ;;  %v4737_v58 = vsub.f32 %v13864_v23, %v4615_v30  ;;  %5463 = vadd.xlane.f32.xlu0 %v5462_v15  ;;  %13865 = vst [vmem:[#allocation99_spill] sm:$0xff] %v12429_v38  ;;  %v5474_v12 = vsel %vm3898_vm4, %v12429_v38, 0.0  ;;  %v13870_v63 = vld [vmem:[#allocation5_spill] sm:$0xff]  ;;  %v4728_v30 = vsub.f32 %v13871_v39, %v12357_v62 }
 0x55d   : > { %10426 = vpow2.f32 %v5082_v14 }
 0x55e   : > { %v4780_v18 = vmul.f32 1.442695, %v4737_v58 }
 0x55f   : > { %v12432_v57 = vpop.permute.xlu0 %4621 }
 0x560   : > { %10428 = vpow2.f32 %v4780_v18  ;;  %5469 = vadd.xlane.f32.xlu0 %v5468_v2 }
 0x561   : > { %v12436_v1 = vpop.eup %10418  ;;  %10430 = vpow2.f32 %v5086_v56  ;;  %v4762_v56 = vmul.f32 1.442695, %v4728_v30 }
 0x562   : > { %13867 = vst [vmem:[#allocation60_spill] sm:$0xff] %v12436_v1  ;;  %v5115_v0 = vsel %vm3898_vm4, %v12436_v1, 0.0  ;;  %v12444_v45 = vpop.eup %10420  ;;  %10432 = vpow2.f32 %v5090_v11  ;;  %v13876_v11 = vld [vmem:[#allocation7_spill] sm:$0xff] }
 0x563   : > { %v4626_v17 = vpop.permute.xlu0 %4625  ;;  %13869 = vst [vmem:[#allocation101_spill] sm:$0xff] %v12444_v45  ;;  %5116 = vadd.xlane.f32.xlu1 %v5115_v0  ;;  %v5480_v13 = vsel %vm3898_vm4, %v12444_v45, 0.0  ;;  %v12453_v23 = vpop.eup %10422 }
 0x564   : > { %v4739_v15 = vsub.f32 %v13870_v63, %v4626_v17  ;;  %5475 = vadd.xlane.f32.xlu0 %v5474_v12  ;;  %13872 = vst [vmem:[#allocation63_spill] sm:$0xff] %v12453_v23  ;;  %v5486_v2 = vsel %vm3898_vm4, %v12453_v23, 0.0  ;;  %v12468_v0 = vpop.permute.xlu1 %4654 }
 0x566   : > { %v4784_v14 = vmul.f32 1.442695, %v4739_v15  ;;  %v13878_v15 = vld [vmem:[#allocation72_spill] sm:$0xff] }
 0x567   : > { %v12449_v47 = vpop.permute.xlu0 %4632 }
 0x568   : > { %10434 = vpow2.f32 %v4784_v14  ;;  %5481 = vadd.xlane.f32.xlu0 %v5480_v13  ;;  %v4732_v14 = vsub.f32 %v13878_v15, %v12390_v19  ;;  %v12480_v13 = vpop.permute.xlu1 %4665 }
 0x569   : > { %v12455_v58 = vpop.eup %10424  ;;  %10436 = vpow2.f32 %v4760_v31 }
 0x56a   : > { %13873 = vst [vmem:[#allocation5_spill] sm:$0xff] %v12455_v58  ;;  %v5121_v18 = vsel %vm3898_vm4, %v12455_v58, 0.0  ;;  %v12463_v12 = vpop.eup %10426  ;;  %10438 = vpow2.f32 %v4762_v56  ;;  %v13880_v56 = vld [vmem:[#allocation74_spill] sm:$0xff] }
 0x56b   : > { %5122 = vadd.xlane.f32.xlu1 %v5121_v18  ;;  %v4637_v62 = vpop.permute.xlu0 %4636  ;;  %13875 = vst [vmem:[#allocation68_spill] sm:$0xff] %v12463_v12  ;;  %v5492_v39 = vsel %vm3898_vm4, %v12463_v12, 0.0  ;;  %v4770_v18 = vmul.f32 1.442695, %v4732_v14  ;;  %v4734_v44 = vsub.f32 %v13880_v56, %v12407_v22 }
 0x56c   : > { %v4741_v59 = vsub.f32 %v13876_v11, %v4637_v62  ;;  %5487 = vadd.xlane.f32.xlu0 %v5486_v2  ;;  %v13882_v2 = vld [vmem:[#allocation75_spill] sm:$0xff] }
 0x56d   : > { %v12466_v7 = vpop.eup %10428  ;;  %v4774_v14 = vmul.f32 1.442695, %v4734_v44 }
 0x56e   : > { %13877 = vst [vmem:[#allocation70_spill] sm:$0xff] %v12466_v7  ;;  %v4788_v17 = vmul.f32 1.442695, %v4741_v59  ;;  %v5127_v63 = vsel %vm3898_vm4, %v12466_v7, 0.0  ;;  %v12478_v30 = vpop.eup %10430 }
 0x56f   : > { %5128 = vadd.xlane.f32.xlu1 %v5127_v63  ;;  %v12474_v31 = vpop.permute.xlu0 %4643  ;;  %13879 = vst [vmem:[#allocation7_spill] sm:$0xff] %v12478_v30  ;;  %v5498_v19 = vsel %vm3898_vm4, %v12478_v30, 0.0  ;;  %v12486_v62 = vpop.eup %10432 }
 0x570   : > { %10440 = vpow2.f32 %v4788_v17  ;;  %5493 = vadd.xlane.f32.xlu0 %v5492_v39  ;;  %13881 = vst [vmem:[#allocation72_spill] sm:$0xff] %v12486_v62  ;;  %v5504_v39 = vsel %vm3898_vm4, %v12486_v62, 0.0  ;;  %v13894_v62 = vld [vmem:[#allocation76_spill] sm:$0xff] }
 0x571   : > { %10442 = vpow2.f32 %v4766_v34  ;;  %v13884_v34 = vld [vmem:[#allocation17_spill] sm:$0xff] }
 0x572   : > { %v4736_v15 = vsub.f32 %v13884_v34, %v4611_v21  ;;  %10444 = vpow2.f32 %v4770_v18  ;;  %v13887_v21 = vld [vmem:[#allocation4_spill] sm:$0xff] }
 0x573   : > { %v4648_v49 = vpop.permute.xlu0 %4647  ;;  %v4738_v18 = vsub.f32 %v13887_v21, %v12432_v57 }
 0x574   : > { %v4743_v11 = vsub.f32 %v13882_v2, %v4648_v49  ;;  %5499 = vadd.xlane.f32.xlu0 %v5498_v19  ;;  %v13886_v49 = vld [vmem:[#allocation77_spill] sm:$0xff]  ;;  %v12499_v2 = vpop.permute.xlu1 %4676  ;;  %v4778_v26 = vmul.f32 1.442695, %v4736_v15 }
 0x575   : > { %v12489_v59 = vpop.eup %10434  ;;  %v4782_v57 = vmul.f32 1.442695, %v4738_v18  ;;  %v4742_v18 = vsub.f32 %v13894_v62, %v12474_v31  ;;  %v13898_v31 = vld [vmem:[#allocation78_spill] sm:$0xff] }
 0x576   : > { %13883 = vst [vmem:[#allocation74_spill] sm:$0xff] %v12489_v59  ;;  %v4792_v17 = vmul.f32 1.442695, %v4743_v11  ;;  %v5133_v63 = vsel %vm3898_vm4, %v12489_v59, 0.0  ;;  %v12496_v56 = vpop.eup %10436  ;;  %v4744_v62 = vsub.f32 %v13898_v31, %v12468_v0 }
 0x577   : > { %5134 = vadd.xlane.f32.xlu1 %v5133_v63  ;;  %v4659_v22 = vpop.permute.xlu0 %4658  ;;  %13885 = vst [vmem:[#allocation75_spill] sm:$0xff] %v12496_v56  ;;  %v5097_v63 = vsel %vm3898_vm4, %v12496_v56, 0.0  ;;  %v12505_v34 = vpop.eup %10438 }
 0x578   : > { %10446 = vpow2.f32 %v4792_v17  ;;  %v4745_v19 = vsub.f32 %v13886_v49, %v4659_v22  ;;  %5505 = vadd.xlane.f32.xlu0 %v5504_v39  ;;  %13888 = vst [vmem:[#allocation17_spill] sm:$0xff] %v12505_v34  ;;  %v13891_v49 = vld [vmem:[#allocation9_spill] sm:$0xff]  ;;  %v4794_v0 = vmul.f32 1.442695, %v4744_v62 }
 0x579   : > { %10448 = vpow2.f32 %v4774_v14  ;;  %v12512_v14 = vpop.permute.xlu1 %4687 }
 0x57a   : > { %v4796_v11 = vmul.f32 1.442695, %v4745_v19  ;;  %v4740_v19 = vsub.f32 %v13891_v49, %v12449_v47  ;;  %v13896_v49 = vld [vmem:[#allocation83_spill] sm:$0xff] }
 0x57b   : > { %v4670_v44 = vpop.permute.xlu0 %4669 }
 0x57c   : > { %10450 = vpow2.f32 %v4796_v11  ;;  %v4747_v17 = vsub.f32 %v13889_v32, %v4670_v44  ;;  %5098 = vadd.xlane.f32.xlu0 %v5097_v63  ;;  %v5100_v11 = vsel %vm3898_vm4, %v12505_v34, 0.0  ;;  %v13893_v44 = vld [vmem:[#allocation81_spill] sm:$0xff] }
 0x57d   : > { %v12508_v22 = vpop.eup %10440  ;;  %10452 = vpow2.f32 %v4778_v26  ;;  %v4786_v26 = vmul.f32 1.442695, %v4740_v19  ;;  %v4790_v19 = vmul.f32 1.442695, %v4742_v18 }
 0x57e   : > { %13890 = vst [vmem:[#allocation77_spill] sm:$0xff] %v12508_v22  ;;  %v4800_v39 = vmul.f32 1.442695, %v4747_v17  ;;  %v5139_v15 = vsel %vm3898_vm4, %v12508_v22, 0.0  ;;  %v12518_v32 = vpop.eup %10442 }
 0x57f   : > { %5140 = vadd.xlane.f32.xlu1 %v5139_v15  ;;  %v4681_v21 = vpop.permute.xlu0 %4680  ;;  %13892 = vst [vmem:[#allocation4_spill] sm:$0xff] %v12518_v32  ;;  %v5106_v47 = vsel %vm3898_vm4, %v12518_v32, 0.0  ;;  %v12525_v15 = vpop.eup %10444 }
 0x580   : > { %10454 = vpow2.f32 %v4800_v39  ;;  %v4749_v63 = vsub.f32 %v13893_v44, %v4681_v21  ;;  %5101 = vadd.xlane.f32.xlu0 %v5100_v11  ;;  %13895 = vst [vmem:[#allocation79_spill] sm:$0xff] %v12525_v15  ;;  %v12530_v21 = vpop.permute.xlu1 %4698 }
 0x581   : > { %10456 = vpow2.f32 %v4782_v57 }
 0x582   : > { %v4804_v17 = vmul.f32 1.442695, %v4749_v63  ;;  %v5112_v63 = vsel %vm3898_vm4, %v12525_v15, 0.0 }
 0x583   : > { %v4692_v30 = vpop.permute.xlu0 %4691 }
 0x584   : > { %10458 = vpow2.f32 %v4804_v17  ;;  %v4751_v8 = vsub.f32 %v13896_v49, %v4692_v30  ;;  %5107 = vadd.xlane.f32.xlu0 %v5106_v47  ;;  %v13900_v17 = vld [vmem:[#allocation85_spill] sm:$0xff] }
 0x585   : > { %v12528_v39 = vpop.eup %10446  ;;  %10460 = vpow2.f32 %v4786_v26  ;;  %v13902_v26 = vld [vmem:[#allocation80_spill] sm:$0xff] }
 0x586   : > { %13897 = vst [vmem:[#allocation9_spill] sm:$0xff] %v12528_v39  ;;  %v4808_v11 = vmul.f32 1.442695, %v4751_v8  ;;  %v5145_v57 = vsel %vm3898_vm4, %v12528_v39, 0.0  ;;  %v12538_v30 = vpop.eup %10448  ;;  %v4746_v18 = vsub.f32 %v13902_v26, %v12480_v13 }
 0x587   : > { %5146 = vadd.xlane.f32.xlu1 %v5145_v57  ;;  %v4703_v44 = vpop.permute.xlu0 %4702  ;;  %13899 = vst [vmem:[#allocation81_spill] sm:$0xff] %v12538_v30  ;;  %v4710_v57 = vpop.permute.xlu1 %4709 }
 0x588   : > { %10462 = vpow2.f32 %v4808_v11  ;;  %v4753_v47 = vsub.f32 %v13900_v17, %v4703_v44  ;;  %5113 = vadd.xlane.f32.xlu0 %v5112_v63  ;;  %v5118_v11 = vsel %vm3898_vm4, %v12538_v30, 0.0  ;;  %v13904_v44 = vld [vmem:[#allocation87_spill] sm:$0xff]  ;;  %v4798_v13 = vmul.f32 1.442695, %v4746_v18  ;;  %v13910_v18 = vld [vmem:[#allocation84_spill] sm:$0xff] }
 0x589   : > { %v12541_v8 = vpop.eup %10450  ;;  %10464 = vpow2.f32 %v4790_v19 }
 0x58a   : > { %13901 = vst [vmem:[#allocation76_spill] sm:$0xff] %v12541_v8  ;;  %v4812_v49 = vmul.f32 1.442695, %v4753_v47  ;;  %v5151_v50 = vsel %vm3898_vm4, %v12541_v8, 0.0  ;;  %v12549_v12 = vpop.eup %10452 }
 0x58b   : > { %5152 = vadd.xlane.f32.xlu1 %v5151_v50  ;;  %v4714_v31 = vpop.permute.xlu0 %4713  ;;  %13903 = vst [vmem:[#allocation83_spill] sm:$0xff] %v12549_v12  ;;  %v13906_v50 = vld [vmem:[#allocation82_spill] sm:$0xff]  ;;  %v5124_v23 = vsel %vm3898_vm4, %v12549_v12, 0.0 }
 0x58c   : > { %10466 = vpow2.f32 %v4812_v49  ;;  %v4755_v63 = vsub.f32 %v13904_v44, %v4714_v31  ;;  %5119 = vadd.xlane.f32.xlu0 %v5118_v11  ;;  %v4748_v19 = vsub.f32 %v13906_v50, %v12499_v2  ;;  %v13908_v31 = vld [vmem:[#allocation89_spill] sm:$0xff] }
 0x58d   : > { %v12552_v17 = vpop.eup %10454  ;;  %10468 = vpow2.f32 %v4794_v0 }
 0x58e   : > { %13905 = vst [vmem:[#allocation78_spill] sm:$0xff] %v12552_v17  ;;  %v4816_v47 = vmul.f32 1.442695, %v4755_v63  ;;  %v5157_v62 = vsel %vm3898_vm4, %v12552_v17, 0.0  ;;  %v12560_v49 = vpop.eup %10456  ;;  %v4721_v63 = vpop.permute.xlu1 %4720  ;;  %v4802_v2 = vmul.f32 1.442695, %v4748_v19 }
 0x58f   : > { %5158 = vadd.xlane.f32.xlu1 %v5157_v62  ;;  %v4725_v26 = vpop.permute.xlu0 %4724  ;;  %13907 = vst [vmem:[#allocation85_spill] sm:$0xff] %v12560_v49  ;;  %v4750_v62 = vsub.f32 %v13910_v18, %v12512_v14  ;;  %v5130_v50 = vsel %vm3898_vm4, %v12560_v49, 0.0  ;;  %v13913_v19 = vld [vmem:[#allocation86_spill] sm:$0xff] }
 0x590   : > { %10470 = vpow2.f32 %v4816_v47  ;;  %v4757_v11 = vsub.f32 %v13908_v31, %v4725_v26  ;;  %5125 = vadd.xlane.f32.xlu0 %v5124_v23  ;;  %v4752_v14 = vsub.f32 %v13913_v19, %v12530_v21 }
 0x591   : > { %v12563_v44 = vpop.eup %10458  ;;  %10472 = vpow2.f32 %v4798_v13  ;;  %v4806_v13 = vmul.f32 1.442695, %v4750_v62 }
 0x592   : > { %13909 = vst [vmem:[#allocation80_spill] sm:$0xff] %v12563_v44  ;;  %v4820_v55 = vmul.f32 1.442695, %v4757_v11  ;;  %v5163_v0 = vsel %vm3898_vm4, %v12563_v44, 0.0  ;;  %v12571_v47 = vpop.eup %10460  ;;  %v12575_v26 = vpop.xlane.xlu1 %5418 }
 0x593   : > { %5164 = vadd.xlane.f32.xlu1 %v5163_v0  ;;  %13911 = vst [vmem:[#allocation87_spill] sm:$0xff] %v12571_v47  ;;  %v5136_v11 = vsel %vm3898_vm4, %v12571_v47, 0.0 }
 0x594   : > { %10474 = vpow2.f32 %v4820_v55  ;;  %5131 = vadd.xlane.f32.xlu0 %v5130_v50  ;;  %v4810_v50 = vmul.f32 1.442695, %v4752_v14 }
 0x595   : > { %v12573_v23 = vpop.eup %10462  ;;  %10476 = vpow2.f32 %v4802_v2  ;;  %v4754_v2 = vsub.f32 %v13916_v28, %v4710_v57 }
 0x596   : > { %13912 = vst [vmem:[#allocation82_spill] sm:$0xff] %v12573_v23  ;;  %v5169_v31 = vsel %vm3898_vm4, %v12573_v23, 0.0  ;;  %v12583_v0 = vpop.eup %10464  ;;  %10478 = vpow2.f32 %v4806_v13  ;;  %v12590_v62 = vpop.xlane.xlu1 %5424  ;;  %v13919_v13 = vld [vmem:[#allocation90_spill] sm:$0xff] }
 0x597   : > { %5170 = vadd.xlane.f32.xlu1 %v5169_v31  ;;  %13914 = vst [vmem:[#allocation89_spill] sm:$0xff] %v12583_v0  ;;  %v5142_v21 = vsel %vm3898_vm4, %v12583_v0, 0.0  ;;  %10480 = vpow2.f32 %v4810_v50  ;;  %v4814_v45 = vmul.f32 1.442695, %v4754_v2  ;;  %v4756_v14 = vsub.f32 %v13919_v13, %v4721_v63 }
 0x598   : > { %5137 = vadd.xlane.f32.xlu0 %v5136_v11 }
 0x599   : > { %v12585_v55 = vpop.eup %10466  ;;  %10482 = vpow2.f32 %v4814_v45  ;;  %v4818_v52 = vmul.f32 1.442695, %v4756_v14 }
 0x59a   : > { %13915 = vst [vmem:[#allocation84_spill] sm:$0xff] %v12585_v55  ;;  %v5175_v18 = vsel %vm3898_vm4, %v12585_v55, 0.0  ;;  %v12594_v31 = vpop.eup %10468  ;;  %v12607_v38 = vpop.xlane.xlu1 %5430 }
 0x59b   : > { %5176 = vadd.xlane.f32.xlu1 %v5175_v18  ;;  %13917 = vst [vmem:[#allocation86_spill] sm:$0xff] %v12594_v31  ;;  %v5148_v28 = vsel %vm3898_vm4, %v12594_v31, 0.0  ;;  %10484 = vpow2.f32 %v4818_v52 }
 0x59c   : > { %5143 = vadd.xlane.f32.xlu0 %v5142_v21 }
 0x59d   : > { %v12596_v19 = vpop.eup %10470 }
 0x59e   : > { %13918 = vst [vmem:[#allocation88_spill] sm:$0xff] %v12596_v19  ;;  %v5181_v11 = vsel %vm3898_vm4, %v12596_v19, 0.0  ;;  %v12603_v57 = vpop.eup %10472  ;;  %v12615_v2 = vpop.xlane.xlu1 %5436 }
 0x59f   : > { %5182 = vadd.xlane.f32.xlu1 %v5181_v11  ;;  %13920 = vst [vmem:[#allocation90_spill] sm:$0xff] %v12603_v57  ;;  %v5154_v63 = vsel %vm3898_vm4, %v12603_v57, 0.0 }
 0x5a0   : > { %5149 = vadd.xlane.f32.xlu0 %v5148_v28 }
 0x5a1   : > { %v12605_v18 = vpop.eup %10474 }
 0x5a2   : > { %13921 = vst [vmem:[#allocation126_spill] sm:$0xff] %v12605_v18  ;;  %v5187_v21 = vsel %vm3898_vm4, %v12605_v18, 0.0  ;;  %v12613_v50 = vpop.eup %10476  ;;  %v12625_v28 = vpop.xlane.xlu1 %5442 }
 0x5a3   : > { %5188 = vadd.xlane.f32.xlu1 %v5187_v21  ;;  %13922 = vst [vmem:[#allocation127_spill] sm:$0xff] %v12613_v50  ;;  %v5160_v11 = vsel %vm3898_vm4, %v12613_v50, 0.0  ;;  %v12619_v13 = vpop.eup %10478 }
 0x5a4   : > { %5155 = vadd.xlane.f32.xlu0 %v5154_v63  ;;  %13923 = vst [vmem:[#allocation128_spill] sm:$0xff] %v12619_v13  ;;  %v5166_v45 = vsel %vm3898_vm4, %v12619_v13, 0.0  ;;  %v12623_v14 = vpop.eup %10480 }
 0x5a5   : > { %13924 = vst [vmem:[#allocation129_spill] sm:$0xff] %v12623_v14  ;;  %v5172_v21 = vsel %vm3898_vm4, %v12623_v14, 0.0 }
 0x5a6   : > { %v12629_v52 = vpop.eup %10482  ;;  %v12631_v63 = vpop.xlane.xlu1 %5448 }
 0x5a7   : > { %13925 = vst [vmem:[#allocation130_spill] sm:$0xff] %v12629_v52  ;;  %v5178_v37 = vsel %vm3898_vm4, %v12629_v52, 0.0 }
 0x5a8   : > { %5161 = vadd.xlane.f32.xlu0 %v5160_v11  ;;  %v12635_v11 = vpop.eup %10484 }
 0x5a9   : > { %13926 = vst [vmem:[#allocation131_spill] sm:$0xff] %v12635_v11  ;;  %v5184_v5 = vsel %vm3898_vm4, %v12635_v11, 0.0 }
 0x5ac   : > { %5167 = vadd.xlane.f32.xlu0 %v5166_v45  ;;  %v12639_v45 = vpop.xlane.xlu1 %5454 }
 0x5b0   : > { %5173 = vadd.xlane.f32.xlu0 %v5172_v21  ;;  %v12641_v6 = vpop.xlane.xlu1 %5460 }
 0x5b4   : > { %5179 = vadd.xlane.f32.xlu0 %v5178_v37  ;;  %v12643_v43 = vpop.xlane.xlu1 %5466 }
 0x5b8   : > { %5185 = vadd.xlane.f32.xlu0 %v5184_v5  ;;  %v12649_v3 = vpop.xlane.xlu1 %5472 }
 0x5bc   : > { %v12653_v40 = vpop.xlane.xlu1 %5478 }
 0x5c0   : > { %v12659_v5 = vpop.xlane.xlu1 %5484 }
 0x5c4   : > { %v12663_v48 = vpop.xlane.xlu1 %5490 }
 0x5c5   : > { %v12645_v33 = vpop.xlane.xlu0 %5415 }
 0x5c8   : > { %v12669_v51 = vpop.xlane.xlu1 %5496 }
 0x5c9   : > { %v12647_v21 = vpop.xlane.xlu0 %5421 }
 0x5cc   : > { %v12673_v61 = vpop.xlane.xlu1 %5502 }
 0x5cd   : > { %v12651_v25 = vpop.xlane.xlu0 %5427 }
 0x5d0   : > { %v12679_v20 = vpop.xlane.xlu1 %5508 }
 0x5d1   : > { %v12655_v37 = vpop.xlane.xlu0 %5433 }
 0x5d4   : > { %v5096_v19 = vpop.xlane.xlu1 %5095 }
 0x5d5   : > { %v12657_v35 = vpop.xlane.xlu0 %5439  ;;  %v5225_v54 = vrot.slane %v5096_v19, %v11983_v53 }
 0x5d9   : > { %v12661_v16 = vpop.xlane.xlu0 %5445 }
 0x5dc   : > { %v5105_v52 = vpop.xlane.xlu1 %5104 }
 0x5dd   : > { %v12665_v10 = vpop.xlane.xlu0 %5451  ;;  %v5238_v12 = vrot.slane %v5105_v52, %v11986_v29 }
 0x5e1   : > { %v12667_v27 = vpop.xlane.xlu0 %5457 }
 0x5e4   : > { %v5111_v23 = vpop.xlane.xlu1 %5110 }
 0x5e5   : > { %v12671_v46 = vpop.xlane.xlu0 %5463  ;;  %v5247_v36 = vrot.slane %v5111_v23, %v11986_v29 }
 0x5e9   : > { %v12675_v60 = vpop.xlane.xlu0 %5469 }
 0x5ec   : > { %v5117_v13 = vpop.xlane.xlu1 %5116 }
 0x5ed   : > { %v12677_v24 = vpop.xlane.xlu0 %5475  ;;  %v5256_v56 = vrot.slane %v5117_v13, %v11986_v29 }
 0x5f1   : > { %v12681_v18 = vpop.xlane.xlu0 %5481 }
 0x5f4   : > { %v5123_v17 = vpop.xlane.xlu1 %5122 }
 0x5f5   : > { %v12683_v11 = vpop.xlane.xlu0 %5487  ;;  %v5265_v34 = vrot.slane %v5123_v17, %v11986_v29 }
 0x5f8   : > { %v5129_v57 = vpop.xlane.xlu1 %5128 }
 0x5f9   : > { %v12685_v55 = vpop.xlane.xlu0 %5493 }
 0x5fd   : > { %v12687_v14 = vpop.xlane.xlu0 %5499 }
 0x600   : > { %v5135_v39 = vpop.xlane.xlu1 %5134 }
 0x601   : > { %v12689_v44 = vpop.xlane.xlu0 %5505  ;;  %v5283_v19 = vrot.slane %v5135_v39, %v11986_v29 }
 0x605   : > { %v5099_v50 = vpop.xlane.xlu0 %5098 }
 0x606   : > { %v5229_v30 = vrot.slane %v5099_v50, %v11986_v29 }
 0x608   : > { %v5141_v0 = vpop.xlane.xlu1 %5140  ;;  %v5230_v23 = vsel %vm4036_vm6, %v5229_v30, %v5225_v54 }
 0x609   : > { %v5102_v8 = vpop.xlane.xlu0 %5101 }
 0x60a   : > { %v5234_v49 = vrot.slane %v5102_v8, %v11983_v53 }
 0x60c   : > { %v5239_v8 = vsel %vm4036_vm6, %v5238_v12, %v5234_v49 }
 0x60d   : > { %v5108_v31 = vpop.xlane.xlu0 %5107  ;;  %v5366_v13 = vsel %vm4173_vm7, %v5239_v8, %v5230_v23 }
 0x60e   : > { %v5243_v7 = vrot.slane %v5108_v31, %v11983_v53 }
 0x610   : > { %v12691_v59 = vpop.xlane.xlu1 %5146  ;;  %v5248_v52 = vsel %vm4036_vm6, %v5247_v36, %v5243_v7 }
 0x611   : > { %v5114_v22 = vpop.xlane.xlu0 %5113 }
 0x612   : > { %v5252_v1 = vrot.slane %v5114_v22, %v11983_v53  ;;  %v5274_v22 = vrot.slane %v5129_v57, %v11986_v29 }
 0x614   : > { %v5153_v15 = vpop.xlane.xlu1 %5152  ;;  %v5257_v9 = vsel %vm4036_vm6, %v5256_v56, %v5252_v1  ;;  %v5292_v1 = vrot.slane %v5141_v0, %v11986_v29 }
 0x615   : > { %v5120_v47 = vpop.xlane.xlu0 %5119 }
 0x616   : > { %v5261_v32 = vrot.slane %v5120_v47, %v11983_v53 }
 0x618   : > { %v5266_v12 = vsel %vm4036_vm6, %v5265_v34, %v5261_v32  ;;  %v5159_v7 = vpop.xlane.xlu1 %5158 }
 0x619   : > { %v5126_v58 = vpop.xlane.xlu0 %5125 }
 0x61a   : > { %v5270_v31 = vrot.slane %v5126_v58, %v11983_v53  ;;  %v5367_v58 = vsel %vm4175_vm8, %v5248_v52, %v5366_v13 }
 0x61b   : > { %v5368_v36 = vsel %vm4177_vm9, %v5257_v9, %v5367_v58  ;;  %v5310_v58 = vrot.slane %v5153_v15, %v11986_v29 }
 0x61c   : > { %v5275_v17 = vsel %vm4036_vm6, %v5274_v22, %v5270_v31  ;;  %v5369_v39 = vsel %vm4179_vm10, %v5266_v12, %v5368_v36  ;;  %v5165_v9 = vpop.xlane.xlu1 %5164 }
 0x61d   : > { %v5132_v50 = vpop.xlane.xlu0 %5131  ;;  %v5370_v30 = vsel %vm4181_vm11, %v5275_v17, %v5369_v39 }
 0x61e   : > { %v5279_v47 = vrot.slane %v5132_v50, %v11983_v53 }
 0x620   : > { %v5284_v49 = vsel %vm4036_vm6, %v5283_v19, %v5279_v47  ;;  %v5171_v52 = vpop.xlane.xlu1 %5170 }
 0x621   : > { %v5138_v54 = vpop.xlane.xlu0 %5137  ;;  %v5371_v32 = vsel %vm4183_vm12, %v5284_v49, %v5370_v30  ;;  %v5319_v49 = vrot.slane %v5159_v7, %v11986_v29 }
 0x622   : > { %v5288_v56 = vrot.slane %v5138_v54, %v11983_v53 }
 0x624   : > { %v5293_v34 = vsel %vm4036_vm6, %v5292_v1, %v5288_v56  ;;  %v5177_v0 = vpop.xlane.xlu1 %5176  ;;  %v5301_v1 = vrot.slane %v12691_v59, %v11986_v29  ;;  %v5328_v56 = vrot.slane %v5165_v9, %v11986_v29 }
 0x625   : > { %v5144_v57 = vpop.xlane.xlu0 %5143  ;;  %v5372_v8 = vsel %vm4185_vm13, %v5293_v34, %v5371_v32  ;;  %v5337_v34 = vrot.slane %v5171_v52, %v11986_v29 }
 0x626   : > { %5382 = vxpose.xlu0.b32.start [1/2] (short) (narrow) %v5372_v8, 16  ;;  %v5297_v17 = vrot.slane %v5144_v57, %v11983_v53  ;;  %v5346_v57 = vrot.slane %v5177_v0, %v11986_v29 }
 0x628   : > { %v5183_v19 = vpop.xlane.xlu1 %5182  ;;  %v5302_v7 = vsel %vm4036_vm6, %v5301_v1, %v5297_v17  ;;  %v5554_v1 = vrot.slane %v12647_v21, %v11983_v53  ;;  %v5549_v21 = vrot.slane %v12575_v26, %v11986_v29 }
 0x629   : > { %v5150_v31 = vpop.xlane.xlu0 %5149  ;;  %v5355_v59 = vrot.slane %v5183_v19, %v11986_v29 }
 0x62a   : > { %v5306_v47 = vrot.slane %v5150_v31, %v11983_v53 }
 0x62c   : > { %v5311_v39 = vsel %vm4036_vm6, %v5310_v58, %v5306_v47 }
 0x62d   : > { %v5156_v50 = vpop.xlane.xlu0 %5155  ;;  %v5373_v9 = vsel %vm4173_vm7, %v5311_v39, %v5302_v7  ;;  %v5558_v39 = vrot.slane %v12590_v62, %v11986_v29  ;;  %v5608_v7 = vrot.slane %v12667_v27, %v11983_v53 }
 0x62e   : > { %v5315_v13 = vrot.slane %v5156_v50, %v11983_v53  ;;  %v5189_v50 = vpop.xlane.xlu1 %5188 }
 0x62f   : > { %v5559_v62 = vsel %vm4036_vm6, %v5558_v39, %v5554_v1  ;;  %v5657_v1 = vrot.slane %v12663_v48, %v11986_v29  ;;  %v5675_v39 = vrot.slane %v12673_v61, %v11986_v29 }
 0x630   : > { %v5320_v15 = vsel %vm4036_vm6, %v5319_v49, %v5315_v13 }
 0x631   : > { %v5162_v22 = vpop.xlane.xlu0 %5161  ;;  %v5374_v52 = vsel %vm4175_vm8, %v5320_v15, %v5373_v9  ;;  %v5567_v15 = vrot.slane %v12607_v38, %v11986_v29  ;;  %v5599_v38 = vrot.slane %v12665_v10, %v11983_v53  ;;  %v5612_v10 = vrot.slane %v12641_v6, %v11986_v29 }
 0x632   : > { %v5324_v36 = vrot.slane %v5162_v22, %v11983_v53 }
 0x633   : > { %v5613_v27 = vsel %vm4036_vm6, %v5612_v10, %v5608_v7 }
 0x634   : > { %v5329_v8 = vsel %vm4036_vm6, %v5328_v56, %v5324_v36  ;;  %v5563_v56 = vrot.slane %v12651_v25, %v11983_v53  ;;  %v5576_v25 = vrot.slane %v12615_v2, %v11986_v29 }
 0x635   : > { %v5168_v23 = vpop.xlane.xlu0 %5167  ;;  %v5375_v47 = vsel %vm4177_vm9, %v5329_v8, %v5374_v52 }
 0x636   : > { %v5333_v54 = vrot.slane %v5168_v23, %v11983_v53 }
 0x638   : > { %v5338_v22 = vsel %vm4036_vm6, %v5337_v34, %v5333_v54  ;;  %v5572_v34 = vrot.slane %v12655_v37, %v11983_v53  ;;  %v5585_v37 = vrot.slane %v12625_v28, %v11986_v29 }
 0x639   : > { %v5174_v12 = vpop.xlane.xlu0 %5173  ;;  %v5376_v58 = vsel %vm4179_vm10, %v5338_v22, %v5375_v47  ;;  %v5626_v47 = vrot.slane %v12675_v60, %v11983_v53 }
 0x63a   : > { %v5342_v30 = vrot.slane %v5174_v12, %v11983_v53  ;;  %v5364_v12 = vrot.slane %v5189_v50, %v11986_v29  ;;  %v5577_v2 = vsel %vm4036_vm6, %v5576_v25, %v5572_v34  ;;  %v13929_v25 = vld [vmem:[#allocation58_spill] sm:$0xff] }
 0x63c   : > { %v5347_v23 = vsel %vm4036_vm6, %v5346_v57, %v5342_v30  ;;  %v5545_v30 = vrot.slane %v12645_v33, %v11983_v53  ;;  %v5590_v33 = vrot.slane %v12661_v16, %v11983_v53  ;;  %v5568_v57 = vsel %vm4036_vm6, %v5567_v15, %v5563_v56 }
 0x63d   : > { %v5180_v32 = vpop.xlane.xlu0 %5179  ;;  %v5377_v17 = vsel %vm4181_vm11, %v5347_v23, %v5376_v58  ;;  %v5603_v16 = vrot.slane %v12639_v45, %v11986_v29  ;;  %v5617_v58 = vrot.slane %v12671_v46, %v11983_v53  ;;  %v5648_v46 = vrot.slane %v12659_v5, %v11986_v29 }
 0x63e   : > { %v5351_v31 = vrot.slane %v5180_v32, %v11983_v53  ;;  %v5581_v32 = vrot.slane %v12657_v35, %v11983_v53  ;;  %v5594_v35 = vrot.slane %v12631_v63, %v11986_v29  ;;  %v5550_v26 = vsel %vm4036_vm6, %v5549_v21, %v5545_v30 }
 0x63f   : > { %v5686_v28 = vsel %vm4173_vm7, %v5559_v62, %v5550_v26  ;;  %v5604_v9 = vsel %vm4036_vm6, %v5603_v16, %v5599_v38  ;;  %v13930_v38 = vld [vmem:[#allocation106_spill] sm:$0xff]  ;;  %v13931_v26 = vld [vmem:[#allocation105_spill] sm:$0xff] }
 0x640   : > { %v5356_v0 = vsel %vm4036_vm6, %v5355_v59, %v5351_v31  ;;  %v5586_v8 = vsel %vm4036_vm6, %v5585_v37, %v5581_v32  ;;  %v5687_v31 = vsel %vm4175_vm8, %v5568_v57, %v5686_v28  ;;  %v5595_v63 = vsel %vm4036_vm6, %v5594_v35, %v5590_v33  ;;  %v13928_v32 = vld [vmem:[#allocation104_spill] sm:$0xff] }
 0x641   : > { %v5186_v13 = vpop.xlane.xlu0 %5185  ;;  %v5378_v49 = vsel %vm4183_vm12, %v5356_v0, %v5377_v17  ;;  %v5688_v59 = vsel %vm4177_vm9, %v5577_v2, %v5687_v31  ;;  %v13927_v17 = vld [vmem:[#allocation59_spill] sm:$0xff] }
 0x642   : > { %v5360_v19 = vrot.slane %v5186_v13, %v11983_v53  ;;  %v5689_v50 = vsel %vm4179_vm10, %v5586_v8, %v5688_v59  ;;  %v5630_v13 = vrot.slane %v12649_v3, %v11986_v29  ;;  %v5639_v3 = vrot.slane %v12653_v40, %v11986_v29 }
 0x643   : > { %v5690_v45 = vsel %vm4181_vm11, %v5595_v63, %v5689_v50  ;;  %v5671_v40 = vrot.slane %v12687_v14, %v11983_v53  ;;  %v5684_v14 = vrot.slane %v12679_v20, %v11986_v29 }
 0x644   : > { %v5365_v36 = vsel %vm4036_vm6, %v5364_v12, %v5360_v19  ;;  %v5691_v22 = vsel %vm4183_vm12, %v5604_v9, %v5690_v45  ;;  %v5635_v12 = vrot.slane %v12677_v24, %v11983_v53  ;;  %v5644_v19 = vrot.slane %v12681_v18, %v11983_v53 }
 0x645   : > { %v5379_v54 = vsel %vm4185_vm13, %v5365_v36, %v5378_v49  ;;  %v5692_v52 = vsel %vm4185_vm13, %v5613_v27, %v5691_v22  ;;  %v5621_v49 = vrot.slane %v12643_v43, %v11986_v29  ;;  %v5653_v24 = vrot.slane %v12683_v11, %v11983_v53 }
 0x646   : > { %5383 = vxpose.xlu0.b32.end [2/2] (short) (narrow) %v5379_v54, 16  ;;  %v5631_v18 = vsel %vm4036_vm6, %v5630_v13, %v5626_v47  ;;  %v5662_v54 = vrot.slane %v12685_v55, %v11983_v53  ;;  %v5640_v43 = vsel %vm4036_vm6, %v5639_v3, %v5635_v12  ;;  %v5666_v11 = vrot.slane %v12669_v51, %v11986_v29 }
 0x647   : > { %v5622_v5 = vsel %vm4036_vm6, %v5621_v49, %v5617_v58  ;;  %v5649_v56 = vsel %vm4036_vm6, %v5648_v46, %v5644_v19  ;;  %v5680_v55 = vrot.slane %v12689_v44, %v11983_v53  ;;  %v5658_v30 = vsel %vm4036_vm6, %v5657_v1, %v5653_v24 }
 0x648   : > { %v5693_v48 = vsel %vm4173_vm7, %v5631_v18, %v5622_v5  ;;  %v5667_v51 = vsel %vm4036_vm6, %v5666_v11, %v5662_v54  ;;  %v5676_v53 = vsel %vm4036_vm6, %v5675_v39, %v5671_v40 }
 0x649   : > { %v5694_v34 = vsel %vm4175_vm8, %v5640_v43, %v5693_v48  ;;  %v5685_v44 = vsel %vm4036_vm6, %v5684_v14, %v5680_v55  ;;  %v13933_v55 = vld [vmem:[#allocation22_spill] sm:$0xff] }
 0x64a   : > { %v5695_v15 = vsel %vm4177_vm9, %v5649_v56, %v5694_v34  ;;  %v13932_v56 = vld [vmem:[#allocation25_spill] sm:$0xff] }
 0x64b   : > { %v5696_v61 = vsel %vm4179_vm10, %v5658_v30, %v5695_v15  ;;  %v13934_v34 = vld [vmem:[#allocation29_spill] sm:$0xff] }
 0x64c   : > { %v5697_v20 = vsel %vm4181_vm11, %v5667_v51, %v5696_v61  ;;  %v13935_v51 = vld [vmem:[#allocation27_spill] sm:$0xff] }
 0x64d   : > { %v5698_v33 = vsel %vm4183_vm12, %v5676_v53, %v5697_v20  ;;  %v13936_v53 = vld [vmem:[#allocation35_spill] sm:$0xff]  ;;  %v13938_v20 = vld [vmem:[#allocation40_spill] sm:$0xff] }
 0x64e   : > { %v5699_v37 = vsel %vm4185_vm13, %v5685_v44, %v5698_v33  ;;  %v13937_v44 = vld [vmem:[#allocation32_spill] sm:$0xff] }
 0x6be   : > { %v5398_v23 = vpop.trf.xlu0 }
 0x6bf   : > { %v5702_v6 = vadd.f32 %v5692_v52, %v5398_v23 }
 0x6c1   : > { %10486 = vrcp.f32 %v5702_v6 }
 0x6c2   : > { %v5399_v62 = vpop.trf.xlu0 }
 0x6c3   : > { %v5703_v57 = vadd.f32 %v5699_v37, %v5399_v62  ;;  %v13939_v62 = vld [vmem:[#allocation37_spill] sm:$0xff] }
 0x6c5   : > { %10488 = vrcp.f32 %v5703_v57 }
 0x6ce   : > { %v12805_v0 = vpop.eup %10486 }
 0x6cf   : > { %v5960_v36 = vrot.slane %v12805_v0, %v13927_v17  ;;  %v5949_v60 = vrot.slane %v12805_v0, %v12107_v42  ;;  %v5982_v21 = vrot.slane %v12805_v0, %v13928_v32  ;;  %v5971_v29 = vrot.slane %v12805_v0, %v13929_v25 }
 0x6d0   : > { %v6004_v35 = vrot.slane %v12805_v0, %v13930_v38  ;;  %v5993_v2 = vrot.slane %v12805_v0, %v13931_v26  ;;  %v6026_v7 = vrot.slane %v12805_v0, %v12184_v41  ;;  %v6015_v16 = vrot.slane %v12805_v0, %v12156_v4 }
 0x6d1   : > { %5962 = vbcast.lane.b32.xlu0 %v5960_v36, 256  ;;  %5951 = vbcast.lane.b32.xlu1 %v5949_v60, 256 }
 0x6d2   : > { %v12868_v28 = vpop.eup %10488 }
 0x6d3   : > { %v6048_v8 = vrot.slane %v12868_v28, %v13927_v17  ;;  %v6070_v10 = vrot.slane %v12868_v28, %v13928_v32  ;;  %v6037_v31 = vrot.slane %v12868_v28, %v12107_v42  ;;  %v6059_v63 = vrot.slane %v12868_v28, %v13929_v25 }
 0x6d4   : > { %v6092_v39 = vrot.slane %v12868_v28, %v13930_v38  ;;  %v6081_v48 = vrot.slane %v12868_v28, %v13931_v26  ;;  %v6114_v61 = vrot.slane %v12868_v28, %v12184_v41 }
 0x6d5   : > { %5966 = vbcast.lane.b32.xlu0 %v5960_v36, 264  ;;  %5955 = vbcast.lane.b32.xlu1 %v5949_v60, 264 }
 0x6d9   : > { %5984 = vbcast.lane.b32.xlu0 %v5982_v21, 256  ;;  %5973 = vbcast.lane.b32.xlu1 %v5971_v29, 256 }
 0x6dd   : > { %5988 = vbcast.lane.b32.xlu0 %v5982_v21, 264  ;;  %5977 = vbcast.lane.b32.xlu1 %v5971_v29, 264 }
 0x6e1   : > { %6006 = vbcast.lane.b32.xlu0 %v6004_v35, 256  ;;  %5995 = vbcast.lane.b32.xlu1 %v5993_v2, 256 }
 0x6e5   : > { %6010 = vbcast.lane.b32.xlu0 %v6004_v35, 264  ;;  %5999 = vbcast.lane.b32.xlu1 %v5993_v2, 264  ;;  %v13940_v2 = vld [vmem:[#allocation91_spill] sm:$0xff] }
 0x6e9   : > { %6028 = vbcast.lane.b32.xlu0 %v6026_v7, 256  ;;  %6017 = vbcast.lane.b32.xlu1 %v6015_v16, 256 }
 0x6ed   : > { %6032 = vbcast.lane.b32.xlu0 %v6026_v7, 264  ;;  %6021 = vbcast.lane.b32.xlu1 %v6015_v16, 264  ;;  %v13941_v16 = vld [vmem:[#allocation17_spill] sm:$0xff] }
 0x6f1   : > { %6050 = vbcast.lane.b32.xlu0 %v6048_v8, 256 }
 0x6f5   : > { %6054 = vbcast.lane.b32.xlu0 %v6048_v8, 264 }
 0x6f9   : > { %6072 = vbcast.lane.b32.xlu0 %v6070_v10, 256 }
 0x6fd   : > { %6076 = vbcast.lane.b32.xlu0 %v6070_v10, 264 }
 0x716   : > { %5706 = vxpose.xlu1.b32.start [1/2] (short) (narrow) %v12805_v0, 16 }
 0x71a   : > { %5707 = vxpose.xlu1.b32.end [2/2] (short) (narrow) %v12868_v28, 16 }
 0x738   : > { %6039 = vbcast.lane.b32.xlu1 %v6037_v31, 256 }
 0x73c   : > { %6043 = vbcast.lane.b32.xlu1 %v6037_v31, 264  ;;  %v13942_v31 = vld [vmem:[#allocation75_spill] sm:$0xff] }
 0x740   : > { %6061 = vbcast.lane.b32.xlu1 %v6059_v63, 256 }
 0x743   : > { %v12880_v59 = vpop.permute.xlu1 %5951  ;;  %v12908_v54 = vpop.permute.xlu0 %5962 }
 0x744   : > { %6065 = vbcast.lane.b32.xlu1 %v6059_v63, 264 }
 0x747   : > { %v12882_v9 = vpop.permute.xlu1 %5955 }
 0x74b   : > { %v12884_v27 = vpop.permute.xlu1 %5973 }
 0x74f   : > { %v12886_v50 = vpop.permute.xlu1 %5977 }
 0x753   : > { %v12888_v45 = vpop.permute.xlu1 %5995 }
 0x757   : > { %v12890_v22 = vpop.permute.xlu1 %5999 }
 0x75b   : > { %v12892_v52 = vpop.permute.xlu1 %6017 }
 0x75f   : > { %v12894_v23 = vpop.permute.xlu1 %6021 }
 0x792   : > { %v5722_v6 = vpop.trf.xlu1 }
 0x793   : > { %v5752_v47 = vrot.slane %v5722_v6, %v13927_v17  ;;  %v5741_v0 = vrot.slane %v5722_v6, %v12107_v42  ;;  %v5774_v13 = vrot.slane %v5722_v6, %v13928_v32  ;;  %v5763_v12 = vrot.slane %v5722_v6, %v13929_v25 }
 0x794   : > { %v5796_v58 = vrot.slane %v5722_v6, %v13930_v38  ;;  %v5785_v19 = vrot.slane %v5722_v6, %v13931_v26  ;;  %v5818_v36 = vrot.slane %v5722_v6, %v12184_v41  ;;  %v5807_v60 = vrot.slane %v5722_v6, %v12156_v4  ;;  %v13943_v6 = vld [vmem:[#allocation96_spill] sm:$0xff] }
 0x795   : > { %5754 = vbcast.lane.b32.xlu0 %v5752_v47, 256  ;;  %5743 = vbcast.lane.b32.xlu1 %v5741_v0, 256 }
 0x796   : > { %v5723_v49 = vpop.trf.xlu1 }
 0x797   : > { %v5840_v3 = vrot.slane %v5723_v49, %v13927_v17  ;;  %v5829_v24 = vrot.slane %v5723_v49, %v12107_v42  ;;  %v5862_v46 = vrot.slane %v5723_v49, %v13928_v32  ;;  %v5851_v18 = vrot.slane %v5723_v49, %v13929_v25  ;;  %v12912_v42 = vpop.permute.xlu0 %5966 }
 0x798   : > { %v5884_v1 = vrot.slane %v5723_v49, %v13930_v38  ;;  %v5873_v17 = vrot.slane %v5723_v49, %v13931_v26  ;;  %v5906_v43 = vrot.slane %v5723_v49, %v12184_v41  ;;  %v5895_v40 = vrot.slane %v5723_v49, %v12156_v4  ;;  %v13948_v49 = vld [vmem:[#allocation18_spill] sm:$0xff] }
 0x799   : > { %5758 = vbcast.lane.b32.xlu0 %v5752_v47, 264  ;;  %5747 = vbcast.lane.b32.xlu1 %v5741_v0, 264  ;;  %v6103_v32 = vrot.slane %v12868_v28, %v12156_v4  ;;  %v13944_v0 = vld [vmem:[#allocation11_spill] sm:$0xff] }
 0x79b   : > { %v12916_v11 = vpop.permute.xlu0 %5984 }
 0x79d   : > { %5776 = vbcast.lane.b32.xlu0 %v5774_v13, 256  ;;  %5765 = vbcast.lane.b32.xlu1 %v5763_v12, 256 }
 0x79f   : > { %v12918_v5 = vpop.permute.xlu0 %5988 }
 0x7a1   : > { %5780 = vbcast.lane.b32.xlu0 %v5774_v13, 264  ;;  %5769 = vbcast.lane.b32.xlu1 %v5763_v12, 264  ;;  %v13945_v13 = vld [vmem:[#allocation15_spill] sm:$0xff] }
 0x7a3   : > { %v12928_v30 = vpop.permute.xlu0 %6006 }
 0x7a5   : > { %5798 = vbcast.lane.b32.xlu0 %v5796_v58, 256  ;;  %5787 = vbcast.lane.b32.xlu1 %v5785_v19, 256 }
 0x7a7   : > { %v12930_v14 = vpop.permute.xlu0 %6010 }
 0x7a9   : > { %5802 = vbcast.lane.b32.xlu0 %v5796_v58, 264  ;;  %5791 = vbcast.lane.b32.xlu1 %v5785_v19, 264  ;;  %v13946_v19 = vld [vmem:[#allocation13_spill] sm:$0xff] }
 0x7aa   : > { %v12950_v29 = vpop.permute.xlu1 %6039 }
 0x7ab   : > { %v12936_v15 = vpop.permute.xlu0 %6028 }
 0x7ad   : > { %5820 = vbcast.lane.b32.xlu0 %v5818_v36, 256  ;;  %5809 = vbcast.lane.b32.xlu1 %v5807_v60, 256 }
 0x7ae   : > { %v12958_v33 = vpop.permute.xlu1 %6043 }
 0x7af   : > { %v12946_v21 = vpop.permute.xlu0 %6032 }
 0x7b1   : > { %5824 = vbcast.lane.b32.xlu0 %v5818_v36, 264  ;;  %5813 = vbcast.lane.b32.xlu1 %v5807_v60, 264  ;;  %v13947_v36 = vld [vmem:[#allocation4_spill] sm:$0xff] }
 0x7b2   : > { %v12962_v37 = vpop.permute.xlu1 %6061 }
 0x7b3   : > { %v12948_v25 = vpop.permute.xlu0 %6050 }
 0x7b5   : > { %5842 = vbcast.lane.b32.xlu0 %v5840_v3, 256  ;;  %5831 = vbcast.lane.b32.xlu1 %v5829_v24, 256 }
 0x7b6   : > { %v12966_v38 = vpop.permute.xlu1 %6065 }
 0x7b7   : > { %v12956_v41 = vpop.permute.xlu0 %6054 }
 0x7b9   : > { %5846 = vbcast.lane.b32.xlu0 %v5840_v3, 264  ;;  %5835 = vbcast.lane.b32.xlu1 %v5829_v24, 264  ;;  %v13949_v3 = vld [vmem:[#allocation79_spill] sm:$0xff] }
 0x7bb   : > { %v12960_v4 = vpop.permute.xlu0 %6072 }
 0x7bd   : > { %5864 = vbcast.lane.b32.xlu0 %v5862_v46, 256  ;;  %5853 = vbcast.lane.b32.xlu1 %v5851_v18, 256 }
 0x7bf   : > { %v12964_v57 = vpop.permute.xlu0 %6076 }
 0x7c1   : > { %5868 = vbcast.lane.b32.xlu0 %v5862_v46, 264  ;;  %5857 = vbcast.lane.b32.xlu1 %v5851_v18, 264  ;;  %v13950_v46 = vld [vmem:[#allocation20_spill] sm:$0xff]  ;;  %v13951_v18 = vld [vmem:[#allocation26_spill] sm:$0xff] }
 0x7c5   : > { %5886 = vbcast.lane.b32.xlu0 %v5884_v1, 256  ;;  %5875 = vbcast.lane.b32.xlu1 %v5873_v17, 256 }
 0x7c9   : > { %5890 = vbcast.lane.b32.xlu0 %v5884_v1, 264  ;;  %5879 = vbcast.lane.b32.xlu1 %v5873_v17, 264 }
 0x7cd   : > { %5908 = vbcast.lane.b32.xlu0 %v5906_v43, 256  ;;  %5897 = vbcast.lane.b32.xlu1 %v5895_v40, 256 }
 0x7d1   : > { %5912 = vbcast.lane.b32.xlu0 %v5906_v43, 264  ;;  %5901 = vbcast.lane.b32.xlu1 %v5895_v40, 264  ;;  %v13952_v43 = vld [vmem:[#allocation98_spill] sm:$0xff] }
 0x7d5   : > { %8679 = vrot.lane.b32.xlu0 %v13932_v56, %s10531_s12  ;;  %8592 = vrot.lane.b32.xlu1 %v13933_v55, %s10531_s12  ;;  %v13953_v56 = vld [vmem:[#allocation60_spill] sm:$0xff] }
 0x7d9   : > { %6094 = vbcast.lane.b32.xlu0 %v6092_v39, 256  ;;  %6083 = vbcast.lane.b32.xlu1 %v6081_v48, 256 }
 0x7dd   : > { %6098 = vbcast.lane.b32.xlu0 %v6092_v39, 264  ;;  %6087 = vbcast.lane.b32.xlu1 %v6081_v48, 264 }
 0x7e1   : > { %8677 = vrot.lane.b32.xlu0 %v13934_v34, %s10531_s12  ;;  %8590 = vrot.lane.b32.xlu1 %v13935_v51, %s10531_s12  ;;  %v13954_v34 = vld [vmem:[#allocation23_spill] sm:$0xff]  ;;  %v13955_v51 = vld [vmem:[#allocation81_spill] sm:$0xff] }
 0x7e5   : > { %8853 = vrot.lane.b32.xlu0 %v13936_v53, %s10531_s12  ;;  %8766 = vrot.lane.b32.xlu1 %v13937_v44, %s10531_s12  ;;  %v13956_v44 = vld [vmem:[#allocation30_spill] sm:$0xff] }
 0x7e9   : > { %6116 = vbcast.lane.b32.xlu0 %v6114_v61, 256  ;;  %6105 = vbcast.lane.b32.xlu1 %v6103_v32, 256 }
 0x7ed   : > { %6120 = vbcast.lane.b32.xlu0 %v6114_v61, 264  ;;  %6109 = vbcast.lane.b32.xlu1 %v6103_v32, 264  ;;  %v13957_v61 = vld [vmem:[#allocation83_spill] sm:$0xff] }
 0x7f1   : > { %8851 = vrot.lane.b32.xlu0 %v13938_v20, %s10531_s12  ;;  %8764 = vrot.lane.b32.xlu1 %v13939_v62, %s10531_s12  ;;  %v13958_v20 = vld [vmem:[#allocation33_spill] sm:$0xff]  ;;  %v13959_v62 = vld [vmem:[#allocation39_spill] sm:$0xff] }
 0x807   : > { %v5744_v35 = vpop.permute.xlu1 %5743  ;;  %v5755_v26 = vpop.permute.xlu0 %5754 }
 0x808   : > { %v5914_v7 = vmul.f32 %v13940_v2, %v5744_v35  ;;  %v5916_v28 = vmul.f32 %v13941_v16, %v5755_v26  ;;  %v13960_v2 = vld [vmem:[#allocation5_spill] sm:$0xff]  ;;  %v13961_v16 = vld [vmem:[#allocation70_spill] sm:$0xff] }
 0x80a   : > { %10127 = vmatprep.mubr.msk.f32.mxu0 %vm3898_vm4, %v5914_v7  ;;  %10134 = vmatprep.mubr.msk.f32.mxu1 %vm3898_vm4, %v5916_v28 }
 0x80b   : > { %v5748_v8 = vpop.permute.xlu1 %5747  ;;  %v5759_v10 = vpop.permute.xlu0 %5758 }
 0x80c   : > { %v5915_v63 = vmul.f32 %v13942_v31, %v5748_v8  ;;  %v5917_v47 = vmul.f32 %v13943_v6, %v5759_v10  ;;  %v13962_v31 = vld [vmem:[#allocation36_spill] sm:$0xff] }
 0x80e   : > { %10128 = vmatmul.mubr.msk.f32.vlgmr.msra.gmra.mxu0 %vm3898_vm4, %v5915_v63  ;;  %10135 = vmatmul.mubr.msk.f32.vlgmr.msra.gmra.mxu1 %vm3898_vm4, %v5917_v47  ;;  %v13963_v63 = vld [vmem:[#allocation85_spill] sm:$0xff]  ;;  %v13964_v47 = vld [vmem:[#allocation42_spill] sm:$0xff] }
 0x80f   : > { %10138 = vmatpush3.msra.mxu0 %v13944_v0  ;;  %10145 = vmatpush3.msra.mxu1 %v13945_v13  ;;  %v5766_v12 = vpop.permute.xlu1 %5765  ;;  %v5777_v58 = vpop.permute.xlu0 %5776  ;;  %v13965_v0 = vld [vmem:[#allocation87_spill] sm:$0xff] }
 0x810   : > { %10139 = vmatprep.subr.mxu0 %v13946_v19  ;;  %v5918_v60 = vmul.f32 %v13947_v36, %v5766_v12  ;;  %10146 = vmatprep.subr.mxu1 %v13948_v49  ;;  %v5920_v24 = vmul.f32 %v13949_v3, %v5777_v58  ;;  %v13966_v12 = vld [vmem:[#allocation44_spill] sm:$0xff]  ;;  %v13969_v3 = vld [vmem:[#allocation77_spill] sm:$0xff] }
 0x811   : > { %10140 = vmatpush3.msra.mxu0 %v13946_v19  ;;  %10147 = vmatpush3.msra.mxu1 %v13948_v49  ;;  %v13967_v58 = vld [vmem:[#allocation48_spill] sm:$0xff] }
 0x812   : > { %10151 = vmatprep.subr.mxu0 %v13950_v46  ;;  %10158 = vmatprep.subr.mxu1 %v13951_v18 }
 0x813   : > { %10141 = vmatprep.mubr.msk.f32.mxu0 %vm3898_vm4, %v5918_v60  ;;  %10148 = vmatprep.mubr.msk.f32.mxu1 %vm3898_vm4, %v5920_v24  ;;  %v5770_v1 = vpop.permute.xlu1 %5769  ;;  %v5781_v17 = vpop.permute.xlu0 %5780  ;;  %v13968_v60 = vld [vmem:[#allocation74_spill] sm:$0xff] }
 0x814   : > { %v5919_v40 = vmul.f32 %v13952_v43, %v5770_v1  ;;  %v5921_v55 = vmul.f32 %v13953_v56, %v5781_v17  ;;  %v13970_v1 = vld [vmem:[#allocation46_spill] sm:$0xff]  ;;  %v13971_v17 = vld [vmem:[#allocation89_spill] sm:$0xff] }
 0x815   : > { %v13973_v56 = vld [vmem:[#allocation86_spill] sm:$0xff] }
 0x816   : > { %10142 = vmatmul.mubr.msk.f32.vlgmr.msra.gmra.mxu0 %vm3898_vm4, %v5919_v40  ;;  %10149 = vmatmul.mubr.msk.f32.vlgmr.msra.gmra.mxu1 %vm3898_vm4, %v5921_v55  ;;  %v13972_v40 = vld [vmem:[#allocation50_spill] sm:$0xff] }
 0x817   : > { %10152 = vmatpush3.msra.mxu0 %v13950_v46  ;;  %10159 = vmatpush3.msra.mxu1 %v13951_v18  ;;  %v5788_v39 = vpop.permute.xlu1 %5787  ;;  %v5799_v48 = vpop.permute.xlu0 %5798 }
 0x818   : > { %10153 = vmatprep.subr.mxu0 %v13954_v34  ;;  %v5922_v53 = vmul.f32 %v13955_v51, %v5788_v39  ;;  %10160 = vmatprep.subr.mxu1 %v13956_v44  ;;  %v5924_v32 = vmul.f32 %v13957_v61, %v5799_v48  ;;  %v13974_v39 = vld [vmem:[#allocation52_spill] sm:$0xff]  ;;  %v13975_v48 = vld [vmem:[#allocation54_spill] sm:$0xff] }
 0x819   : > { %10154 = vmatpush3.msra.mxu0 %v13954_v34  ;;  %10161 = vmatpush3.msra.mxu1 %v13956_v44  ;;  %v13977_v61 = vld [vmem:[#allocation76_spill] sm:$0xff] }
 0x81a   : > { %10165 = vmatprep.subr.mxu0 %v13958_v20  ;;  %10172 = vmatprep.subr.mxu1 %v13959_v62 }
 0x81b   : > { %10155 = vmatprep.mubr.msk.f32.mxu0 %vm3898_vm4, %v5922_v53  ;;  %10162 = vmatprep.mubr.msk.f32.mxu1 %vm3898_vm4, %v5924_v32  ;;  %v5792_v35 = vpop.permute.xlu1 %5791  ;;  %v5803_v26 = vpop.permute.xlu0 %5802  ;;  %v13976_v53 = vld [vmem:[#allocation9_spill] sm:$0xff] }
 0x81c   : > { %v5923_v7 = vmul.f32 %v13960_v2, %v5792_v35  ;;  %v5925_v28 = vmul.f32 %v13961_v16, %v5803_v26  ;;  %v13978_v35 = vld [vmem:[#allocation53_spill] sm:$0xff]  ;;  %v13979_v26 = vld [vmem:[#allocation90_spill] sm:$0xff]  ;;  %v13981_v16 = vld [vmem:[#allocation127_spill] sm:$0xff] }
 0x81e   : > { %10156 = vmatmul.mubr.msk.f32.vlgmr.msra.gmra.mxu0 %vm3898_vm4, %v5923_v7  ;;  %10163 = vmatmul.mubr.msk.f32.vlgmr.msra.gmra.mxu1 %vm3898_vm4, %v5925_v28  ;;  %v13980_v7 = vld [vmem:[#allocation55_spill] sm:$0xff] }
 0x81f   : > { %10166 = vmatpush3.msra.mxu0 %v13958_v20  ;;  %10173 = vmatpush3.msra.mxu1 %v13959_v62  ;;  %v5810_v8 = vpop.permute.xlu1 %5809  ;;  %v5821_v10 = vpop.permute.xlu0 %5820 }
 0x820   : > { %10167 = vmatprep.subr.mxu0 %v13962_v31  ;;  %v5926_v6 = vmul.f32 %v13963_v63, %v5810_v8  ;;  %10174 = vmatprep.subr.mxu1 %v13964_v47  ;;  %v5928_v13 = vmul.f32 %v13965_v0, %v5821_v10  ;;  %v13982_v8 = vld [vmem:[#allocation56_spill] sm:$0xff]  ;;  %v13983_v10 = vld [vmem:[#allocation62_spill] sm:$0xff] }
 0x821   : > { %10168 = vmatpush3.msra.mxu0 %v13962_v31  ;;  %10175 = vmatpush3.msra.mxu1 %v13964_v47  ;;  %v13985_v0 = vld [vmem:[#allocation80_spill] sm:$0xff] }
 0x822   : > { %10179 = vmatprep.subr.mxu0 %v13966_v12  ;;  %10186 = vmatprep.subr.mxu1 %v13967_v58 }
 0x823   : > { %10169 = vmatprep.mubr.msk.f32.mxu0 %vm3898_vm4, %v5926_v6  ;;  %10176 = vmatprep.mubr.msk.f32.mxu1 %vm3898_vm4, %v5928_v13  ;;  %v5814_v19 = vpop.permute.xlu1 %5813  ;;  %v5825_v36 = vpop.permute.xlu0 %5824  ;;  %v13984_v6 = vld [vmem:[#allocation78_spill] sm:$0xff] }
 0x824   : > { %v5927_v49 = vmul.f32 %v13968_v60, %v5814_v19  ;;  %v5929_v24 = vmul.f32 %v13969_v3, %v5825_v36  ;;  %v13986_v19 = vld [vmem:[#allocation57_spill] sm:$0xff]  ;;  %v13987_v36 = vld [vmem:[#allocation128_spill] sm:$0xff] }
 0x825   : > { %v13989_v3 = vld [vmem:[#allocation129_spill] sm:$0xff] }
 0x826   : > { %10170 = vmatmul.mubr.msk.f32.vlgmr.msra.gmra.mxu0 %vm3898_vm4, %v5927_v49  ;;  %10177 = vmatmul.mubr.msk.f32.vlgmr.msra.gmra.mxu1 %vm3898_vm4, %v5929_v24  ;;  %v13988_v49 = vld [vmem:[#allocation64_spill] sm:$0xff] }
 0x827   : > { %10180 = vmatpush3.msra.mxu0 %v13966_v12  ;;  %10187 = vmatpush3.msra.mxu1 %v13967_v58  ;;  %v5832_v46 = vpop.permute.xlu1 %5831  ;;  %v5843_v18 = vpop.permute.xlu0 %5842 }
 0x828   : > { %10181 = vmatprep.subr.mxu0 %v13970_v1  ;;  %v5930_v43 = vmul.f32 %v13971_v17, %v5832_v46  ;;  %10188 = vmatprep.subr.mxu1 %v13972_v40  ;;  %v5932_v55 = vmul.f32 %v13973_v56, %v5843_v18  ;;  %v13990_v46 = vld [vmem:[#allocation65_spill] sm:$0xff]  ;;  %v13991_v18 = vld [vmem:[#allocation95_spill] sm:$0xff]  ;;  %v13993_v56 = vld [vmem:[#allocation84_spill] sm:$0xff] }
 0x829   : > { %10182 = vmatpush3.msra.mxu0 %v13970_v1  ;;  %10189 = vmatpush3.msra.mxu1 %v13972_v40 }
 0x82a   : > { %10193 = vmatprep.subr.mxu0 %v13974_v39  ;;  %10200 = vmatprep.subr.mxu1 %v13975_v48 }
 0x82b   : > { %10183 = vmatprep.mubr.msk.f32.mxu0 %vm3898_vm4, %v5930_v43  ;;  %10190 = vmatprep.mubr.msk.f32.mxu1 %vm3898_vm4, %v5932_v55  ;;  %v5836_v34 = vpop.permute.xlu1 %5835  ;;  %v5847_v51 = vpop.permute.xlu0 %5846  ;;  %v13992_v43 = vld [vmem:[#allocation82_spill] sm:$0xff] }
 0x82c   : > { %v5931_v44 = vmul.f32 %v13976_v53, %v5836_v34  ;;  %v5933_v32 = vmul.f32 %v13977_v61, %v5847_v51  ;;  %v13994_v34 = vld [vmem:[#allocation66_spill] sm:$0xff]  ;;  %v13997_v61 = vld [vmem:[#allocation131_spill] sm:$0xff] }
 0x82d   : > { %v13995_v51 = vld [vmem:[#allocation130_spill] sm:$0xff] }
 0x82e   : > { %10184 = vmatmul.mubr.msk.f32.vlgmr.msra.gmra.mxu0 %vm3898_vm4, %v5931_v44  ;;  %10191 = vmatmul.mubr.msk.f32.vlgmr.msra.gmra.mxu1 %vm3898_vm4, %v5933_v32  ;;  %v13996_v44 = vld [vmem:[#allocation97_spill] sm:$0xff] }
 0x82f   : > { %10194 = vmatpush3.msra.mxu0 %v13974_v39  ;;  %10201 = vmatpush3.msra.mxu1 %v13975_v48  ;;  %v5854_v20 = vpop.permute.xlu1 %5853  ;;  %v5865_v62 = vpop.permute.xlu0 %5864 }
 0x830   : > { %10195 = vmatprep.subr.mxu0 %v13978_v35  ;;  %v5934_v2 = vmul.f32 %v13979_v26, %v5854_v20  ;;  %10202 = vmatprep.subr.mxu1 %v13980_v7  ;;  %v5936_v28 = vmul.f32 %v13981_v16, %v5865_v62  ;;  %v13998_v20 = vld [vmem:[#allocation3_spill] sm:$0xff]  ;;  %v13999_v62 = vld [vmem:[#allocation8_spill] sm:$0xff]  ;;  %v14001_v16 = vld [vmem:[#allocation126_spill] sm:$0xff] }
 0x831   : > { %10196 = vmatpush3.msra.mxu0 %v13978_v35  ;;  %10203 = vmatpush3.msra.mxu1 %v13980_v7 }
 0x832   : > { %10207 = vmatprep.subr.mxu0 %v13982_v8  ;;  %10214 = vmatprep.subr.mxu1 %v13983_v10 }
 0x833   : > { %10197 = vmatprep.mubr.msk.f32.mxu0 %vm3898_vm4, %v5934_v2  ;;  %10204 = vmatprep.mubr.msk.f32.mxu1 %vm3898_vm4, %v5936_v28  ;;  %v5858_v31 = vpop.permute.xlu1 %5857  ;;  %v5869_v63 = vpop.permute.xlu0 %5868  ;;  %v14000_v2 = vld [vmem:[#allocation88_spill] sm:$0xff] }
 0x834   : > { %v5935_v47 = vmul.f32 %v13984_v6, %v5858_v31  ;;  %v5937_v13 = vmul.f32 %v13985_v0, %v5869_v63  ;;  %v14003_v31 = vld [vmem:[#allocation124_spill] sm:$0xff]  ;;  %v14004_v0 = vld [vmem:[#allocation6_spill] sm:$0xff] }
 0x835   : > { %v6124_v63 = vmul.f32 %v14003_v31, %v12908_v54  ;;  %v14007_v54 = vld [vmem:[#allocation108_spill] sm:$0xff]  ;;  %v14034_v31 = vld [vmem:[#allocation94_spill] sm:$0xff] }
 0x836   : > { %10198 = vmatmul.mubr.msk.f32.vlgmr.msra.gmra.mxu0 %vm3898_vm4, %v5935_v47  ;;  %10205 = vmatmul.mubr.msk.f32.vlgmr.msra.gmra.mxu1 %vm3898_vm4, %v5937_v13  ;;  %v14006_v13 = vld [vmem:[#allocation107_spill] sm:$0xff] }
 0x837   : > { %10208 = vmatpush3.msra.mxu0 %v13982_v8  ;;  %10215 = vmatpush3.msra.mxu1 %v13983_v10  ;;  %v5876_v12 = vpop.permute.xlu1 %5875  ;;  %v5887_v58 = vpop.permute.xlu0 %5886  ;;  %v14002_v8 = vld [vmem:[#allocation122_spill] sm:$0xff] }
 0x838   : > { %10209 = vmatprep.subr.mxu0 %v13986_v19  ;;  %v5938_v60 = vmul.f32 %v13987_v36, %v5876_v12  ;;  %10216 = vmatprep.subr.mxu1 %v13988_v49  ;;  %v5940_v24 = vmul.f32 %v13989_v3, %v5887_v58  ;;  %v6122_v10 = vmul.f32 %v14002_v8, %v12880_v59  ;;  %v14005_v59 = vld [vmem:[#allocation10_spill] sm:$0xff]  ;;  %v14009_v36 = vld [vmem:[#allocation16_spill] sm:$0xff] }
 0x839   : > { %10210 = vmatpush3.msra.mxu0 %v13986_v19  ;;  %10217 = vmatpush3.msra.mxu1 %v13988_v49  ;;  %v6123_v12 = vmul.f32 %v14006_v13, %v12882_v9  ;;  %v6125_v58 = vmul.f32 %v14007_v54, %v12912_v42  ;;  %v14008_v19 = vld [vmem:[#allocation12_spill] sm:$0xff]  ;;  %v14011_v42 = vld [vmem:[#allocation67_spill] sm:$0xff] }
 0x83a   : > { %10221 = vmatprep.subr.mxu0 %v13990_v46  ;;  %10228 = vmatprep.subr.mxu1 %v13991_v18  ;;  %v14036_v13 = vld [vmem:[#allocation47_spill] sm:$0xff] }
 0x83b   : > { %10211 = vmatprep.mubr.msk.f32.mxu0 %vm3898_vm4, %v5938_v60  ;;  %10218 = vmatprep.mubr.msk.f32.mxu1 %vm3898_vm4, %v5940_v24  ;;  %v5880_v1 = vpop.permute.xlu1 %5879  ;;  %v5891_v17 = vpop.permute.xlu0 %5890  ;;  %v14010_v60 = vld [vmem:[#allocation125_spill] sm:$0xff]  ;;  %v6128_v24 = vmul.f32 %v14011_v42, %v12916_v11 }
 0x83c   : > { %v5939_v40 = vmul.f32 %v13992_v43, %v5880_v1  ;;  %v5941_v55 = vmul.f32 %v13993_v56, %v5891_v17  ;;  %v6126_v49 = vmul.f32 %v14010_v60, %v12884_v27  ;;  %v14013_v27 = vld [vmem:[#allocation19_spill] sm:$0xff]  ;;  %v14015_v17 = vld [vmem:[#allocation110_spill] sm:$0xff]  ;;  %v14016_v11 = vld [vmem:[#allocation21_spill] sm:$0xff] }
 0x83d   : > { %v6129_v43 = vmul.f32 %v14015_v17, %v12918_v5  ;;  %v14018_v56 = vld [vmem:[#allocation93_spill] sm:$0xff]  ;;  %v14042_v60 = vld [vmem:[#allocation99_spill] sm:$0xff] }
 0x83e   : > { %10212 = vmatmul.mubr.msk.f32.vlgmr.msra.gmra.mxu0 %vm3898_vm4, %v5939_v40  ;;  %10219 = vmatmul.mubr.msk.f32.vlgmr.msra.gmra.mxu1 %vm3898_vm4, %v5941_v55  ;;  %v14017_v40 = vld [vmem:[#allocation28_spill] sm:$0xff]  ;;  %v6130_v55 = vmul.f32 %v14018_v56, %v12888_v45  ;;  %v14019_v5 = vld [vmem:[#allocation69_spill] sm:$0xff]  ;;  %v14021_v45 = vld [vmem:[#allocation31_spill] sm:$0xff] }
 0x83f   : > { %10222 = vmatpush3.msra.mxu0 %v13990_v46  ;;  %10229 = vmatpush3.msra.mxu1 %v13991_v18  ;;  %v5898_v39 = vpop.permute.xlu1 %5897  ;;  %v5909_v48 = vpop.permute.xlu0 %5908  ;;  %v14012_v46 = vld [vmem:[#allocation14_spill] sm:$0xff]  ;;  %v14014_v18 = vld [vmem:[#allocation109_spill] sm:$0xff] }
 0x840   : > { %10223 = vmatprep.subr.mxu0 %v13994_v34  ;;  %v5942_v53 = vmul.f32 %v13995_v51, %v5898_v39  ;;  %10230 = vmatprep.subr.mxu1 %v13996_v44  ;;  %v5944_v32 = vmul.f32 %v13997_v61, %v5909_v48  ;;  %v6127_v1 = vmul.f32 %v14014_v18, %v12886_v50  ;;  %v14022_v51 = vld [vmem:[#allocation111_spill] sm:$0xff] }
 0x841   : > { %10224 = vmatpush3.msra.mxu0 %v13994_v34  ;;  %10231 = vmatpush3.msra.mxu1 %v13996_v44  ;;  %v6132_v48 = vmul.f32 %v14019_v5, %v12928_v30  ;;  %v14020_v34 = vld [vmem:[#allocation24_spill] sm:$0xff]  ;;  %v14024_v30 = vld [vmem:[#allocation34_spill] sm:$0xff] }
 0x842   : > { %10235 = vmatprep.subr.mxu0 %v13998_v20  ;;  %10242 = vmatprep.subr.mxu1 %v13999_v62  ;;  %v14023_v44 = vld [vmem:[#allocation112_spill] sm:$0xff] }
 0x843   : > { %10225 = vmatprep.mubr.msk.f32.mxu0 %vm3898_vm4, %v5942_v53  ;;  %10232 = vmatprep.mubr.msk.f32.mxu1 %vm3898_vm4, %v5944_v32  ;;  %v5902_v35 = vpop.permute.xlu1 %5901  ;;  %v5913_v26 = vpop.permute.xlu0 %5912  ;;  %v6131_v53 = vmul.f32 %v14022_v51, %v12890_v22  ;;  %v6133_v61 = vmul.f32 %v14023_v44, %v12930_v14  ;;  %v14025_v32 = vld [vmem:[#allocation41_spill] sm:$0xff]  ;;  %v14027_v14 = vld [vmem:[#allocation71_spill] sm:$0xff]  ;;  %v13250_v44 = vstv %s352_s13 }
 0x844   : > { %v5943_v7 = vmul.f32 %v14000_v2, %v5902_v35  ;;  %v5945_v28 = vmul.f32 %v14001_v16, %v5913_v26  ;;  %v6136_v26 = vmul.f32 %v14027_v14, %v12936_v15  ;;  %v14028_v2 = vld [vmem:[#allocation38_spill] sm:$0xff]  ;;  %v14032_v15 = vld [vmem:[#allocation45_spill] sm:$0xff]  ;;  %v14055_v51 = vld [vmem:[#allocation123_spill] sm:$0xff] }
 0x846   : > { %10226 = vmatmul.mubr.msk.f32.vlgmr.msra.gmra.mxu0 %vm3898_vm4, %v5943_v7  ;;  %10233 = vmatmul.mubr.msk.f32.vlgmr.msra.gmra.mxu1 %vm3898_vm4, %v5945_v28  ;;  %v14030_v7 = vld [vmem:[#allocation113_spill] sm:$0xff]  ;;  %v14031_v28 = vld [vmem:[#allocation114_spill] sm:$0xff] }
 0x847   : > { %10236 = vmatpush3.msra.mxu0 %v13998_v20  ;;  %10243 = vmatpush3.msra.mxu1 %v13999_v62  ;;  %v13094_v6 = vpop.permute.xlu1 %8592  ;;  %v13096_v47 = vpop.permute.xlu0 %8679  ;;  %v14026_v20 = vld [vmem:[#allocation92_spill] sm:$0xff]  ;;  %v6135_v16 = vmul.f32 %v14030_v7, %v12894_v23  ;;  %v6137_v8 = vmul.f32 %v14031_v28, %v12946_v21 }
 0x848   : > { %10237 = vmatprep.subr.mxu0 %v14004_v0  ;;  %10239 = vmatprep.mubr.msk.f32.mxu0 %vm3898_vm4, %v6122_v10  ;;  %v6134_v62 = vmul.f32 %v14026_v20, %v12892_v52  ;;  %v14029_v52 = vld [vmem:[#allocation43_spill] sm:$0xff]  ;;  %v14033_v10 = vld [vmem:[#allocation49_spill] sm:$0xff] }
 0x849   : > { %10244 = vmatprep.subr.mxu1 %v14005_v59  ;;  %10246 = vmatprep.mubr.msk.f32.mxu1 %vm3898_vm4, %v6124_v63  ;;  %v6138_v63 = vmul.f32 %v14034_v31, %v12950_v29  ;;  %v14038_v29 = vld [vmem:[#allocation116_spill] sm:$0xff] }
 0x84a   : > { %10238 = vmatpush3.msra.mxu0 %v14004_v0  ;;  %10245 = vmatpush3.msra.mxu1 %v14005_v59  ;;  %v14035_v59 = vld [vmem:[#allocation73_spill] sm:$0xff]  ;;  %v6141_v54 = vmul.f32 %v14038_v29, %v12956_v41 }
 0x84b   : > { %10249 = vmatprep.subr.mxu0 %v14008_v19  ;;  %10256 = vmatprep.subr.mxu1 %v14009_v36  ;;  %v13114_v3 = vpop.permute.xlu1 %6083  ;;  %v13116_v9 = vpop.permute.xlu0 %6094  ;;  %v6140_v21 = vmul.f32 %v14035_v59, %v12948_v25  ;;  %v14040_v25 = vld [vmem:[#allocation61_spill] sm:$0xff] }
 0x84c   : > { %10240 = vmatmul.mubr.msk.f32.vlgmr.msra.gmra.mxu0 %vm3898_vm4, %v6123_v12  ;;  %10247 = vmatmul.mubr.msk.f32.vlgmr.msra.gmra.mxu1 %vm3898_vm4, %v6125_v58  ;;  %v14037_v12 = vld [vmem:[#allocation51_spill] sm:$0xff] }
 0x84d   : > { %10250 = vmatpush3.msra.mxu0 %v14008_v19  ;;  %10257 = vmatpush3.msra.mxu1 %v14009_v36  ;;  %v14039_v58 = vld [vmem:[#allocation115_spill] sm:$0xff]  ;;  %v14041_v36 = vld [vmem:[#allocation100_spill] sm:$0xff] }
 0x84e   : > { %10251 = vmatprep.subr.mxu0 %v14012_v46  ;;  %10253 = vmatprep.mubr.msk.f32.mxu0 %vm3898_vm4, %v6126_v49  ;;  %v6139_v19 = vmul.f32 %v14039_v58, %v12958_v33  ;;  %v6142_v49 = vmul.f32 %v14042_v60, %v12962_v37  ;;  %v14046_v37 = vld [vmem:[#allocation118_spill] sm:$0xff] }
 0x84f   : > { %10258 = vmatprep.subr.mxu1 %v14013_v27  ;;  %10260 = vmatprep.mubr.msk.f32.mxu1 %vm3898_vm4, %v6128_v24  ;;  %v13138_v39 = vpop.permute.xlu1 %6087  ;;  %v13140_v50 = vpop.permute.xlu0 %6098  ;;  %v14043_v24 = vld [vmem:[#allocation101_spill] sm:$0xff]  ;;  %v6145_v18 = vmul.f32 %v14046_v37, %v12964_v57 }
 0x850   : > { %10252 = vmatpush3.msra.mxu0 %v14012_v46  ;;  %10259 = vmatpush3.msra.mxu1 %v14013_v27  ;;  %v6144_v33 = vmul.f32 %v14043_v24, %v12960_v4  ;;  %v14044_v46 = vld [vmem:[#allocation103_spill] sm:$0xff]  ;;  %v14045_v27 = vld [vmem:[#allocation102_spill] sm:$0xff] }
 0x851   : > { %10263 = vmatprep.subr.mxu0 %v14016_v11  ;;  %10270 = vmatprep.subr.mxu1 %v14017_v40  ;;  %v14048_v4 = vld [vmem:[#allocation63_spill] sm:$0xff] }
 0x852   : > { %10254 = vmatmul.mubr.msk.f32.vlgmr.msra.gmra.mxu0 %vm3898_vm4, %v6127_v1  ;;  %10261 = vmatmul.mubr.msk.f32.vlgmr.msra.gmra.mxu1 %vm3898_vm4, %v6129_v43  ;;  %v14047_v1 = vld [vmem:[#allocation117_spill] sm:$0xff]  ;;  %v6146_v43 = vmul.f32 %v14048_v4, %v13114_v3  ;;  %v14050_v3 = vld [vmem:[#allocation119_spill] sm:$0xff] }
 0x853   : > { %10264 = vmatpush3.msra.mxu0 %v14016_v11  ;;  %10271 = vmatpush3.msra.mxu1 %v14017_v40  ;;  %v13162_v35 = vpop.permute.xlu1 %8590  ;;  %v13164_v22 = vpop.permute.xlu0 %8677  ;;  %v6143_v17 = vmul.f32 %v14047_v1, %v12966_v38  ;;  %v14049_v40 = vld [vmem:[#allocation68_spill] sm:$0xff]  ;;  %v6147_v56 = vmul.f32 %v14050_v3, %v13138_v39 }
 0x854   : > { %10265 = vmatprep.subr.mxu0 %v14020_v34  ;;  %10267 = vmatprep.mubr.msk.f32.mxu0 %vm3898_vm4, %v6130_v55  ;;  %v6148_v38 = vmul.f32 %v14049_v40, %v13116_v9  ;;  %v14051_v55 = vld [vmem:[#allocation120_spill] sm:$0xff] }
 0x855   : > { %10272 = vmatprep.subr.mxu1 %v14021_v45  ;;  %10274 = vmatprep.mubr.msk.f32.mxu1 %vm3898_vm4, %v6132_v48  ;;  %v6149_v5 = vmul.f32 %v14051_v55, %v13140_v50  ;;  %v14053_v9 = vld [vmem:[#allocation72_spill] sm:$0xff]  ;;  %v14054_v50 = vld [vmem:[#allocation121_spill] sm:$0xff] }
 0x856   : > { %10266 = vmatpush3.msra.mxu0 %v14020_v34  ;;  %10273 = vmatpush3.msra.mxu1 %v14021_v45 }
 0x857   : > { %10277 = vmatprep.subr.mxu0 %v14024_v30  ;;  %10284 = vmatprep.subr.mxu1 %v14025_v32  ;;  %v8767_v0 = vpop.permute.xlu1 %8766  ;;  %v8854_v23 = vpop.permute.xlu0 %8853 }
 0x858   : > { %10268 = vmatmul.mubr.msk.f32.vlgmr.msra.gmra.mxu0 %vm3898_vm4, %v6131_v53  ;;  %10275 = vmatmul.mubr.msk.f32.vlgmr.msra.gmra.mxu1 %vm3898_vm4, %v6133_v61 }
 0x859   : > { %10278 = vmatpush3.msra.mxu0 %v14024_v30  ;;  %10285 = vmatpush3.msra.mxu1 %v14025_v32 }
 0x85a   : > { %10279 = vmatprep.subr.mxu0 %v14028_v2  ;;  %10281 = vmatprep.mubr.msk.f32.mxu0 %vm3898_vm4, %v6134_v62 }
 0x85b   : > { %10286 = vmatprep.subr.mxu1 %v14029_v52  ;;  %10288 = vmatprep.mubr.msk.f32.mxu1 %vm3898_vm4, %v6136_v26  ;;  %v6106_v42 = vpop.permute.xlu1 %6105  ;;  %v6117_v41 = vpop.permute.xlu0 %6116 }
 0x85c   : > { %10280 = vmatpush3.msra.mxu0 %v14028_v2  ;;  %10287 = vmatpush3.msra.mxu1 %v14029_v52  ;;  %v6152_v48 = vmul.f32 %v14053_v9, %v6117_v41 }
 0x85d   : > { %10291 = vmatprep.subr.mxu0 %v14032_v15  ;;  %10298 = vmatprep.subr.mxu1 %v14033_v10 }
 0x85e   : > { %10282 = vmatmul.mubr.msk.f32.vlgmr.msra.gmra.mxu0 %vm3898_vm4, %v6135_v16  ;;  %10289 = vmatmul.mubr.msk.f32.vlgmr.msra.gmra.mxu1 %vm3898_vm4, %v6137_v8 }
 0x85f   : > { %10292 = vmatpush3.msra.mxu0 %v14032_v15  ;;  %10299 = vmatpush3.msra.mxu1 %v14033_v10  ;;  %v6110_v11 = vpop.permute.xlu1 %6109  ;;  %v6121_v57 = vpop.permute.xlu0 %6120 }
 0x860   : > { %10293 = vmatprep.subr.mxu0 %v14036_v13  ;;  %10295 = vmatprep.mubr.msk.f32.mxu0 %vm3898_vm4, %v6138_v63  ;;  %v6151_v45 = vmul.f32 %v14054_v50, %v6110_v11  ;;  %v6153_v53 = vmul.f32 %v14055_v51, %v6121_v57 }
 0x861   : > { %10300 = vmatprep.subr.mxu1 %v14037_v12  ;;  %10302 = vmatprep.mubr.msk.f32.mxu1 %vm3898_vm4, %v6140_v21 }
 0x862   : > { %10294 = vmatpush3.msra.mxu0 %v14036_v13  ;;  %10301 = vmatpush3.msra.mxu1 %v14037_v12 }
 0x863   : > { %10305 = vmatprep.subr.mxu0 %v14040_v25  ;;  %10312 = vmatprep.subr.mxu1 %v14041_v36  ;;  %v8765_v34 = vpop.permute.xlu1 %8764  ;;  %v8852_v39 = vpop.permute.xlu0 %8851 }
 0x864   : > { %10296 = vmatmul.mubr.msk.f32.vlgmr.msra.gmra.mxu0 %vm3898_vm4, %v6139_v19  ;;  %10303 = vmatmul.mubr.msk.f32.vlgmr.msra.gmra.mxu1 %vm3898_vm4, %v6141_v54 }
 0x865   : > { %10306 = vmatpush3.msra.mxu0 %v14040_v25  ;;  %10313 = vmatpush3.msra.mxu1 %v14041_v36 }
 0x866   : > { %10307 = vmatprep.subr.mxu0 %v14044_v46  ;;  %10309 = vmatprep.mubr.msk.f32.mxu0 %vm3898_vm4, %v6142_v49 }
 0x867   : > { %10314 = vmatprep.subr.mxu1 %v14045_v27  ;;  %10316 = vmatprep.mubr.msk.f32.mxu1 %vm3898_vm4, %v6144_v33 }
 0x868   : > { %10308 = vmatpush3.msra.mxu0 %v14044_v46  ;;  %10315 = vmatpush3.msra.mxu1 %v14045_v27 }
 0x869   : > { %10319 = vmatprep.subr.mxu0 %v13094_v6  ;;  %10326 = vmatprep.subr.mxu1 %v13096_v47 }
 0x86a   : > { %10310 = vmatmul.mubr.msk.f32.vlgmr.msra.gmra.mxu0 %vm3898_vm4, %v6143_v17  ;;  %10317 = vmatmul.mubr.msk.f32.vlgmr.msra.gmra.mxu1 %vm3898_vm4, %v6145_v18 }
 0x86b   : > { %10320 = vmatpush3.msra.mxu0 %v13094_v6  ;;  %10327 = vmatpush3.msra.mxu1 %v13096_v47  ;;  %v14052_v6 = vld [vmem:[#allocation7_spill] sm:$0xff] }
 0x86c   : > { %10321 = vmatprep.subr.mxu0 %v13162_v35  ;;  %10323 = vmatprep.mubr.msk.f32.mxu0 %vm3898_vm4, %v6146_v43  ;;  %v6150_v47 = vmul.f32 %v14052_v6, %v6106_v42 }
 0x86d   : > { %10328 = vmatprep.subr.mxu1 %v13164_v22  ;;  %10330 = vmatprep.mubr.msk.f32.mxu1 %vm3898_vm4, %v6148_v38 }
 0x86e   : > { %10322 = vmatpush3.msra.mxu0 %v13162_v35  ;;  %10329 = vmatpush3.msra.mxu1 %v13164_v22 }
 0x86f   : > { %10333 = vmatprep.subr.mxu0 %v8767_v0  ;;  %10340 = vmatprep.subr.mxu1 %v8854_v23 }
 0x870   : > { %10324 = vmatmul.mubr.msk.f32.vlgmr.msra.gmra.mxu0 %vm3898_vm4, %v6147_v56  ;;  %10331 = vmatmul.mubr.msk.f32.vlgmr.msra.gmra.mxu1 %vm3898_vm4, %v6149_v5 }
 0x871   : > { %10334 = vmatpush3.msra.mxu0 %v8767_v0  ;;  %10341 = vmatpush3.msra.mxu1 %v8854_v23 }
 0x872   : > { %10337 = vmatprep.mubr.msk.f32.mxu0 %vm3898_vm4, %v6150_v47  ;;  %10344 = vmatprep.mubr.msk.f32.mxu1 %vm3898_vm4, %v6152_v48 }
 0x873   : > { %10335 = vmatprep.subr.mxu0 %v8765_v34  ;;  %10342 = vmatprep.subr.mxu1 %v8852_v39 }
 0x874   : > { %10336 = vmatpush3.msra.mxu0 %v8765_v34  ;;  %10343 = vmatpush3.msra.mxu1 %v8852_v39 }
 0x875   : > { %10338 = vmatmul.mubr.msk.f32.vlgmr.msra.gmra.mxu0 %vm3898_vm4, %v6151_v45  ;;  %10345 = vmatmul.mubr.msk.f32.vlgmr.msra.gmra.mxu1 %vm3898_vm4, %v6153_v53 }
 0x8ce   : > { %v10129_v61 = vpop.f32.mrf.mxu0  ;;  %v10136_v30 = vpop.f32.mrf.mxu1 }
 0x8cf   : > { %v9036_v32 = vmul.f32 %v10129_v61, %v13250_v44  ;;  %v9038_v20 = vmul.f32 %v10136_v30, %v13250_v44 }
 0x8d0   : > { %v6232_v62 = vpop.f32.mrf.mxu0  ;;  %v6319_v35 = vpop.f32.mrf.mxu1 }
 0x8d1   : > { %9068 = vst.msk [vmem:[%s13256_s16 + $0x8] sm:$0xff] %vm359_vm1, %v9036_v32  ;;  %9070 = vst.msk [vmem:[%s13256_s16 + $0x18] sm:$0xff] %vm359_vm1, %v9038_v20  ;;  %v9035_v22 = vmul.f32 %v13250_v44, %v6232_v62  ;;  %v9037_v14 = vmul.f32 %v13250_v44, %v6319_v35 }
 0x8d3   : > { %9067 = vst.msk [vmem:[%s13256_s16] sm:$0xff] %vm359_vm1, %v9035_v22  ;;  %9069 = vst.msk [vmem:[%s13256_s16 + $0x10] sm:$0xff] %vm359_vm1, %v9037_v14  ;;  %v10490_v14 = vld [vmem:[%s10587_s29 + $0x8] sm:$0xff] }
 0x8d6   : > { %v10143_v26 = vpop.f32.mrf.mxu0  ;;  %v10150_v2 = vpop.f32.mrf.mxu1 }
 0x8d7   : > { %v9040_v52 = vmul.f32 %v10143_v26, %v13250_v44  ;;  %v9042_v7 = vmul.f32 %v10150_v2, %v13250_v44  ;;  %v10491_v2 = vld [vmem:[%s10587_s29 + $0x18] sm:$0xff] }
 0x8d8   : > { %v6406_v16 = vpop.f32.mrf.mxu0  ;;  %v6493_v28 = vpop.f32.mrf.mxu1 }
 0x8d9   : > { %9072 = vst.msk [vmem:[%s13256_s16 + $0x28] sm:$0xff] %vm359_vm1, %v9040_v52  ;;  %9074 = vst.msk [vmem:[%s13256_s16 + $0x38] sm:$0xff] %vm359_vm1, %v9042_v7  ;;  %v9039_v8 = vmul.f32 %v13250_v44, %v6406_v16  ;;  %v9041_v15 = vmul.f32 %v13250_v44, %v6493_v28  ;;  %v10492_v28 = vld [vmem:[%s10587_s29] sm:$0xff] }
 0x8db   : > { %9071 = vst.msk [vmem:[%s13256_s16 + $0x20] sm:$0xff] %vm359_vm1, %v9039_v8  ;;  %9073 = vst.msk [vmem:[%s13256_s16 + $0x30] sm:$0xff] %vm359_vm1, %v9041_v15  ;;  %v10493_v15 = vld [vmem:[%s10587_s29 + $0x10] sm:$0xff] }
 0x8de   : > { %v10157_v10 = vpop.f32.mrf.mxu0  ;;  %v10164_v31 = vpop.f32.mrf.mxu1 }
 0x8df   : > { %v9044_v63 = vmul.f32 %v10157_v10, %v13250_v44  ;;  %v9046_v0 = vmul.f32 %v10164_v31, %v13250_v44 }
 0x8e0   : > { %v6580_v23 = vpop.f32.mrf.mxu0  ;;  %v6667_v59 = vpop.f32.mrf.mxu1 }
 0x8e1   : > { %9076 = vst.msk [vmem:[%s13256_s16 + $0x48] sm:$0xff] %vm359_vm1, %v9044_v63  ;;  %9078 = vst.msk [vmem:[%s13256_s16 + $0x58] sm:$0xff] %vm359_vm1, %v9046_v0  ;;  %v9043_v21 = vmul.f32 %v13250_v44, %v6580_v23  ;;  %v9045_v13 = vmul.f32 %v13250_v44, %v6667_v59 }
 0x8e3   : > { %9075 = vst.msk [vmem:[%s13256_s16 + $0x40] sm:$0xff] %vm359_vm1, %v9043_v21  ;;  %9077 = vst.msk [vmem:[%s13256_s16 + $0x50] sm:$0xff] %vm359_vm1, %v9045_v13  ;;  %v10494_v13 = vld [vmem:[%s10587_s29 + $0x28] sm:$0xff] }
 0x8e6   : > { %v10171_v12 = vpop.f32.mrf.mxu0  ;;  %v10178_v29 = vpop.f32.mrf.mxu1 }
 0x8e7   : > { %v9048_v54 = vmul.f32 %v10171_v12, %v13250_v44  ;;  %v9050_v58 = vmul.f32 %v10178_v29, %v13250_v44  ;;  %v10495_v29 = vld [vmem:[%s10587_s29 + $0x38] sm:$0xff] }
 0x8e8   : > { %v6754_v19 = vpop.f32.mrf.mxu0  ;;  %v6841_v25 = vpop.f32.mrf.mxu1 }
 0x8e9   : > { %9080 = vst.msk [vmem:[%s13256_s16 + $0x68] sm:$0xff] %vm359_vm1, %v9048_v54  ;;  %9082 = vst.msk [vmem:[%s13256_s16 + $0x78] sm:$0xff] %vm359_vm1, %v9050_v58  ;;  %v9047_v36 = vmul.f32 %v13250_v44, %v6754_v19  ;;  %v9049_v60 = vmul.f32 %v13250_v44, %v6841_v25  ;;  %v10496_v25 = vld [vmem:[%s10587_s29 + $0x20] sm:$0xff] }
 0x8eb   : > { %9079 = vst.msk [vmem:[%s13256_s16 + $0x60] sm:$0xff] %vm359_vm1, %v9047_v36  ;;  %9081 = vst.msk [vmem:[%s13256_s16 + $0x70] sm:$0xff] %vm359_vm1, %v9049_v60  ;;  %v10497_v60 = vld [vmem:[%s10587_s29 + $0x30] sm:$0xff] }
 0x8ee   : > { %v10185_v49 = vpop.f32.mrf.mxu0  ;;  %v10192_v42 = vpop.f32.mrf.mxu1 }
 0x8ef   : > { %v9052_v41 = vmul.f32 %v10185_v49, %v13250_v44  ;;  %v9054_v24 = vmul.f32 %v10192_v42, %v13250_v44 }
 0x8f0   : > { %v6928_v33 = vpop.f32.mrf.mxu0  ;;  %v7015_v46 = vpop.f32.mrf.mxu1 }
 0x8f1   : > { %9084 = vst.msk [vmem:[%s13256_s16 + $0x88] sm:$0xff] %vm359_vm1, %v9052_v41  ;;  %9086 = vst.msk [vmem:[%s13256_s16 + $0x98] sm:$0xff] %vm359_vm1, %v9054_v24  ;;  %v9051_v27 = vmul.f32 %v13250_v44, %v6928_v33  ;;  %v9053_v37 = vmul.f32 %v13250_v44, %v7015_v46 }
 0x8f3   : > { %9083 = vst.msk [vmem:[%s13256_s16 + $0x80] sm:$0xff] %vm359_vm1, %v9051_v27  ;;  %9085 = vst.msk [vmem:[%s13256_s16 + $0x90] sm:$0xff] %vm359_vm1, %v9053_v37  ;;  %v10498_v37 = vld [vmem:[%s10587_s29 + $0x48] sm:$0xff] }
 0x8f6   : > { %v10199_v18 = vpop.f32.mrf.mxu0  ;;  %v10206_v1 = vpop.f32.mrf.mxu1 }
 0x8f7   : > { %v9056_v17 = vmul.f32 %v10199_v18, %v13250_v44  ;;  %v9058_v4 = vmul.f32 %v10206_v1, %v13250_v44  ;;  %v10499_v1 = vld [vmem:[%s10587_s29 + $0x58] sm:$0xff] }
 0x8f8   : > { %v7102_v43 = vpop.f32.mrf.mxu0  ;;  %v7189_v11 = vpop.f32.mrf.mxu1 }
 0x8f9   : > { %9088 = vst.msk [vmem:[%s13256_s16 + $0xa8] sm:$0xff] %vm359_vm1, %v9056_v17  ;;  %9090 = vst.msk [vmem:[%s13256_s16 + $0xb8] sm:$0xff] %vm359_vm1, %v9058_v4  ;;  %v9055_v57 = vmul.f32 %v13250_v44, %v7102_v43  ;;  %v9057_v40 = vmul.f32 %v13250_v44, %v7189_v11  ;;  %v10500_v11 = vld [vmem:[%s10587_s29 + $0x40] sm:$0xff] }
 0x8fb   : > { %9087 = vst.msk [vmem:[%s13256_s16 + $0xa0] sm:$0xff] %vm359_vm1, %v9055_v57  ;;  %9089 = vst.msk [vmem:[%s13256_s16 + $0xb0] sm:$0xff] %vm359_vm1, %v9057_v40  ;;  %v10501_v40 = vld [vmem:[%s10587_s29 + $0x50] sm:$0xff] }
 0x8fe   : > { %v10213_v38 = vpop.f32.mrf.mxu0  ;;  %v10220_v3 = vpop.f32.mrf.mxu1 }
 0x8ff   : > { %v9060_v56 = vmul.f32 %v10213_v38, %v13250_v44  ;;  %v9062_v55 = vmul.f32 %v10220_v3, %v13250_v44 }
 0x900   : > { %v7276_v5 = vpop.f32.mrf.mxu0  ;;  %v7363_v6 = vpop.f32.mrf.mxu1 }
 0x901   : > { %9092 = vst.msk [vmem:[%s13256_s16 + $0xc8] sm:$0xff] %vm359_vm1, %v9060_v56  ;;  %9094 = vst.msk [vmem:[%s13256_s16 + $0xd8] sm:$0xff] %vm359_vm1, %v9062_v55  ;;  %v9059_v47 = vmul.f32 %v13250_v44, %v7276_v5  ;;  %v9061_v9 = vmul.f32 %v13250_v44, %v7363_v6 }
 0x903   : > { %9091 = vst.msk [vmem:[%s13256_s16 + $0xc0] sm:$0xff] %vm359_vm1, %v9059_v47  ;;  %9093 = vst.msk [vmem:[%s13256_s16 + $0xd0] sm:$0xff] %vm359_vm1, %v9061_v9  ;;  %v10502_v9 = vld [vmem:[%s10587_s29 + $0x68] sm:$0xff] }
 0x906   : > { %v10227_v48 = vpop.f32.mrf.mxu0  ;;  %v10234_v34 = vpop.f32.mrf.mxu1 }
 0x907   : > { %v9064_v39 = vmul.f32 %v10227_v48, %v13250_v44  ;;  %v9066_v50 = vmul.f32 %v10234_v34, %v13250_v44  ;;  %v10503_v34 = vld [vmem:[%s10587_s29 + $0x78] sm:$0xff] }
 0x908   : > { %v7450_v45 = vpop.f32.mrf.mxu0  ;;  %v7537_v51 = vpop.f32.mrf.mxu1 }
 0x909   : > { %9096 = vst.msk [vmem:[%s13256_s16 + $0xe8] sm:$0xff] %vm359_vm1, %v9064_v39  ;;  %9098 = vst.msk [vmem:[%s13256_s16 + $0xf8] sm:$0xff] %vm359_vm1, %v9066_v50  ;;  %v9063_v53 = vmul.f32 %v13250_v44, %v7450_v45  ;;  %v9065_v61 = vmul.f32 %v13250_v44, %v7537_v51  ;;  %v10504_v51 = vld [vmem:[%s10587_s29 + $0x60] sm:$0xff] }
 0x90b   : > { %9095 = vst.msk [vmem:[%s13256_s16 + $0xe0] sm:$0xff] %vm359_vm1, %v9063_v53  ;;  %9097 = vst.msk [vmem:[%s13256_s16 + $0xf0] sm:$0xff] %vm359_vm1, %v9065_v61  ;;  %v10505_v61 = vld [vmem:[%s10587_s29 + $0x70] sm:$0xff] }
 0x90c   : > { %v10241_v30 = vpop.f32.mrf.mxu0  ;;  %v10248_v32 = vpop.f32.mrf.mxu1 }
 0x90d   : > { %v8940_v20 = vmul.f32 %v10241_v30, %v13250_v44  ;;  %v8942_v62 = vmul.f32 %v10248_v32, %v13250_v44 }
 0x90e   : > { %v7624_v35 = vpop.f32.mrf.mxu0  ;;  %v7711_v22 = vpop.f32.mrf.mxu1 }
 0x90f   : > { %v8972_v26 = vadd.f32 %v10490_v14, %v8940_v20  ;;  %v8974_v52 = vadd.f32 %v10491_v2, %v8942_v62  ;;  %v8939_v7 = vmul.f32 %v13250_v44, %v7624_v35  ;;  %v8941_v16 = vmul.f32 %v13250_v44, %v7711_v22 }
 0x911   : > { %9004 = vst.msk [vmem:[%s13360_s19 + $0x8] sm:$0xff] %vm359_vm1, %v8972_v26  ;;  %9006 = vst.msk [vmem:[%s13360_s19 + $0x18] sm:$0xff] %vm359_vm1, %v8974_v52  ;;  %v8971_v8 = vadd.f32 %v10492_v28, %v8939_v7  ;;  %v8973_v10 = vadd.f32 %v10493_v15, %v8941_v16  ;;  %v10506_v26 = vld [vmem:[%s10587_s29 + $0x88] sm:$0xff]  ;;  %v10507_v52 = vld [vmem:[%s10587_s29 + $0x98] sm:$0xff] }
 0x912   : > { %v10255_v31 = vpop.f32.mrf.mxu0  ;;  %v10262_v63 = vpop.f32.mrf.mxu1 }
 0x913   : > { %9003 = vst.msk [vmem:[%s13360_s19] sm:$0xff] %vm359_vm1, %v8971_v8  ;;  %9005 = vst.msk [vmem:[%s13360_s19 + $0x10] sm:$0xff] %vm359_vm1, %v8973_v10  ;;  %v8944_v0 = vmul.f32 %v10255_v31, %v13250_v44  ;;  %v8946_v23 = vmul.f32 %v10262_v63, %v13250_v44  ;;  %v10508_v8 = vld [vmem:[%s10587_s29 + $0x80] sm:$0xff]  ;;  %v10509_v10 = vld [vmem:[%s10587_s29 + $0x90] sm:$0xff] }
 0x914   : > { %v7798_v59 = vpop.f32.mrf.mxu0  ;;  %v7885_v21 = vpop.f32.mrf.mxu1 }
 0x915   : > { %v8976_v12 = vadd.f32 %v10494_v13, %v8944_v0  ;;  %v8978_v54 = vadd.f32 %v10495_v29, %v8946_v23  ;;  %v8943_v58 = vmul.f32 %v13250_v44, %v7798_v59  ;;  %v8945_v19 = vmul.f32 %v13250_v44, %v7885_v21 }
 0x917   : > { %9008 = vst.msk [vmem:[%s13360_s19 + $0x28] sm:$0xff] %vm359_vm1, %v8976_v12  ;;  %9010 = vst.msk [vmem:[%s13360_s19 + $0x38] sm:$0xff] %vm359_vm1, %v8978_v54  ;;  %v8975_v36 = vadd.f32 %v10496_v25, %v8943_v58  ;;  %v8977_v49 = vadd.f32 %v10497_v60, %v8945_v19  ;;  %v10510_v12 = vld [vmem:[%s10587_s29 + $0xa8] sm:$0xff]  ;;  %v10511_v54 = vld [vmem:[%s10587_s29 + $0xb8] sm:$0xff] }
 0x918   : > { %v10269_v42 = vpop.f32.mrf.mxu0  ;;  %v10276_v41 = vpop.f32.mrf.mxu1 }
 0x919   : > { %9007 = vst.msk [vmem:[%s13360_s19 + $0x20] sm:$0xff] %vm359_vm1, %v8975_v36  ;;  %9009 = vst.msk [vmem:[%s13360_s19 + $0x30] sm:$0xff] %vm359_vm1, %v8977_v49  ;;  %v8948_v24 = vmul.f32 %v10269_v42, %v13250_v44  ;;  %v8950_v33 = vmul.f32 %v10276_v41, %v13250_v44  ;;  %v10512_v36 = vld [vmem:[%s10587_s29 + $0xa0] sm:$0xff]  ;;  %v10513_v49 = vld [vmem:[%s10587_s29 + $0xb0] sm:$0xff] }
 0x91a   : > { %v7972_v46 = vpop.f32.mrf.mxu0  ;;  %v8059_v27 = vpop.f32.mrf.mxu1 }
 0x91b   : > { %v8980_v18 = vadd.f32 %v10498_v37, %v8948_v24  ;;  %v8982_v17 = vadd.f32 %v10499_v1, %v8950_v33  ;;  %v8947_v4 = vmul.f32 %v13250_v44, %v7972_v46  ;;  %v8949_v43 = vmul.f32 %v13250_v44, %v8059_v27 }
 0x91d   : > { %9012 = vst.msk [vmem:[%s13360_s19 + $0x48] sm:$0xff] %vm359_vm1, %v8980_v18  ;;  %9014 = vst.msk [vmem:[%s13360_s19 + $0x58] sm:$0xff] %vm359_vm1, %v8982_v17  ;;  %v8979_v57 = vadd.f32 %v10500_v11, %v8947_v4  ;;  %v8981_v38 = vadd.f32 %v10501_v40, %v8949_v43  ;;  %v10514_v18 = vld [vmem:[%s10587_s29 + $0xc8] sm:$0xff]  ;;  %v10515_v17 = vld [vmem:[%s10587_s29 + $0xd8] sm:$0xff] }
 0x91e   : > { %v10283_v3 = vpop.f32.mrf.mxu0  ;;  %v10290_v56 = vpop.f32.mrf.mxu1 }
 0x91f   : > { %9011 = vst.msk [vmem:[%s13360_s19 + $0x40] sm:$0xff] %vm359_vm1, %v8979_v57  ;;  %9013 = vst.msk [vmem:[%s13360_s19 + $0x50] sm:$0xff] %vm359_vm1, %v8981_v38  ;;  %v8952_v55 = vmul.f32 %v10283_v3, %v13250_v44  ;;  %v8954_v5 = vmul.f32 %v10290_v56, %v13250_v44  ;;  %v10516_v57 = vld [vmem:[%s10587_s29 + $0xc0] sm:$0xff]  ;;  %v10517_v38 = vld [vmem:[%s10587_s29 + $0xd0] sm:$0xff] }
 0x920   : > { %v8146_v6 = vpop.f32.mrf.mxu0  ;;  %v8233_v47 = vpop.f32.mrf.mxu1 }
 0x921   : > { %v8984_v48 = vadd.f32 %v10502_v9, %v8952_v55  ;;  %v8986_v39 = vadd.f32 %v10503_v34, %v8954_v5  ;;  %v8951_v50 = vmul.f32 %v13250_v44, %v8146_v6  ;;  %v8953_v45 = vmul.f32 %v13250_v44, %v8233_v47 }
 0x923   : > { %9016 = vst.msk [vmem:[%s13360_s19 + $0x68] sm:$0xff] %vm359_vm1, %v8984_v48  ;;  %9018 = vst.msk [vmem:[%s13360_s19 + $0x78] sm:$0xff] %vm359_vm1, %v8986_v39  ;;  %v8983_v53 = vadd.f32 %v10504_v51, %v8951_v50  ;;  %v8985_v30 = vadd.f32 %v10505_v61, %v8953_v45  ;;  %v10518_v48 = vld [vmem:[%s10587_s29 + $0xe8] sm:$0xff]  ;;  %v10519_v39 = vld [vmem:[%s10587_s29 + $0xf8] sm:$0xff] }
 0x924   : > { %v10297_v32 = vpop.f32.mrf.mxu0  ;;  %v10304_v20 = vpop.f32.mrf.mxu1 }
 0x925   : > { %9015 = vst.msk [vmem:[%s13360_s19 + $0x60] sm:$0xff] %vm359_vm1, %v8983_v53  ;;  %9017 = vst.msk [vmem:[%s13360_s19 + $0x70] sm:$0xff] %vm359_vm1, %v8985_v30  ;;  %v8956_v62 = vmul.f32 %v10297_v32, %v13250_v44  ;;  %v8958_v35 = vmul.f32 %v10304_v20, %v13250_v44  ;;  %v10520_v53 = vld [vmem:[%s10587_s29 + $0xe0] sm:$0xff]  ;;  %v10521_v30 = vld [vmem:[%s10587_s29 + $0xf0] sm:$0xff] }
 0x926   : > { %v8320_v22 = vpop.f32.mrf.mxu0  ;;  %v8407_v14 = vpop.f32.mrf.mxu1 }
 0x927   : > { %v8988_v2 = vadd.f32 %v10506_v26, %v8956_v62  ;;  %v8990_v7 = vadd.f32 %v10507_v52, %v8958_v35  ;;  %v8955_v16 = vmul.f32 %v13250_v44, %v8320_v22  ;;  %v8957_v28 = vmul.f32 %v13250_v44, %v8407_v14 }
 0x929   : > { %9020 = vst.msk [vmem:[%s13360_s19 + $0x88] sm:$0xff] %vm359_vm1, %v8988_v2  ;;  %9022 = vst.msk [vmem:[%s13360_s19 + $0x98] sm:$0xff] %vm359_vm1, %v8990_v7  ;;  %v8987_v15 = vadd.f32 %v10508_v8, %v8955_v16  ;;  %v8989_v31 = vadd.f32 %v10509_v10, %v8957_v28 }
 0x92a   : > { %v10311_v63 = vpop.f32.mrf.mxu0  ;;  %v10318_v0 = vpop.f32.mrf.mxu1 }
 0x92b   : > { %9019 = vst.msk [vmem:[%s13360_s19 + $0x80] sm:$0xff] %vm359_vm1, %v8987_v15  ;;  %9021 = vst.msk [vmem:[%s13360_s19 + $0x90] sm:$0xff] %vm359_vm1, %v8989_v31  ;;  %v8960_v23 = vmul.f32 %v10311_v63, %v13250_v44  ;;  %v8962_v59 = vmul.f32 %v10318_v0, %v13250_v44 }
 0x92c   : > { %v8494_v21 = vpop.f32.mrf.mxu0  ;;  %v8581_v13 = vpop.f32.mrf.mxu1 }
 0x92d   : > { %v8992_v29 = vadd.f32 %v10510_v12, %v8960_v23  ;;  %v8994_v58 = vadd.f32 %v10511_v54, %v8962_v59  ;;  %v8959_v19 = vmul.f32 %v13250_v44, %v8494_v21  ;;  %v8961_v25 = vmul.f32 %v13250_v44, %v8581_v13 }
 0x92f   : > { %9024 = vst.msk [vmem:[%s13360_s19 + $0xa8] sm:$0xff] %vm359_vm1, %v8992_v29  ;;  %9026 = vst.msk [vmem:[%s13360_s19 + $0xb8] sm:$0xff] %vm359_vm1, %v8994_v58  ;;  %v8991_v60 = vadd.f32 %v10512_v36, %v8959_v19  ;;  %v8993_v42 = vadd.f32 %v10513_v49, %v8961_v25 }
 0x930   : > { %v10325_v41 = vpop.f32.mrf.mxu0  ;;  %v10332_v24 = vpop.f32.mrf.mxu1 }
 0x931   : > { %9023 = vst.msk [vmem:[%s13360_s19 + $0xa0] sm:$0xff] %vm359_vm1, %v8991_v60  ;;  %9025 = vst.msk [vmem:[%s13360_s19 + $0xb0] sm:$0xff] %vm359_vm1, %v8993_v42  ;;  %v8964_v33 = vmul.f32 %v10325_v41, %v13250_v44  ;;  %v8966_v46 = vmul.f32 %v10332_v24, %v13250_v44 }
 0x932   : > { %v8668_v27 = vpop.f32.mrf.mxu0  ;;  %v8755_v37 = vpop.f32.mrf.mxu1 }
 0x933   : > { %v8996_v1 = vadd.f32 %v10514_v18, %v8964_v33  ;;  %v8998_v4 = vadd.f32 %v10515_v17, %v8966_v46  ;;  %v8963_v43 = vmul.f32 %v13250_v44, %v8668_v27  ;;  %v8965_v11 = vmul.f32 %v13250_v44, %v8755_v37 }
 0x935   : > { %9028 = vst.msk [vmem:[%s13360_s19 + $0xc8] sm:$0xff] %vm359_vm1, %v8996_v1  ;;  %9030 = vst.msk [vmem:[%s13360_s19 + $0xd8] sm:$0xff] %vm359_vm1, %v8998_v4  ;;  %v8995_v40 = vadd.f32 %v10516_v57, %v8963_v43  ;;  %v8997_v3 = vadd.f32 %v10517_v38, %v8965_v11  ;;  %v10339_v56 = vpop.f32.mrf.mxu0  ;;  %v10346_v55 = vpop.f32.mrf.mxu1 }
 0x936   : > { %v8968_v5 = vmul.f32 %v10339_v56, %v13250_v44  ;;  %v8970_v6 = vmul.f32 %v10346_v55, %v13250_v44 }
 0x937   : > { %9027 = vst.msk [vmem:[%s13360_s19 + $0xc0] sm:$0xff] %vm359_vm1, %v8995_v40  ;;  %9029 = vst.msk [vmem:[%s13360_s19 + $0xd0] sm:$0xff] %vm359_vm1, %v8997_v3  ;;  %v8842_v47 = vpop.f32.mrf.mxu0  ;;  %v8929_v9 = vpop.f32.mrf.mxu1 }
 0x938   : > { %v9000_v34 = vadd.f32 %v10518_v48, %v8968_v5  ;;  %v9002_v50 = vadd.f32 %v10519_v39, %v8970_v6  ;;  %v8967_v45 = vmul.f32 %v13250_v44, %v8842_v47  ;;  %v8969_v51 = vmul.f32 %v13250_v44, %v8929_v9 }
 0x93a   : > { %9032 = vst.msk [vmem:[%s13360_s19 + $0xe8] sm:$0xff] %vm359_vm1, %v9000_v34  ;;  %9034 = vst.msk [vmem:[%s13360_s19 + $0xf8] sm:$0xff] %vm359_vm1, %v9002_v50  ;;  %v8999_v61 = vadd.f32 %v10520_v53, %v8967_v45  ;;  %v9001_v32 = vadd.f32 %v10521_v30, %v8969_v51 }
 0x93c   : > { %9031 = vst.msk [vmem:[%s13360_s19 + $0xe0] sm:$0xff] %vm359_vm1, %v8999_v61  ;;  %9033 = vst.msk [vmem:[%s13360_s19 + $0xf0] sm:$0xff] %vm359_vm1, %v9001_v32 }
 0x93d PF: > { %s18_s23 = sadd.s32 1, %s10528_s23  }
 0x93e   : > { %p15_p4 = scmp.ge.s32.totalorder %s18_s23, 4  }
 0x940   :  { %17 = sbr.rel (!%p15_p4) target bundleno = 2 (0x2), region = 85 }

</bundles_post_ra>
